<compile_context>
chip_gen: v7x
topology: tpu7x:2x2x1
jax: 0.10.0
libtpu: 0.0.40
codegen_flags: <defaults>
</compile_context>

<pallas_src>
import jax
import jax.numpy as jnp
from jax import lax
from jax.experimental import pallas as pl
from jax.experimental.pallas import tpu as pltpu


# ----------------------------- Pallas kernel -------------------------------


def _dense_layer_kernel(x_ref, s1_ref, t1_ref, w1_ref, c1_ref, tmat_ref, b2_ref,
                        o_ref, hpad_ref):
    # x_ref    : (B, D*H, W*Cin)        f32   folded input voxels (B batch elems)
    # s1/t1    : (1, W*Cin)             f32   folded BN1 scale/shift (tiled over W)
    # w1_ref   : (W*Cin, W*Cmid)        bf16  block-diag 1x1x1 weight (BN2 folded in)
    # c1_ref   : (1, W*Cmid)            f32   folded conv1-bias / BN2 shift
    # tmat_ref : (3, W*Cmid, 3*W*Cout)  bf16  per-kh block-Toeplitz 3x3x3 weights,
    #                                         the 3 kd taps concatenated along N
    # b2_ref   : (1, W*Cout)            f32
    # o_ref    : (B, D*H, W*Cout)       f32
    # hpad_ref : (B*(D+2), H+2, W*Cmid) bf16  zero-bordered scratch
    B = x_ref.shape[0]
    Dp2 = hpad_ref.shape[0] // B
    Hp2 = hpad_ref.shape[1]
    D, H = Dp2 - 2, Hp2 - 2
    WCmid = hpad_ref.shape[2]
    WCout = b2_ref.shape[1]
    cdt = hpad_ref.dtype  # bf16 compute dtype for MXU operands

    # ---- Stage 1: BN1 -> ReLU -> conv1x1x1 (+ folded BN2/bias) -> ReLU ----
    x2 = x_ref[...].reshape(B * D * H, x_ref.shape[2])
    a = jnp.maximum(x2 * s1_ref[...] + t1_ref[...], 0.0).astype(cdt)
    h = jnp.dot(a, w1_ref[...], preferred_element_type=jnp.float32) + c1_ref[...]
    h4 = jnp.maximum(h, 0.0).astype(cdt).reshape(B, D, H, WCmid)

    # ---- Refresh the zero border and store h into the scratch interior ----
    # (per-batch-element chunks bound the live range of h across the
    #  sublane-offset-1 interior store; the border stores are ~30 KiB total)
    for b in range(B):
        r0 = b * Dp2
        hpad_ref[r0:r0 + 1, :, :] = jnp.zeros((1, Hp2, WCmid), cdt)
        hpad_ref[r0 + D + 1:r0 + D + 2, :, :] = jnp.zeros((1, Hp2, WCmid), cdt)
        hpad_ref[r0 + 1:r0 + 1 + D, 0:1, :] = jnp.zeros((D, 1, WCmid), cdt)
        hpad_ref[r0 + 1:r0 + 1 + D, H + 1:Hp2, :] = jnp.zeros((D, 1, WCmid), cdt)
        hpad_ref[r0 + 1:r0 + 1 + D, 1:1 + H, :] = h4[b]

    # ---- Stage 2: 3x3x3 conv = 3 matmuls (one per kh) + layout-free adds ----
    for b in range(B):
        r0 = b * Dp2
        out = jnp.broadcast_to(b2_ref[...], (D * H, WCout))
        for kh in range(3):
            # The only sublane-unaligned load: one H-window per kh (3 total).
            lhs = hpad_ref[r0:r0 + Dp2, kh:kh + H, :].reshape(Dp2 * H, WCmid)
            res = jnp.dot(lhs, tmat_ref[kh],
                          preferred_element_type=jnp.float32)  # ((D+2)*H, 3*W*Cout)
            res3 = res.reshape(Dp2, H, 3 * WCout)
            for kd in range(3):
                # kd selection = leading-dim slice + 128-lane-aligned column
                # group + tile-aligned reshape -> no relayout.
                out = out + res3[kd:kd + D, :,
                                 kd * WCout:(kd + 1) * WCout].reshape(D * H, WCout)
        o_ref[b:b + 1, :, :] = out.reshape(1, D * H, WCout).astype(o_ref.dtype)


# ------------------------- layer parameter folding -------------------------


def _prepare_layer_kernel_params(p, W):
    """Fold per-layer params into the lane-dense, W-folded kernel layout."""
    Cin, Cmid = p["w1"].shape
    Cout = p["w2_dhwio"].shape[-1]
    f32 = jnp.float32

    # BN1 scale/shift tiled over W (lane index = w*Cin + c).
    s1_t = jnp.tile(p["s1"], (1, W))
    t1_t = jnp.tile(p["t1"], (1, W))

    # Fold BN2 + conv1 bias into the 1x1x1 weights:
    #   relu((a@w1 + b1)*s2 + t2) == relu(a @ (w1*s2) + (b1*s2 + t2))
    w1_f = p["w1"] * p["s2"]
    c1_t = jnp.tile(p["b1"] * p["s2"] + p["t2"], (1, W))

    # Block-diagonal 1x1x1 conv weight (W*Cin, W*Cmid).  Mostly zeros -> wasted
    # MXU FLOPs, acceptable while stage 2 dominates.
    w1_blk = jnp.einsum("cm,wv->wcvm", w1_f,
                        jnp.eye(W, dtype=f32)).reshape(W * Cin, W * Cmid)

    # Block-Toeplitz 3x3x3 weights (kw taps + W 'same' padding folded in),
    # regrouped per kh with the 3 kd taps concatenated along N:
    #   tmat3[kh][win*Cmid + c, kd*(W*Cout) + wout*Cout + o]
    #       = w2[kd, kh, kw, c, o]  where  win == wout + kw - 1   (else 0)
    kw_idx = jnp.arange(3)[:, None, None]
    p_idx = jnp.arange(W)[None, :, None]
    w_idx = jnp.arange(W)[None, None, :]
    mask = (p_idx == w_idx + kw_idx - 1).astype(f32)              # (kw, win, wout)
    tmat = jnp.einsum("abkco,kpw->abpcwo", p["w2_dhwio"], mask)   # (kd,kh,win,c,wout,o)
    tmat3 = jnp.transpose(tmat, (1, 2, 3, 0, 4, 5)).reshape(3, W * Cmid,
                                                            3 * W * Cout)

    b2_t = jnp.tile(p["b2"], (1, W))

    return dict(s1_t=s1_t, t1_t=t1_t,
                w1_blk=w1_blk.astype(jnp.bfloat16), c1_t=c1_t,
                tmat3=tmat3.astype(jnp.bfloat16), b2_t=b2_t,
                Cmid=Cmid, Cout=Cout)


# ----------------------------- layer wrapper -------------------------------


def _batch_block_size(N):
    """Batch elements processed per grid step.

    Single-TensorCore chips (v5e, v6e): fold the whole batch into one step
    (bigger matmul M, fewer grid-step overheads).  Multi-core chips (v7x, and
    megacore v4/v5p): one element per step so the 'parallel' axis can be
    sharded across TensorCores.  Perf-only heuristic; correctness is identical.
    """
    try:
        kind = jax.devices()[0].device_kind.lower()
    except Exception:
        return 1
    if any(t in kind for t in ("v5e", "v5 lite", "v6e", "v6 lite")):
        return N
    return 1


def dense_layer_pallas(x_ndhwc, p, batch_block=None):
    """One _DenseLayer3D forward; returns the `new_features` tensor (NDHWC)."""
    N, D, H, W, Cin = x_ndhwc.shape
    kp = _prepare_layer_kernel_params(p, W)
    Cmid, Cout = kp["Cmid"], kp["Cout"]
    B = _batch_block_size(N) if batch_block is None else batch_block
    assert N % B == 0

    x_fold = x_ndhwc.reshape(N, D * H, W * Cin)   # lane-dense folded layout

    # Per-step VMEM footprint is ~3 MiB at these shapes (double-buffered tmat3
    # dominates), well under every generation's scoped default -> no explicit
    # vmem_limit_bytes needed here.
    out_fold = pl.pallas_call(
        _dense_layer_kernel,
        out_shape=jax.ShapeDtypeStruct((N, D * H, W * Cout), jnp.float32),
        grid=(N // B,),
        in_specs=[
            pl.BlockSpec((B, D * H, W * Cin), lambda n: (n, 0, 0)),
            pl.BlockSpec((1, W * Cin), lambda n: (0, 0)),
            pl.BlockSpec((1, W * Cin), lambda n: (0, 0)),
            pl.BlockSpec((W * Cin, W * Cmid), lambda n: (0, 0)),
            pl.BlockSpec((1, W * Cmid), lambda n: (0, 0)),
            pl.BlockSpec((3, W * Cmid, 3 * W * Cout), lambda n: (0, 0, 0)),
            pl.BlockSpec((1, W * Cout), lambda n: (0, 0)),
        ],
        out_specs=pl.BlockSpec((B, D * H, W * Cout), lambda n: (n, 0, 0)),
        scratch_shapes=[pltpu.VMEM((B * (D + 2), H + 2, W * Cmid), jnp.bfloat16)],
        compiler_params=pltpu.CompilerParams(dimension_semantics=("parallel",)),
    )(x_fold, kp["s1_t"], kp["t1_t"], kp["w1_blk"], kp["c1_t"], kp["tmat3"],
      kp["b2_t"])

    return out_fold.reshape(N, D, H, W, Cout)


def dense_3d_block_pallas(x_ncdhw, params_list, up_sample=False):
    """Dense_3DBlock.forward. Input/output in PyTorch NCDHW layout."""
    x = jnp.transpose(x_ncdhw, (0, 2, 3, 4, 1))  # NCDHW -> NDHWC
    outs = []
    for p in params_list:
        new = dense_layer_pallas(x, p)
        outs.append(new)
        x = jnp.concatenate([x, new], axis=-1)   # dense connectivity
    y = jnp.concatenate(outs, axis=-1) if up_sample else x
    return jnp.transpose(y, (0, 4, 1, 2, 3))     # NDHWC -> NCDHW


# ----------------------- deterministic parameter init ----------------------


def make_dense_layer_params(key, Cin, Cmid, Cout):
    ks = jax.random.split(key, 12)
    eps = 1e-5

    def bn_fold(kg, kb, km, kv, C):
        gamma = 1.0 + 0.2 * jax.random.normal(kg, (C,), jnp.float32)
        beta = 0.1 * jax.random.normal(kb, (C,), jnp.float32)
        mean = 0.1 * jax.random.normal(km, (C,), jnp.float32)
        var = 1.0 + 0.5 * jax.random.uniform(kv, (C,), jnp.float32)
        scale = gamma / jnp.sqrt(var + eps)
        shift = beta - mean * scale
        return scale.reshape(1, C), shift.reshape(1, C)

    s1, t1 = bn_fold(ks[0], ks[1], ks[2], ks[3], Cin)
    w1 = 0.1 * jax.random.normal(ks[4], (Cin, Cmid), jnp.float32)       # (Cin, Cmid)
    b1 = 0.05 * jax.random.normal(ks[5], (1, Cmid), jnp.float32)
    s2, t2 = bn_fold(ks[6], ks[7], ks[8], ks[9], Cmid)
    w2_dhwio = 0.1 * jax.random.normal(ks[10], (3, 3, 3, Cmid, Cout), jnp.float32)
    b2 = 0.05 * jax.random.normal(ks[11], (1, Cout), jnp.float32)
    return dict(s1=s1, t1=t1, w1=w1, b1=b1, s2=s2, t2=t2,
                w2_dhwio=w2_dhwio, b2=b2)


# ------------------------------ pure-JAX reference -------------------------


def dense_3d_block_ref(x_ncdhw, params_list, up_sample=False):
    x = jnp.transpose(x_ncdhw, (0, 2, 3, 4, 1))
    outs = []
    for p in params_list:
        a = jnp.maximum(x * p["s1"][0] + p["t1"][0], 0.0)
        h = jnp.einsum("ndhwc,co->ndhwo", a, p["w1"],
                       precision=lax.Precision.HIGHEST) + p["b1"][0]
        h = jnp.maximum(h * p["s2"][0] + p["t2"][0], 0.0)
        new = lax.conv_general_dilated(
            h, p["w2_dhwio"], window_strides=(1, 1, 1),
            padding=((1, 1), (1, 1), (1, 1)),
            dimension_numbers=("NDHWC", "DHWIO", "NDHWC"),
            precision=lax.Precision.HIGHEST) + p["b2"][0]
        outs.append(new)
        x = jnp.concatenate([x, new], axis=-1)
    y = jnp.concatenate(outs, axis=-1) if up_sample else x
    return jnp.transpose(y, (0, 4, 1, 2, 3))


# ---------------------------------- main ------------------------------------


if __name__ == "__main__":
    # Dense_3DBlock(num_layers=2, num_input_features=8) with defaults:
    #   bn_size=4, growth_rate=16, up_sample=False
    num_layers = 2
    num_input_features = 8
    growth_rate = 16
    bn_size = 4
    N, D, H, W = 2, 8, 8, 8

    key = jax.random.PRNGKey(0)
    kx, kp = jax.random.split(key)
    # PyTorch-style NCDHW input
    x = jax.random.normal(kx, (N, num_input_features, D, H, W), jnp.float32)

    params_list = []
    for i in range(num_layers):
        Cin = num_input_features + i * growth_rate
        params_list.append(
            make_dense_layer_params(jax.random.fold_in(kp, i),
                                    Cin, bn_size * growth_rate, growth_rate))

    out = jax.block_until_ready(dense_3d_block_pallas(x, params_list, up_sample=False))
    expected_channels = num_input_features + num_layers * growth_rate
    assert out.shape == (N, expected_channels, D, H, W), out.shape

    ref = jax.block_until_ready(dense_3d_block_ref(x, params_list, up_sample=False))
    max_err = float(jnp.max(jnp.abs(out - ref)))
    mean_err = float(jnp.mean(jnp.abs(out - ref)))
    # The kernel runs its matmuls with bf16 operands (fp32 accumulation) while
    # the reference uses fp32 Precision.HIGHEST, so use a bf16-appropriate
    # tolerance plus a tight mean-error check.
    assert jnp.allclose(out, ref, atol=5e-2, rtol=5e-2), (max_err, mean_err)
    assert mean_err < 1e-2, (max_err, mean_err)

    print("KERNEL_OK")
</pallas_src>

<mosaic_0001>
module attributes {stable_mosaic.version = 11 : i64} {
  func.func @_dense_layer_kernel(%arg0: i32, %arg1: memref<1x64x64xf32, #tpu.memory_space<vmem>>, %arg2: memref<1x64xf32, #tpu.memory_space<vmem>>, %arg3: memref<1x64xf32, #tpu.memory_space<vmem>>, %arg4: memref<64x512xbf16, #tpu.memory_space<vmem>>, %arg5: memref<1x512xf32, #tpu.memory_space<vmem>>, %arg6: memref<3x512x384xbf16, #tpu.memory_space<vmem>>, %arg7: memref<1x128xf32, #tpu.memory_space<vmem>>, %arg8: memref<1x64x128xf32, #tpu.memory_space<vmem>>, %arg9: memref<10x10x512xbf16, #tpu.memory_space<vmem>>) attributes {dimension_semantics = [#tpu.dimension_semantics<parallel>], iteration_bounds = array<i64: 2>, scalar_prefetch = 0 : i64, scratch_operands = 1 : i64, tpu.core_type = #tpu.core_type<tc>, window_params = [{transform_indices = @transform_0, window_bounds = array<i64: 1, 64, 64>}, {pipeline_mode = #tpu.pipeline_mode<synchronous>, transform_indices = @transform_1, window_bounds = array<i64: 1, 64>}, {pipeline_mode = #tpu.pipeline_mode<synchronous>, transform_indices = @transform_2, window_bounds = array<i64: 1, 64>}, {pipeline_mode = #tpu.pipeline_mode<synchronous>, transform_indices = @transform_3, window_bounds = array<i64: 64, 512>}, {pipeline_mode = #tpu.pipeline_mode<synchronous>, transform_indices = @transform_4, window_bounds = array<i64: 1, 512>}, {pipeline_mode = #tpu.pipeline_mode<synchronous>, transform_indices = @transform_5, window_bounds = array<i64: 3, 512, 384>}, {pipeline_mode = #tpu.pipeline_mode<synchronous>, transform_indices = @transform_6, window_bounds = array<i64: 1, 128>}, {transform_indices = @transform_7, window_bounds = array<i64: 1, 64, 128>}]} {
    %c0 = arith.constant 0 : index
    %c0_0 = arith.constant 0 : index
    %c0_1 = arith.constant 0 : index
    %0 = vector.load %arg1[%c0, %c0_0, %c0_1] : memref<1x64x64xf32, #tpu.memory_space<vmem>>, vector<1x64x64xf32>
    %1 = vector.shape_cast %0 : vector<1x64x64xf32> to vector<64x64xf32>
    %c0_2 = arith.constant 0 : index
    %c0_3 = arith.constant 0 : index
    %2 = vector.load %arg2[%c0_2, %c0_3] : memref<1x64xf32, #tpu.memory_space<vmem>>, vector<1x64xf32>
    %3 = vector.broadcast %2 : vector<1x64xf32> to vector<64x64xf32>
    %4 = arith.mulf %1, %3 : vector<64x64xf32>
    %c0_4 = arith.constant 0 : index
    %c0_5 = arith.constant 0 : index
    %5 = vector.load %arg3[%c0_4, %c0_5] : memref<1x64xf32, #tpu.memory_space<vmem>>, vector<1x64xf32>
    %6 = vector.broadcast %5 : vector<1x64xf32> to vector<64x64xf32>
    %7 = arith.addf %4, %6 : vector<64x64xf32>
    %cst = arith.constant 0.000000e+00 : f32
    %8 = vector.broadcast %cst : f32 to vector<64x64xf32>
    %9 = arith.maximumf %7, %8 : vector<64x64xf32>
    %10 = arith.truncf %9 : vector<64x64xf32> to vector<64x64xbf16>
    %c0_6 = arith.constant 0 : index
    %c0_7 = arith.constant 0 : index
    %11 = vector.load %arg4[%c0_6, %c0_7] : memref<64x512xbf16, #tpu.memory_space<vmem>>, vector<64x512xbf16>
    %cst_8 = arith.constant dense<0.000000e+00> : vector<64x512xf32>
    %12 = tpu.matmul %10, %11, %cst_8 {dimension_numbers = #tpu.dot_dimension_numbers<[1], [0], [0], [1], [0, 0, 1, 1], [], []>} : vector<64x64xbf16>, vector<64x512xbf16>, vector<64x512xf32> -> vector<64x512xf32>
    %c0_9 = arith.constant 0 : index
    %c0_10 = arith.constant 0 : index
    %13 = vector.load %arg5[%c0_9, %c0_10] : memref<1x512xf32, #tpu.memory_space<vmem>>, vector<1x512xf32>
    %14 = vector.broadcast %13 : vector<1x512xf32> to vector<64x512xf32>
    %15 = arith.addf %12, %14 : vector<64x512xf32>
    %cst_11 = arith.constant 0.000000e+00 : f32
    %16 = vector.broadcast %cst_11 : f32 to vector<64x512xf32>
    %17 = arith.maximumf %15, %16 : vector<64x512xf32>
    %18 = arith.truncf %17 : vector<64x512xf32> to vector<64x512xbf16>
    %19 = vector.shape_cast %18 : vector<64x512xbf16> to vector<1x8x8x512xbf16>
    %cst_12 = arith.constant 0.000000e+00 : bf16
    %20 = vector.broadcast %cst_12 : bf16 to vector<1x10x512xbf16>
    %c0_13 = arith.constant 0 : index
    %c0_14 = arith.constant 0 : index
    %c0_15 = arith.constant 0 : index
    %21 = vector.load %arg9[%c0_13, %c0_14, %c0_15] : memref<10x10x512xbf16, #tpu.memory_space<vmem>>, vector<1x10x512xbf16>
    tpu.vector_store %arg9[%c0_13, %c0_14, %c0_15], %20 {strides = array<i32>} : memref<10x10x512xbf16, #tpu.memory_space<vmem>>, vector<1x10x512xbf16>,
    %cst_16 = arith.constant 0.000000e+00 : bf16
    %22 = vector.broadcast %cst_16 : bf16 to vector<1x10x512xbf16>
    %c9 = arith.constant 9 : index
    %c0_17 = arith.constant 0 : index
    %c0_18 = arith.constant 0 : index
    %23 = vector.load %arg9[%c9, %c0_17, %c0_18] : memref<10x10x512xbf16, #tpu.memory_space<vmem>>, vector<1x10x512xbf16>
    tpu.vector_store %arg9[%c9, %c0_17, %c0_18], %22 {strides = array<i32>} : memref<10x10x512xbf16, #tpu.memory_space<vmem>>, vector<1x10x512xbf16>,
    %cst_19 = arith.constant 0.000000e+00 : bf16
    %24 = vector.broadcast %cst_19 : bf16 to vector<8x1x512xbf16>
    %c1 = arith.constant 1 : index
    %c0_20 = arith.constant 0 : index
    %c0_21 = arith.constant 0 : index
    %25 = vector.load %arg9[%c1, %c0_20, %c0_21] : memref<10x10x512xbf16, #tpu.memory_space<vmem>>, vector<8x1x512xbf16>
    tpu.vector_store %arg9[%c1, %c0_20, %c0_21], %24 {strides = array<i32>} : memref<10x10x512xbf16, #tpu.memory_space<vmem>>, vector<8x1x512xbf16>,
    %cst_22 = arith.constant 0.000000e+00 : bf16
    %26 = vector.broadcast %cst_22 : bf16 to vector<8x1x512xbf16>
    %c1_23 = arith.constant 1 : index
    %c9_24 = arith.constant 9 : index
    %c0_25 = arith.constant 0 : index
    %27 = vector.load %arg9[%c1_23, %c9_24, %c0_25] : memref<10x10x512xbf16, #tpu.memory_space<vmem>>, vector<8x1x512xbf16>
    tpu.vector_store %arg9[%c1_23, %c9_24, %c0_25], %26 {strides = array<i32>} : memref<10x10x512xbf16, #tpu.memory_space<vmem>>, vector<8x1x512xbf16>,
    %28 = vector.shape_cast %19 : vector<1x8x8x512xbf16> to vector<8x8x512xbf16>
    %c1_26 = arith.constant 1 : index
    %c1_27 = arith.constant 1 : index
    %c0_28 = arith.constant 0 : index
    %29 = vector.load %arg9[%c1_26, %c1_27, %c0_28] : memref<10x10x512xbf16, #tpu.memory_space<vmem>>, vector<8x8x512xbf16>
    tpu.vector_store %arg9[%c1_26, %c1_27, %c0_28], %28 {strides = array<i32>} : memref<10x10x512xbf16, #tpu.memory_space<vmem>>, vector<8x8x512xbf16>,
    %c0_29 = arith.constant 0 : index
    %c0_30 = arith.constant 0 : index
    %30 = vector.load %arg7[%c0_29, %c0_30] : memref<1x128xf32, #tpu.memory_space<vmem>>, vector<1x128xf32>
    %31 = vector.shape_cast %30 : vector<1x128xf32> to vector<1x128xf32>
    %32 = vector.broadcast %31 : vector<1x128xf32> to vector<64x128xf32>
    %c0_31 = arith.constant 0 : index
    %c0_32 = arith.constant 0 : index
    %c0_33 = arith.constant 0 : index
    %33 = vector.load %arg9[%c0_31, %c0_32, %c0_33] : memref<10x10x512xbf16, #tpu.memory_space<vmem>>, vector<10x8x512xbf16>
    %34 = vector.shape_cast %33 : vector<10x8x512xbf16> to vector<80x512xbf16>
    %c0_34 = arith.constant 0 : index
    %c0_35 = arith.constant 0 : index
    %c0_36 = arith.constant 0 : index
    %35 = vector.load %arg6[%c0_34, %c0_35, %c0_36] : memref<3x512x384xbf16, #tpu.memory_space<vmem>>, vector<1x512x384xbf16>
    %36 = vector.shape_cast %35 : vector<1x512x384xbf16> to vector<512x384xbf16>
    %cst_37 = arith.constant dense<0.000000e+00> : vector<80x384xf32>
    %37 = tpu.matmul %34, %36, %cst_37 {dimension_numbers = #tpu.dot_dimension_numbers<[1], [0], [0], [1], [0, 0, 1, 1], [], []>} : vector<80x512xbf16>, vector<512x384xbf16>, vector<80x384xf32> -> vector<80x384xf32>
    %38 = vector.shape_cast %37 : vector<80x384xf32> to vector<10x8x384xf32>
    %39 = vector.extract_strided_slice %38 {offsets = [0, 0, 0], sizes = [8, 8, 128], strides = [1, 1, 1]} : vector<10x8x384xf32> to vector<8x8x128xf32>
    %40 = vector.shape_cast %39 : vector<8x8x128xf32> to vector<64x128xf32>
    %41 = arith.addf %32, %40 : vector<64x128xf32>
    %42 = vector.extract_strided_slice %38 {offsets = [1, 0, 128], sizes = [8, 8, 128], strides = [1, 1, 1]} : vector<10x8x384xf32> to vector<8x8x128xf32>
    %43 = vector.shape_cast %42 : vector<8x8x128xf32> to vector<64x128xf32>
    %44 = arith.addf %41, %43 : vector<64x128xf32>
    %45 = vector.extract_strided_slice %38 {offsets = [2, 0, 256], sizes = [8, 8, 128], strides = [1, 1, 1]} : vector<10x8x384xf32> to vector<8x8x128xf32>
    %46 = vector.shape_cast %45 : vector<8x8x128xf32> to vector<64x128xf32>
    %47 = arith.addf %44, %46 : vector<64x128xf32>
    %c0_38 = arith.constant 0 : index
    %c1_39 = arith.constant 1 : index
    %c0_40 = arith.constant 0 : index
    %48 = vector.load %arg9[%c0_38, %c1_39, %c0_40] : memref<10x10x512xbf16, #tpu.memory_space<vmem>>, vector<10x8x512xbf16>
    %49 = vector.shape_cast %48 : vector<10x8x512xbf16> to vector<80x512xbf16>
    %c1_41 = arith.constant 1 : index
    %c0_42 = arith.constant 0 : index
    %c0_43 = arith.constant 0 : index
    %50 = vector.load %arg6[%c1_41, %c0_42, %c0_43] : memref<3x512x384xbf16, #tpu.memory_space<vmem>>, vector<1x512x384xbf16>
    %51 = vector.shape_cast %50 : vector<1x512x384xbf16> to vector<512x384xbf16>
    %cst_44 = arith.constant dense<0.000000e+00> : vector<80x384xf32>
    %52 = tpu.matmul %49, %51, %cst_44 {dimension_numbers = #tpu.dot_dimension_numbers<[1], [0], [0], [1], [0, 0, 1, 1], [], []>} : vector<80x512xbf16>, vector<512x384xbf16>, vector<80x384xf32> -> vector<80x384xf32>
    %53 = vector.shape_cast %52 : vector<80x384xf32> to vector<10x8x384xf32>
    %54 = vector.extract_strided_slice %53 {offsets = [0, 0, 0], sizes = [8, 8, 128], strides = [1, 1, 1]} : vector<10x8x384xf32> to vector<8x8x128xf32>
    %55 = vector.shape_cast %54 : vector<8x8x128xf32> to vector<64x128xf32>
    %56 = arith.addf %47, %55 : vector<64x128xf32>
    %57 = vector.extract_strided_slice %53 {offsets = [1, 0, 128], sizes = [8, 8, 128], strides = [1, 1, 1]} : vector<10x8x384xf32> to vector<8x8x128xf32>
    %58 = vector.shape_cast %57 : vector<8x8x128xf32> to vector<64x128xf32>
    %59 = arith.addf %56, %58 : vector<64x128xf32>
    %60 = vector.extract_strided_slice %53 {offsets = [2, 0, 256], sizes = [8, 8, 128], strides = [1, 1, 1]} : vector<10x8x384xf32> to vector<8x8x128xf32>
    %61 = vector.shape_cast %60 : vector<8x8x128xf32> to vector<64x128xf32>
    %62 = arith.addf %59, %61 : vector<64x128xf32>
    %c0_45 = arith.constant 0 : index
    %c2 = arith.constant 2 : index
    %c0_46 = arith.constant 0 : index
    %63 = vector.load %arg9[%c0_45, %c2, %c0_46] : memref<10x10x512xbf16, #tpu.memory_space<vmem>>, vector<10x8x512xbf16>
    %64 = vector.shape_cast %63 : vector<10x8x512xbf16> to vector<80x512xbf16>
    %c2_47 = arith.constant 2 : index
    %c0_48 = arith.constant 0 : index
    %c0_49 = arith.constant 0 : index
    %65 = vector.load %arg6[%c2_47, %c0_48, %c0_49] : memref<3x512x384xbf16, #tpu.memory_space<vmem>>, vector<1x512x384xbf16>
    %66 = vector.shape_cast %65 : vector<1x512x384xbf16> to vector<512x384xbf16>
    %cst_50 = arith.constant dense<0.000000e+00> : vector<80x384xf32>
    %67 = tpu.matmul %64, %66, %cst_50 {dimension_numbers = #tpu.dot_dimension_numbers<[1], [0], [0], [1], [0, 0, 1, 1], [], []>} : vector<80x512xbf16>, vector<512x384xbf16>, vector<80x384xf32> -> vector<80x384xf32>
    %68 = vector.shape_cast %67 : vector<80x384xf32> to vector<10x8x384xf32>
    %69 = vector.extract_strided_slice %68 {offsets = [0, 0, 0], sizes = [8, 8, 128], strides = [1, 1, 1]} : vector<10x8x384xf32> to vector<8x8x128xf32>
    %70 = vector.shape_cast %69 : vector<8x8x128xf32> to vector<64x128xf32>
    %71 = arith.addf %62, %70 : vector<64x128xf32>
    %72 = vector.extract_strided_slice %68 {offsets = [1, 0, 128], sizes = [8, 8, 128], strides = [1, 1, 1]} : vector<10x8x384xf32> to vector<8x8x128xf32>
    %73 = vector.shape_cast %72 : vector<8x8x128xf32> to vector<64x128xf32>
    %74 = arith.addf %71, %73 : vector<64x128xf32>
    %75 = vector.extract_strided_slice %68 {offsets = [2, 0, 256], sizes = [8, 8, 128], strides = [1, 1, 1]} : vector<10x8x384xf32> to vector<8x8x128xf32>
    %76 = vector.shape_cast %75 : vector<8x8x128xf32> to vector<64x128xf32>
    %77 = arith.addf %74, %76 : vector<64x128xf32>
    %78 = vector.shape_cast %77 : vector<64x128xf32> to vector<1x64x128xf32>
    %c0_51 = arith.constant 0 : index
    %c0_52 = arith.constant 0 : index
    %c0_53 = arith.constant 0 : index
    %79 = vector.load %arg8[%c0_51, %c0_52, %c0_53] : memref<1x64x128xf32, #tpu.memory_space<vmem>>, vector<1x64x128xf32>
    tpu.vector_store %arg8[%c0_51, %c0_52, %c0_53], %78 {strides = array<i32>} : memref<1x64x128xf32, #tpu.memory_space<vmem>>, vector<1x64x128xf32>,
    return
  }
  func.func @transform_0(%arg0: i32) -> (i32, i32, i32) {
    %c0_i32 = arith.constant 0 : i32
    %c0_i32_0 = arith.constant 0 : i32
    %c0_i32_1 = arith.constant 0 : i32
    return %arg0, %c0_i32, %c0_i32_0 : i32, i32, i32
  }
  func.func @transform_1(%arg0: i32) -> (i32, i32) {
    %c0_i32 = arith.constant 0 : i32
    %c0_i32_0 = arith.constant 0 : i32
    %c0_i32_1 = arith.constant 0 : i32
    return %c0_i32, %c0_i32_0 : i32, i32
  }
  func.func @transform_2(%arg0: i32) -> (i32, i32) {
    %c0_i32 = arith.constant 0 : i32
    %c0_i32_0 = arith.constant 0 : i32
    %c0_i32_1 = arith.constant 0 : i32
    return %c0_i32, %c0_i32_0 : i32, i32
  }
  func.func @transform_3(%arg0: i32) -> (i32, i32) {
    %c0_i32 = arith.constant 0 : i32
    %c0_i32_0 = arith.constant 0 : i32
    %c0_i32_1 = arith.constant 0 : i32
    return %c0_i32, %c0_i32_0 : i32, i32
  }
  func.func @transform_4(%arg0: i32) -> (i32, i32) {
    %c0_i32 = arith.constant 0 : i32
    %c0_i32_0 = arith.constant 0 : i32
    %c0_i32_1 = arith.constant 0 : i32
    return %c0_i32, %c0_i32_0 : i32, i32
  }
  func.func @transform_5(%arg0: i32) -> (i32, i32, i32) {
    %c0_i32 = arith.constant 0 : i32
    %c0_i32_0 = arith.constant 0 : i32
    %c0_i32_1 = arith.constant 0 : i32
    %c0_i32_2 = arith.constant 0 : i32
    return %c0_i32, %c0_i32_0, %c0_i32_1 : i32, i32, i32
  }
  func.func @transform_6(%arg0: i32) -> (i32, i32) {
    %c0_i32 = arith.constant 0 : i32
    %c0_i32_0 = arith.constant 0 : i32
    %c0_i32_1 = arith.constant 0 : i32
    return %c0_i32, %c0_i32_0 : i32, i32
  }
  func.func @transform_7(%arg0: i32) -> (i32, i32, i32) {
    %c0_i32 = arith.constant 0 : i32
    %c0_i32_0 = arith.constant 0 : i32
    %c0_i32_1 = arith.constant 0 : i32
    return %arg0, %c0_i32, %c0_i32_0 : i32, i32, i32
  }
}

</mosaic_0001>

<bundles_post_ra>
// kernel: tpu_custom_call.1
= control target key start
LH: loop header
LB: loop body
LE: loop exit
PB: predicated region body
PF: predicated region fallthrough
CT: control target
= control target key end

     0   :  { %s7698_s0 = inlined_call_operand.hbm [shape: f32[2,64,64], index: 0, kind: input, shape index: {}]   ;;  %s7699_s1 = inlined_call_operand.hbm [shape: f32[1,64], index: 1, kind: input, shape index: {}]   ;;  %s7700_s2 = inlined_call_operand.hbm [shape: f32[1,64], index: 2, kind: input, shape index: {}]   ;;  %s7701_s3 = inlined_call_operand.hbm [shape: bf16[64,512], index: 3, kind: input, shape index: {}]   ;;  %s7702_s4 = inlined_call_operand.hbm [shape: f32[1,512], index: 4, kind: input, shape index: {}]   ;;  %s7703_s5 = inlined_call_operand.hbm [shape: bf16[3,512,384], index: 5, kind: input, shape index: {}]   ;;  %s7704_s6 = inlined_call_operand.hbm [shape: f32[1,128], index: 6, kind: input, shape index: {}]   ;;  %s7705_s7 = inlined_call_operand.hbm [shape: f32[2,64,128], index: 7, kind: output, shape index: {}]  }
   0x1   :  { %7709 = sst [smem:[#allocation21_spill]] %s7699_s1 }
   0x2   :  { %12 = vsyncpa [#allocation4], 0 }
   0x3   :  { %14 = vsyncpa [#allocation4 + $0x1], 0 }
   0x4   :  { %15 = vsyncpa [#allocation7], 0 }
   0x5   :  { %16 = vsyncpa [#allocation10], 0 }
   0x6   :  { %17 = vsyncpa [#allocation13], 0 }
   0x7   :  { %18 = vsyncpa [#allocation5], 0 }
   0x8   :  { %20 = vsyncpa [#allocation5 + $0x1], 0  ;;  %s6636_s24 = smov 0   ;;  %s6638_s25 = smov 0  }
   0x9   :  { %s6640_s26 = smov 0   ;;  %s6642_s27 = smov 0  }
   0xa LB: > { %s6579_s28 = smov [#allocation6]   ;;  %s6657_s30 = sadd.s32 4294967295, %s6577_s27   ;;  %s6577_s27 = sphi %s6642_s27, %s7743_s27   ;;  %s6573_s26 = sphi %s6640_s26, %s7742_s26   ;;  %s6569_s25 = sphi %s6638_s25, %s7741_s25   ;;  %s6565_s24 = sphi %s6636_s24, %s7740_s24  }
   0xb   : > { %s222_s29 = sshll.u32 %s6579_s28, 4  ;;  %p4995_p0 = scmp.ge.s32.totalorder %s6577_s27, 1  ;;  %s6662_s29 = int_to_ptr.vmem [resolvable:$true] %s222_s29 }
   0xc   : > { %p7706_p1 = scmp.eq.s32.totalorder %s6657_s30, 0  ;;  %p209_p2 = scmp.lt.s32.totalorder %s6577_s27, 3 }
   0xd   : > { %s6580_s9 = smov [#allocation9]   ;;  %s6581_s12 = smov [#allocation12]  }
   0xe   : > { %p6664_p3 = pnand %p4995_p0, %p209_p2  ;;  %s243_s10 = sshll.u32 %s6580_s9, 4  ;;  %s6671_s10 = int_to_ptr.vmem [resolvable:$true] %s243_s10 }
   0xf   : > { %s267_s13 = sshll.u32 %s6581_s12, 4  ;;  %s7712_s1 = sld [smem:[#allocation21_spill]]  ;;  %s6679_s13 = int_to_ptr.vmem [resolvable:$true] %s267_s13 }
  0x10   : > { %s7710_s8 = scalar_select %p6664_p3, 1, 0 }
  0x11   : > { %p5801_p5 = pneg %p6664_p3 }
  0x13   : > { %p6675_p6 = pnand %p5801_p5, %p7706_p1 }
  0x15   : > { %s6301_s16 = scalar_lea.hbm %s7712_s1, 16  ;;  %p6689_p8 = pneg %p6675_p6 }
  0x16   : > { %p6302_p7 = scmp.ne.s32.totalorder %s7712_s1, %s6301_s16  ;;  %p6308_p11 = scmp.lt.u32.totalorder %s6301_s16, %s7712_s1 }
  0x18   : > { %p6304_p9 = pnand %p6689_p8, %p6302_p7 }
  0x1a   : > { %p6305_p10 = pneg %p6304_p9 }
  0x1c   : > { %p6310_p12 = pnand %p6308_p11, %p6305_p10 }
  0x1e   : > { %6313 = shalt.err (!%p6310_p12)
}
  0x1f   : > { %s6314_s22 = scalar_lea.vmem %s6662_s29, 16  ;;  %s6321_s23 = scalar_lea.vmem %s6662_s29, 32 }
  0x20   : > { %p6315_p13 = scmp.ne.s32.totalorder %s6662_s29, %s6314_s22  ;;  %p6322_p5 = scmp.lt.s32.totalorder %s6662_s29, %s6662_s29 }
  0x21   : > { %p6323_p7 = scmp.lt.s32.totalorder %s6321_s23, %s6314_s22 }
  0x22   : > { %p6317_p0 = pnand %p6315_p13, %p6689_p8 }
  0x23   : > { %p6324_p9 = por %p6323_p7, %p6322_p5 }
  0x24   : > { %p6318_p2 = pneg %p6317_p0 }
  0x26   : > { %p6325_p4 = pnand %p6324_p9, %p6318_p2 }
  0x28   : > { %6328 = shalt.err (!%p6325_p4)
}
  0x29   : > { %5804 = dma.hbm_to_vmem [thread:$0]  (!%p6675_p6), %s7712_s1, 16, %s6662_s29, [#allocation7]  }
  0x2a   : > { %s6329_s15 = scalar_lea.hbm %s7701_s3, 2048 }
  0x2b   : > { %p6330_p10 = scmp.ne.s32.totalorder %s7701_s3, %s6329_s15  ;;  %p6336_p4 = scmp.lt.u32.totalorder %s6329_s15, %s7701_s3 }
  0x2d   : > { %p6332_p11 = pnand %p6330_p10, %p6689_p8 }
  0x2f   : > { %p6333_p12 = pneg %p6332_p11 }
  0x31   : > { %p6338_p13 = pnand %p6336_p4, %p6333_p12 }
  0x33   : > { %6341 = shalt.err (!%p6338_p13)
}
  0x34   : > { %s6342_s29 = scalar_lea.vmem %s6671_s10, 2048  ;;  %p6350_p7 = scmp.lt.s32.totalorder %s6671_s10, %s6671_s10 }
  0x35   : > { %p6343_p0 = scmp.ne.s32.totalorder %s6671_s10, %s6342_s29  ;;  %p6351_p9 = scmp.lt.s32.totalorder %s6342_s29, %s6342_s29 }
  0x37   : > { %p6345_p2 = pnand %p6343_p0, %p6689_p8  ;;  %p6352_p10 = por %p6351_p9, %p6350_p7 }
  0x39   : > { %p6346_p5 = pneg %p6345_p2 }
  0x3b   : > { %p6353_p11 = pnand %p6352_p10, %p6346_p5 }
  0x3d   : > { %6356 = shalt.err (!%p6353_p11)
}
  0x3e   : > { %s6582_s21 = smov 256   ;;  %s6583_s22 = smov 16  }
  0x3f   : > { %5810 = dma.hbm_to_vmem [thread:$0]  (!%p6675_p6), %s7701_s3, 2048, %s6671_s10, [#allocation10], %s6582_s21, %s6582_s21, %s6583_s22  }
  0x40   : > { %s6357_s14 = scalar_lea.hbm %s7703_s5, 36864 }
  0x41   : > { %p6358_p12 = scmp.ne.s32.totalorder %s7703_s5, %s6357_s14  ;;  %p6364_p0 = scmp.lt.u32.totalorder %s6357_s14, %s7703_s5 }
  0x43   : > { %p6360_p4 = pnand %p6358_p12, %p6689_p8 }
  0x45   : > { %p6361_p13 = pneg %p6360_p4 }
  0x47   : > { %p6366_p2 = pnand %p6364_p0, %p6361_p13 }
  0x49   : > { %6369 = shalt.err (!%p6366_p2)
}
  0x4a   : > { %s6370_s10 = scalar_lea.vmem %s6679_s13, 36864  ;;  %p6378_p10 = scmp.lt.s32.totalorder %s6679_s13, %s6679_s13 }
  0x4b   : > { %p6371_p5 = scmp.ne.s32.totalorder %s6679_s13, %s6370_s10  ;;  %p6379_p11 = scmp.lt.s32.totalorder %s6370_s10, %s6370_s10 }
  0x4d   : > { %p6373_p7 = pnand %p6371_p5, %p6689_p8  ;;  %p6380_p12 = por %p6379_p11, %p6378_p10 }
  0x4f   : > { %p6374_p9 = pneg %p6373_p7 }
  0x51   : > { %p6381_p4 = pnand %p6380_p12, %p6374_p9 }
  0x53   : > { %6384 = shalt.err (!%p6381_p4)
}
  0x54   : > { %s6584_s20 = smov 192   ;;  %s6585_s29 = smov 12  }
  0x55   : > { %5816 = dma.hbm_to_vmem [thread:$0]  (!%p6675_p6), %s7703_s5, 36864, %s6679_s13, [#allocation13], %s6584_s20, %s6584_s20, %s6585_s29  }
  0x56   : > { %s6586_s23 = smov [#allocation8]   ;;  %s6587_s9 = smov [#allocation11]  }
  0x57   : > { %s233_s28 = sshll.u32 %s6586_s23, 4  ;;  %s257_s12 = sshll.u32 %s6587_s9, 4  ;;  %s234_s28 = int_to_ptr.vmem [resolvable:$true] %s233_s28  ;;  %s258_s12 = int_to_ptr.vmem [resolvable:$true] %s257_s12 }
  0x58   : > { %s6385_s16 = scalar_lea.hbm %s7700_s2, 16 }
  0x59   : > { %p6386_p13 = scmp.ne.s32.totalorder %s7700_s2, %s6385_s16  ;;  %p6392_p5 = scmp.lt.u32.totalorder %s6385_s16, %s7700_s2 }
  0x5b   : > { %p6388_p0 = pnand %p6386_p13, %p6689_p8 }
  0x5d   : > { %p6389_p2 = pneg %p6388_p0 }
  0x5f   : > { %p6394_p7 = pnand %p6392_p5, %p6389_p2 }
  0x61   : > { %6397 = shalt.err (!%p6394_p7)
}
  0x62   : > { %s6398_s13 = scalar_lea.vmem %s234_s28, 16  ;;  %s6405_s20 = scalar_lea.vmem %s234_s28, 32 }
  0x63   : > { %p6399_p9 = scmp.ne.s32.totalorder %s234_s28, %s6398_s13  ;;  %p6406_p12 = scmp.lt.s32.totalorder %s234_s28, %s234_s28 }
  0x64   : > { %p6407_p4 = scmp.lt.s32.totalorder %s6405_s20, %s6398_s13 }
  0x65   : > { %p6401_p10 = pnand %p6399_p9, %p6689_p8 }
  0x66   : > { %p6408_p1 = por %p6407_p4, %p6406_p12 }
  0x67   : > { %p6402_p11 = pneg %p6401_p10 }
  0x69   : > { %p6409_p3 = pnand %p6408_p1, %p6402_p11 }
  0x6b   : > { %6412 = shalt.err (!%p6409_p3)
}
  0x6c   : > { %5807 = dma.hbm_to_vmem [thread:$0]  (!%p6675_p6), %s7700_s2, 16, %s234_s28, [#allocation7]  }
  0x6d   : > { %s6413_s23 = scalar_lea.hbm %s7702_s4, 64 }
  0x6e   : > { %p6414_p13 = scmp.ne.s32.totalorder %s7702_s4, %s6413_s23  ;;  %p6420_p3 = scmp.lt.u32.totalorder %s6413_s23, %s7702_s4 }
  0x70   : > { %p6416_p0 = pnand %p6414_p13, %p6689_p8 }
  0x72   : > { %p6417_p1 = pneg %p6416_p0 }
  0x74   : > { %p6422_p2 = pnand %p6420_p3, %p6417_p1 }
  0x76   : > { %6425 = shalt.err (!%p6422_p2)
}
  0x77   : > { %s6426_s17 = scalar_lea.vmem %s258_s12, 64  ;;  %p6434_p10 = scmp.lt.s32.totalorder %s258_s12, %s258_s12 }
  0x78   : > { %p6427_p5 = scmp.ne.s32.totalorder %s258_s12, %s6426_s17  ;;  %p6435_p11 = scmp.lt.s32.totalorder %s6426_s17, %s6426_s17 }
  0x7a   : > { %p6429_p7 = pnand %p6427_p5, %p6689_p8  ;;  %p6436_p12 = por %p6435_p11, %p6434_p10 }
  0x7c   : > { %p6430_p9 = pneg %p6429_p7 }
  0x7e   : > { %p6437_p4 = pnand %p6436_p12, %p6430_p9 }
  0x80   : > { %6440 = shalt.err (!%p6437_p4)
}
  0x81   : > { %5813 = dma.hbm_to_vmem [thread:$0]  (!%p6675_p6), %s7702_s4, 64, %s258_s12, [#allocation10]  }
  0x82   : > { %s6588_s10 = smov [#allocation14]   ;;  %s6441_s21 = scalar_lea.hbm %s7704_s6, 16 }
  0x83   : > { %s281_s13 = sshll.u32 %s6588_s10, 4  ;;  %p6442_p13 = scmp.ne.s32.totalorder %s7704_s6, %s6441_s21  ;;  %s282_s13 = int_to_ptr.vmem [resolvable:$true] %s281_s13 }
  0x84   : > { %p6448_p3 = scmp.lt.u32.totalorder %s6441_s21, %s7704_s6 }
  0x85   : > { %p6444_p0 = pnand %p6442_p13, %p6689_p8 }
  0x87   : > { %p6445_p1 = pneg %p6444_p0 }
  0x89   : > { %p6450_p2 = pnand %p6448_p3, %p6445_p1 }
  0x8b   : > { %6453 = shalt.err (!%p6450_p2)
}
  0x8c   : > { %s6454_s12 = scalar_lea.vmem %s282_s13, 16  ;;  %s6461_s14 = scalar_lea.vmem %s282_s13, 32 }
  0x8d   : > { %p6455_p5 = scmp.ne.s32.totalorder %s282_s13, %s6454_s12  ;;  %p6462_p10 = scmp.lt.s32.totalorder %s282_s13, %s282_s13 }
  0x8e   : > { %p6463_p11 = scmp.lt.s32.totalorder %s6461_s14, %s6454_s12 }
  0x8f   : > { %p6457_p7 = pnand %p6455_p5, %p6689_p8 }
  0x90   : > { %p6464_p12 = por %p6463_p11, %p6462_p10 }
  0x91   : > { %p6458_p9 = pneg %p6457_p7 }
  0x93   : > { %p6465_p4 = pnand %p6464_p12, %p6458_p9 }
  0x95   : > { %6468 = shalt.err (!%p6465_p4)
}
  0x96   : > { %5819 = dma.hbm_to_vmem [thread:$0]  (!%p6675_p6), %s7704_s6, 16, %s282_s13, [#allocation13]  }
  0x97   : > { %s4994_s19 = sadd.s32 4294967294, %s6577_s27   ;;  %s6813_s11 = sadd.s32 1, %s6577_s27  }
  0x98   : > { %s30_s17 = ssub.s32 %s6577_s27, %s6813_s11  ;;  %s33_s28 = sadd.s32 1, %s6573_s26 }
  0x99   : > { %p31_p8 = scmp.eq.s32.totalorder %s30_s17, 0  ;;  %p40_p13 = scmp.ne.s32.totalorder %s6573_s26, %s6569_s25 }
  0x9a   : > { %p41_p0 = scmp.eq.s32.totalorder %s6577_s27, 0  ;;  %p46_p1 = scmp.ne.s32.totalorder %s6569_s25, %s6565_s24 }
  0x9b   : > { %s6824_s18 = scalar_select %p31_p8, %s6573_s26, %s33_s28  }
  0x9c   : > { %p6826_p3 = por %p41_p0, %p40_p13  ;;  %p7715_p2 = scmp.eq.s32.totalorder %s6657_s30, 0 }
  0x9d   : > { %p196_p5 = scmp.eq.s32.totalorder %s6657_s30, 1  ;;  %p202_p7 = scmp.eq.s32.totalorder %s4994_s19, 1 }
  0x9e   : > { %p6832_p6 = por %p7715_p2, %p46_p1  ;;  %p5834_p9 = scmp.lt.s32.totalorder %s6577_s27, 2 }
  0x9f   : > { %s292_s20 = sand.u32 1, %s6573_s26   ;;  %p6839_p10 = por %p196_p5, %p40_p13 }
  0xa0   : > { %p6843_p11 = por %p202_p7, %p46_p1  ;;  %s5003_s1 = sshll.u32 %s292_s20, 6 }
  0xa1   : > { %s7717_s29 = scalar_select %p6839_p10, 1, 0 }
  0xa2   : > { %s7718_s21 = scalar_select %p6843_p11, 1, 0 }
  0xa3   : > { %s5431_s22 = sshll.u32 %s6577_s27, 10  ;;  %s296_s14 = scalar_lea.vmem [#allocation3], %s5003_s1 }
  0xa4   : > { %s6851_s12 = scalar_lea.hbm %s7698_s0, %s5431_s22  ;;  %s303_s15 = sshll.u32 %s296_s14, 4  ;;  %s6853_s15 = int_to_ptr.vmem [resolvable:$true] %s303_s15 }
  0xa5   : > { %p6857_p12 = pnand %p5834_p9, %p6826_p3  ;;  %s6861_s19 = scalar_lea.sflag [#allocation4], %s292_s20 }
  0xa6   : > { %s6469_s17 = scalar_lea.hbm %s6851_s12, 1024  ;;  %s6474_s10 = scalar_lea.hbm %s7698_s0, 2048 }
  0xa7   : > { %p6470_p4 = scmp.ne.s32.totalorder %s6851_s12, %s6469_s17  ;;  %p6471_p8 = pneg %p6857_p12 }
  0xa8   : > { %p6475_p1 = scmp.lt.u32.totalorder %s6851_s12, %s7698_s0  ;;  %p6476_p3 = scmp.lt.u32.totalorder %s6474_s10, %s6469_s17 }
  0xa9   : > { %p6472_p13 = pnand %p6471_p8, %p6470_p4  ;;  %p6478_p5 = scmp.lt.u32.totalorder %s6469_s17, %s6851_s12 }
  0xaa   : > { %p6477_p2 = por %p6476_p3, %p6475_p1 }
  0xab   : > { %p6473_p0 = pneg %p6472_p13 }
  0xac   : > { %p6479_p7 = por %p6478_p5, %p6477_p2 }
  0xae   : > { %p6480_p9 = pnand %p6479_p7, %p6473_p0 }
  0xb0   : > { %6483 = shalt.err (!%p6480_p9)
}
  0xb1   : > { %s6484_s20 = scalar_lea.vmem %s6853_s15, 1024  ;;  %s6589_s9 = smov [#allocation3]  }
  0xb2   : > { %p6485_p4 = scmp.ne.s32.totalorder %s6853_s15, %s6484_s20  ;;  %s6489_s14 = sshll.u32 %s6589_s9, 4  ;;  %s6490_s14 = int_to_ptr.vmem [resolvable:$false] %s6489_s14 }
  0xb3   : > { %s6491_s28 = scalar_lea.vmem %s6490_s14, 2048  ;;  %p6492_p10 = scmp.lt.s32.totalorder %s6853_s15, %s6490_s14 }
  0xb4   : > { %p6487_p13 = pnand %p6485_p4, %p6471_p8  ;;  %p6493_p1 = scmp.lt.s32.totalorder %s6491_s28, %s6484_s20 }
  0xb6   : > { %p6488_p11 = pneg %p6487_p13  ;;  %p6494_p3 = por %p6493_p1, %p6492_p10 }
  0xb8   : > { %p6495_p2 = pnand %p6494_p3, %p6488_p11 }
  0xba   : > { %6498 = shalt.err (!%p6495_p2)
}
  0xbb   : > { %s6590_s17 = smov 128   ;;  %s6591_s1 = smov 8  }
  0xbc   : > { %5823 = dma.hbm_to_vmem [thread:$0]  (!%p6857_p12), %s6851_s12, 1024, %s6853_s15, %s6861_s19, %s6590_s17, %s6590_s17, %s6591_s1  }
  0xbd   : > { %p7720_p8 = scmp.ne.s32.totalorder %s7710_s8, 0 }
  0xbe   : > { %s6892_s10 = sand.u32 (!%p7720_p8), 1, %s6569_s25  }
  0xbf   : > { %315 = sbr.rel (%p7720_p8) target bundleno = 1018 (0x3fa), region = 48  ;;  %s5007_s22 = sshll.u32 (!%p7720_p8), %s6892_s10, 6 }
  0xc0   : > { %s318_s23 = scalar_lea.sflag (!%p7720_p8), [#allocation4], %s6892_s10  ;;  %s6898_s20 = scalar_lea.vmem (!%p7720_p8), [#allocation3], %s5007_s22 }
  0xc6   : > { %6544 = dma.done.wait (%p6832_p6), %s318_s23, 1024  }
  0xc7   : > { %6546 = vsyncadd (%p6832_p6), %s318_s23, 4294966272  ;;  %p7721_p10 = scmp.eq.s32.totalorder %s6657_s30, 0 }
  0xc9   : > { %6548 = dma.done.wait (%p7721_p10), [#allocation7], 32   ;;  %p7722_p11 = pmov %p7721_p10 }
  0xca   : > { %p7723_p12 = pmov %p7721_p10 }
  0xcb   : > { %6550 = vsyncadd (%p7722_p11), [#allocation7], 4294967264 }
  0xcc   : > { %6552 = dma.done.wait (%p7723_p12), [#allocation10], 2112   ;;  %p7724_p0 = pmov %p7721_p10 }
  0xce   : > { %6554 = vsyncadd (%p7724_p0), [#allocation10], 4294965184  ;;  %p7725_p5 = pmov %p7724_p0 }
  0xcf   : > { %p7726_p7 = pmov %p7724_p0 }
  0xd0   : > { %6556 = dma.done.wait (%p7725_p5), [#allocation13], 36880  }
  0xd1   : > { %6558 = vsyncadd (%p7726_p7), [#allocation13], 4294930416  ;;  %v6592_v0 = vmov 0   ;;  %v5889_v1 = vld [vmem:[#allocation9 + $0x4] ss:$16 sps:$4 sm:$0xff]   ;;  %v377_v6 = vld [vmem:[%s6898_s20] sm:$0xff] }
  0xd2   : > { %590 = vmatprep.mubr.bf16.mxu0 %v6592_v0  ;;  %752 = vst [vmem:[#allocation2] sm:$0xff] %v6592_v0  ;;  %753 = vst [vmem:[#allocation2 + $0x8] sm:$0xff] %v6592_v0  ;;  %v5891_v2 = vld [vmem:[#allocation9] ss:$16 sps:$4 sm:$0xff]   ;;  %558 = vmatprep.subr.bf16.mxu0 %v5889_v1  ;;  %v5892_v3 = vld [vmem:[#allocation9 + $0x24] ss:$16 sps:$4 sm:$0xff]  }
  0xd3   : > { %754 = vst [vmem:[#allocation2 + $0x10] sm:$0x11] %v6592_v0  ;;  %755 = vst [vmem:[#allocation2 + $0x18] sm:$0x11] %v6592_v0  ;;  %559 = vmatpush1.bf16.msra.mxu0 %v5891_v2  ;;  %v5894_v4 = vld [vmem:[#allocation9 + $0x20] ss:$16 sps:$4 sm:$0xff]  }
  0xd4   : > { %757 = vst [vmem:[#allocation2 + $0x120] sm:$0xff] %v6592_v0  ;;  %758 = vst [vmem:[#allocation2 + $0x128] sm:$0xff] %v6592_v0  ;;  %560 = vmatprep.subr.bf16.mxu0 %v5892_v3  ;;  %v5895_v5 = vld [vmem:[#allocation9 + $0x44] ss:$16 sps:$4 sm:$0xff]   ;;  %v5015_v8 = vld [vmem:[#allocation6] ss:$0 sm:$0xff] }
  0xd5   : > { %759 = vst [vmem:[#allocation2 + $0x130] sm:$0x11] %v6592_v0  ;;  %760 = vst [vmem:[#allocation2 + $0x138] sm:$0x11] %v6592_v0  ;;  %v378_v7 = vld [vmem:[%s6898_s20 + $0x8] sm:$0xff]  ;;  %v392_v12 = vmul.f32 %v5015_v8, %v377_v6  ;;  %v379_v14 = vld [vmem:[%s6898_s20 + $0x10] sm:$0xff] }
  0xd6   : > { %v6927_v9 = vld [vmem:[#allocation8] ss:$0 sm:$0xff]  ;;  %v5897_v10 = vld [vmem:[#allocation9 + $0x40] ss:$16 sps:$4 sm:$0xff]   ;;  %v5898_v11 = vld [vmem:[#allocation9 + $0x64] ss:$16 sps:$4 sm:$0xff]   ;;  %v393_v13 = vmul.f32 %v5015_v8, %v378_v7  ;;  %v394_v18 = vmul.f32 %v5015_v8, %v379_v14 }
  0xd7   : > { %561 = vmatpush1.bf16.msra.mxu0 %v5894_v4  ;;  %v380_v15 = vld [vmem:[%s6898_s20 + $0x18] sm:$0xff]  ;;  %v407_v16 = vadd.f32 %v6927_v9, %v392_v12  ;;  %v5900_v20 = vld [vmem:[#allocation9 + $0x60] ss:$16 sps:$4 sm:$0xff]   ;;  %v5903_v23 = vld [vmem:[#allocation9 + $0xc] ss:$16 sps:$4 sm:$0xff]   ;;  %vm545_vm0 = vcmask 523264  }
  0xd8   : > { %562 = vmatprep.subr.bf16.mxu0 %v5895_v5  ;;  %v408_v17 = vadd.f32 %v6927_v9, %v393_v13  ;;  %v395_v19 = vmul.f32 %v5015_v8, %v380_v15  ;;  %v5901_v25 = vld [vmem:[#allocation9 + $0x8] ss:$16 sps:$4 sm:$0xff]   ;;  %v409_v26 = vadd.f32 %v6927_v9, %v394_v18  ;;  %v381_v28 = vld [vmem:[%s6898_s20 + $0x20] sm:$0xff]  ;;  %v383_v41 = vld [vmem:[%s6898_s20 + $0x30] sm:$0xff]  ;;  %vm762_vm1 = vcmask 1040384   ;;  %s7632_s8 = scalar_lea.vmem [#allocation15], %s5007_s22 }
  0xd9   : > { %v415_v21 = vmax.f32 %v407_v16, 0.0  ;;  %v382_v29 = vld [vmem:[%s6898_s20 + $0x28] sm:$0xff]  ;;  %v5906_v30 = vld [vmem:[#allocation9 + $0x2c] ss:$16 sps:$4 sm:$0xff]   ;;  %v396_v33 = vmul.f32 %v5015_v8, %v381_v28  ;;  %v384_v42 = vld [vmem:[%s6898_s20 + $0x38] sm:$0xff]  ;;  %v398_v47 = vmul.f32 %v5015_v8, %v383_v41  ;;  %vm765_vm3 = vcmask 1044484  }
  0xda   : > { %v416_v22 = vmax.f32 %v408_v17, 0.0  ;;  %v410_v27 = vadd.f32 %v6927_v9, %v395_v19  ;;  %v417_v31 = vmax.f32 %v409_v26, 0.0  ;;  %v397_v34 = vmul.f32 %v5015_v8, %v382_v29  ;;  %v5904_v35 = vld [vmem:[#allocation9 + $0x28] ss:$16 sps:$4 sm:$0xff]   ;;  %v5909_v36 = vld [vmem:[#allocation9 + $0x4c] ss:$16 sps:$4 sm:$0xff]  }
  0xdb   : > { %563 = vmatpush1.bf16.msra.mxu0 %v5897_v10  ;;  %v411_v38 = vadd.f32 %v6927_v9, %v396_v33  ;;  %v5907_v40 = vld [vmem:[#allocation9 + $0x48] ss:$16 sps:$4 sm:$0xff]   ;;  %v5912_v43 = vld [vmem:[#allocation9 + $0x6c] ss:$16 sps:$4 sm:$0xff]   ;;  %v399_v48 = vmul.f32 %v5015_v8, %v384_v42  ;;  %v413_v53 = vadd.f32 %v6927_v9, %v398_v47  ;;  %v5945_v55 = vld [vmem:[#allocation12 + $0xe0] ss:$12 sps:$4 sm:$0xff]  }
  0xdc   : > { %564 = vmatprep.subr.bf16.mxu0 %v5898_v11  ;;  %v423_v24 = vpack.c.bf16 %v416_v22, %v415_v21  ;;  %v418_v32 = vmax.f32 %v410_v27, 0.0  ;;  %v412_v39 = vadd.f32 %v6927_v9, %v397_v34  ;;  %v5910_v44 = vld [vmem:[#allocation9 + $0x68] ss:$16 sps:$4 sm:$0xff]   ;;  %v5946_v56 = vld [vmem:[#allocation12 + $0x20] ss:$12 sps:$4 sm:$0xff]   ;;  %vm1094_vm13 = vcmask 1043456  }
  0xdd   : > { %v419_v45 = vmax.f32 %v411_v38, 0.0  ;;  %v5915_v49 = vld [vmem:[#allocation12 + $0x4] ss:$12 sps:$4 sm:$0xff]   ;;  %v5940_v50 = vld [vmem:[#allocation12 + $0xc8] ss:$12 sps:$4 sm:$0xff]   ;;  %v414_v54 = vadd.f32 %v6927_v9, %v399_v48  ;;  %v421_v57 = vmax.f32 %v413_v53, 0.0 }
  0xde   : > { %v424_v37 = vpack.c.bf16 %v418_v32, %v417_v31  ;;  %v420_v46 = vmax.f32 %v412_v39, 0.0  ;;  %v5941_v51 = vld [vmem:[#allocation12 + $0x8] ss:$12 sps:$4 sm:$0xff]   ;;  %5449 = vmatprep.subr.bf16.mxu1 %v5940_v50  ;;  %v5913_v60 = vld [vmem:[#allocation12] ss:$12 sps:$4 sm:$0xff]   ;;  %vm1096_vm14 = vcmask 1047556  }
  0xdf   : > { %565 = vmatpush1.bf16.msra.mxu0 %v5900_v20  ;;  %5450 = vmatpush3.bf16.msra.mxu1 %v5941_v51  ;;  %v422_v58 = vmax.f32 %v414_v54, 0.0  ;;  %v5918_v61 = vld [vmem:[#allocation12 + $0x1c] ss:$12 sps:$4 sm:$0xff]   ;;  %v5916_v62 = vld [vmem:[#allocation12 + $0x18] ss:$12 sps:$4 sm:$0xff]   ;;  %s5448_s13 = sshll.u32 %s6657_s30, 10 }
  0xe0   : > { %631 = vmatprep.subr.bf16.mxu0 %v5903_v23  ;;  %v425_v52 = vpack.c.bf16 %v420_v46, %v419_v45  ;;  %5451 = vmatprep.subr.bf16.mxu1 %v5945_v55  ;;  %v5921_v63 = vld [vmem:[#allocation12 + $0x34] ss:$12 sps:$4 sm:$0xff]   ;;  %v5919_v1 = vld [vmem:[#allocation12 + $0x30] ss:$12 sps:$4 sm:$0xff]   ;;  %v5924_v2 = vld [vmem:[#allocation12 + $0x4c] ss:$12 sps:$4 sm:$0xff]   ;;  %s7651_s19 = scalar_lea.hbm %s7705_s7, %s5448_s13 }
  0xe1   : > { %v426_v59 = vpack.c.bf16 %v422_v58, %v421_v57  ;;  %v5922_v3 = vld [vmem:[#allocation12 + $0x48] ss:$12 sps:$4 sm:$0xff]   ;;  %v5927_v4 = vld [vmem:[#allocation12 + $0x64] ss:$12 sps:$4 sm:$0xff]   ;;  %v5925_v5 = vld [vmem:[#allocation12 + $0x60] ss:$12 sps:$4 sm:$0xff]  }
  0xe2   : > { %5033 = vmatmul.mubr.msk.bf16.vlgmr.msra.gmra.mrb[0].mxu0 %vm545_vm0, %v423_v24  ;;  %v5930_v6 = vld [vmem:[#allocation12 + $0x7c] ss:$12 sps:$4 sm:$0xff]   ;;  %v5928_v7 = vld [vmem:[#allocation12 + $0x78] ss:$12 sps:$4 sm:$0xff]   ;;  %v5933_v8 = vld [vmem:[#allocation12 + $0x94] ss:$12 sps:$4 sm:$0xff]  }
  0xe3   : > { %600 = vmatprep.mubr.bf16.mxu0 %v6592_v0  ;;  %632 = vmatpush1.bf16.msra.mxu0 %v5901_v25  ;;  %v5931_v9 = vld [vmem:[#allocation12 + $0x90] ss:$12 sps:$4 sm:$0xff]   ;;  %v5936_v10 = vld [vmem:[#allocation12 + $0xac] ss:$12 sps:$4 sm:$0xff]   ;;  %v5934_v11 = vld [vmem:[#allocation12 + $0xa8] ss:$12 sps:$4 sm:$0xff]  }
  0xe4   : > { %633 = vmatprep.subr.bf16.mxu0 %v5906_v30  ;;  %5452 = vmatpush3.bf16.msra.mxu1 %v5946_v56  ;;  %v5939_v12 = vld [vmem:[#allocation12 + $0xc4] ss:$12 sps:$4 sm:$0xff]   ;;  %v5937_v13 = vld [vmem:[#allocation12 + $0xc0] ss:$12 sps:$4 sm:$0xff]   ;;  %v5944_v14 = vld [vmem:[#allocation12 + $0xdc] ss:$12 sps:$4 sm:$0xff]  }
  0xe5   : > { %v5942_v15 = vld [vmem:[#allocation12 + $0xd8] ss:$12 sps:$4 sm:$0xff]   ;;  %v5947_v16 = vld [vmem:[#allocation12 + $0xf0] ss:$12 sps:$4 sm:$0xff]   ;;  %v5952_v20 = vld [vmem:[#allocation12 + $0x108] ss:$12 sps:$4 sm:$0xff]  }
  0xe6   : > { %v5950_v17 = vld [vmem:[#allocation12 + $0xf8] ss:$12 sps:$4 sm:$0xff]   ;;  %v5955_v21 = vld [vmem:[#allocation12 + $0x110] ss:$12 sps:$4 sm:$0xff]   ;;  %v5960_v25 = vld [vmem:[#allocation12 + $0x128] ss:$12 sps:$4 sm:$0xff]  }
  0xe7   : > { %634 = vmatpush1.bf16.msra.mxu0 %v5904_v35  ;;  %v5951_v18 = vld [vmem:[#allocation12 + $0x38] ss:$12 sps:$4 sm:$0xff]   ;;  %5453 = vmatprep.subr.bf16.mxu1 %v5950_v17  ;;  %v5956_v22 = vld [vmem:[#allocation12 + $0x50] ss:$12 sps:$4 sm:$0xff]   ;;  %vm763_vm2 = vsmask.f32 256 }
  0xe8   : > { %635 = vmatprep.subr.bf16.mxu0 %v5909_v36  ;;  %5454 = vmatpush3.bf16.msra.mxu1 %v5951_v18  ;;  %v5954_v19 = vld [vmem:[#allocation12 + $0x10c] ss:$12 sps:$4 sm:$0xff]   ;;  %v5959_v23 = vld [vmem:[#allocation12 + $0x124] ss:$12 sps:$4 sm:$0xff]   ;;  %vm766_vm4 = vsmask.f32 4352  ;;  %vm764_vm5 = vmand %vm762_vm1, %vm763_vm2 }
  0xe9   : > { %5455 = vmatprep.subr.bf16.mxu1 %v5955_v21  ;;  %vm817_vm6 = vsmask.f32 7938  ;;  %v5961_v26 = vld [vmem:[#allocation12 + $0x68] ss:$12 sps:$4 sm:$0xff]   ;;  %vm767_vm7 = vmand %vm765_vm3, %vm766_vm4  ;;  %v769_v27 = vld [vmem:[#allocation2 + $0x20] sm:$0x11] }
  0xea   : > { %5034 = vmatmul.mubr.msk.bf16.gmra.mrb[4].mxu0 %vm545_vm0, %v424_v37  ;;  %vm819_vm8 = vsmask.f32 7954  ;;  %v822_v28 = vld [vmem:[#allocation2 + $0x30] sm:$0x11]  ;;  %vm6960_vm9 = vmor %vm767_vm7, %vm764_vm5  ;;  %v5962_v30 = vld [vmem:[#allocation12 + $0x138] ss:$12 sps:$4 sm:$0xff]  }
  0xeb   : > { %610 = vmatprep.mubr.bf16.mxu0 %v6592_v0  ;;  %636 = vmatpush1.bf16.msra.mxu0 %v5907_v40  ;;  %v5964_v31 = vld [vmem:[#allocation12 + $0x13c] ss:$12 sps:$4 sm:$0xff]   ;;  %v770_v32 = vsel %vm6960_vm9, 0, %v769_v27  ;;  %vm818_vm10 = vmand %vm762_vm1, %vm817_vm6  ;;  %v5965_v36 = vld [vmem:[#allocation12 + $0x140] ss:$12 sps:$4 sm:$0xff]   ;;  %vm3714_vm5 = vcmask 1042432  }
  0xec   : > { %637 = vmatprep.subr.bf16.mxu0 %v5912_v43  ;;  %5456 = vmatpush3.bf16.msra.mxu1 %v5956_v22  ;;  %v775_v33 = vld [vmem:[#allocation2 + $0x40] sm:$0x11]  ;;  %v828_v34 = vld [vmem:[#allocation2 + $0x50] sm:$0x11]  ;;  %771 = vst [vmem:[#allocation2 + $0x20] sm:$0x11] %v770_v32  ;;  %vm820_vm11 = vmand %vm765_vm3, %vm819_vm8 }
  0xed   : > { %5457 = vmatprep.subr.bf16.mxu1 %v5960_v25  ;;  %v776_v35 = vsel %vm6960_vm9, 0, %v775_v33  ;;  %vm6972_vm12 = vmor %vm820_vm11, %vm818_vm10  ;;  %v5969_v39 = vld [vmem:[#allocation12 + $0x154] ss:$12 sps:$4 sm:$0xff]   ;;  %v5967_v42 = vld [vmem:[#allocation12 + $0x150] ss:$12 sps:$4 sm:$0xff]   ;;  %s4864_s12 = sshll.u32 %s7632_s8, 4  ;;  %s7653_s12 = int_to_ptr.vmem [resolvable:$true] %s4864_s12 }
  0xee   : > { %777 = vst [vmem:[#allocation2 + $0x40] sm:$0x11] %v776_v35  ;;  %v823_v40 = vsel %vm6972_vm12, 0, %v822_v28  ;;  %v829_v41 = vsel %vm6972_vm12, 0, %v828_v34  ;;  %v5970_v43 = vld [vmem:[#allocation12 + $0x158] ss:$12 sps:$4 sm:$0xff]   ;;  %vm1095_vm15 = vmand %vm1094_vm13, %vm817_vm6 }
  0xef   : > { %638 = vmatpush1.bf16.msra.mxu0 %v5910_v44  ;;  %824 = vst [vmem:[#allocation2 + $0x30] sm:$0x11] %v823_v40  ;;  %830 = vst [vmem:[#allocation2 + $0x50] sm:$0x11] %v829_v41  ;;  %v5971_v44 = vld [vmem:[#allocation12 + $0x98] ss:$12 sps:$4 sm:$0xff]  }
  0xf0   : > { %1962 = vmatprep.subr.bf16.mxu0 %v5915_v49  ;;  %5458 = vmatpush3.bf16.msra.mxu1 %v5961_v26  ;;  %v781_v45 = vld [vmem:[#allocation2 + $0x60] sm:$0x11]  ;;  %v834_v46 = vld [vmem:[#allocation2 + $0x70] sm:$0x11]  ;;  %v5979_v58 = vld [vmem:[#allocation12 + $0x184] ss:$12 sps:$4 sm:$0xff]  }
  0xf1   : > { %5459 = vmatprep.subr.bf16.mxu1 %v5965_v36  ;;  %v782_v47 = vsel %vm6960_vm9, 0, %v781_v45  ;;  %v835_v48 = vsel %vm6972_vm12, 0, %v834_v46  ;;  %v5972_v49 = vld [vmem:[#allocation12 + $0x168] ss:$12 sps:$4 sm:$0xff]   ;;  %v5974_v50 = vld [vmem:[#allocation12 + $0x16c] ss:$12 sps:$4 sm:$0xff]   ;;  %v445_v46 = vlaneseq }
  0xf2   : > { %5035 = vmatmul.mubr.msk.bf16.gmra.mrb[8].mxu0 %vm545_vm0, %v425_v52  ;;  %783 = vst [vmem:[#allocation2 + $0x60] sm:$0x11] %v782_v47  ;;  %836 = vst [vmem:[#allocation2 + $0x70] sm:$0x11] %v835_v48  ;;  %v787_v53 = vld [vmem:[#allocation2 + $0x80] sm:$0x11] }
  0xf3   : > { %620 = vmatprep.mubr.bf16.mxu0 %v6592_v0  ;;  %v840_v54 = vld [vmem:[#allocation2 + $0x90] sm:$0x11]  ;;  %v788_v55 = vsel %vm6960_vm9, 0, %v787_v53  ;;  %v5976_v57 = vld [vmem:[#allocation12 + $0xb0] ss:$12 sps:$4 sm:$0xff]   ;;  %v7042_v47 = vshrl.u32 %v445_v46, 7 }
  0xf4   : > { %v841_v56 = vsel %vm6972_vm12, 0, %v840_v54  ;;  %789 = vst [vmem:[#allocation2 + $0x80] sm:$0x11] %v788_v55  ;;  %v831_v18 = vld [vmem:[#allocation2 + $0x58] sm:$0x11]  ;;  %vm3715_vm6 = vcmask 1046532  }
  0xf5   : > { %842 = vst [vmem:[#allocation2 + $0x90] sm:$0x11] %v841_v56  ;;  %v837_v21 = vld [vmem:[#allocation2 + $0x78] sm:$0x11]  ;;  %v796_v28 = vld [vmem:[#allocation2 + $0xa8] sm:$0x11]  ;;  %vm7243_vm7 = vmor %vm3714_vm5, %vm3715_vm6 }
  0xf6   : > { %v843_v25 = vld [vmem:[#allocation2 + $0x98] sm:$0x11]  ;;  %v802_v33 = vld [vmem:[#allocation2 + $0xc8] sm:$0x11]  ;;  %v447_v48 = vsub.s32 0, %v7042_v47  ;;  %s4851_s9 = scalar_lea.sflag [#allocation5], %s6892_s10 }
  0xf7   : > { %v844_v27 = vsel %vm6972_vm12, 0, %v843_v25  ;;  %v855_v34 = vld [vmem:[#allocation2 + $0xd8] sm:$0x11]  ;;  %v803_v35 = vsel %vm6960_vm9, 0, %v802_v33  ;;  %v7066_v33 = vld [vmem:[#allocation2] sm:$0xff]  ;;  %s6499_s14 = scalar_lea.vmem %s7653_s12, 1024 }
  0xf8   : > { %845 = vst [vmem:[#allocation2 + $0x98] sm:$0x11] %v844_v27  ;;  %v856_v36 = vsel %vm6972_vm12, 0, %v855_v34  ;;  %804 = vst [vmem:[#allocation2 + $0xc8] sm:$0x11] %v803_v35  ;;  %p6500_p6 = scmp.ne.s32.totalorder %s7653_s12, %s6499_s14  ;;  %p7737_p9 = scmp.ne.s32.totalorder %s7717_s29, 0 }
  0xf9   : > { %857 = vst [vmem:[#allocation2 + $0xd8] sm:$0x11] %v856_v36  ;;  %v861_v40 = vld [vmem:[#allocation2 + $0xf8] sm:$0x11]  ;;  %v5977_v36 = vld [vmem:[#allocation12 + $0x180] ss:$12 sps:$4 sm:$0xff]  }
  0xfa   : > { %5036 = vmatmul.mubr.msk.bf16.gmra.mrb[12].mxu0 %vm545_vm0, %v426_v59  ;;  %v862_v41 = vsel %vm6972_vm12, 0, %v861_v40  ;;  %v6061_v29 = vld [vmem:[#allocation12 + $0x394] ss:$12 sps:$4 sm:$0xff]   ;;  %vm2326_vm2 = vsmask.f32 3328  ;;  %p6501_p4 = pnand %p6500_p6, %p7737_p9  ;;  %s6593_s30 = smov [#allocation15]  }
  0xfb   : > { %663 = vmatprep.mubr.bf16.mxu0 %v6592_v0  ;;  %863 = vst [vmem:[#allocation2 + $0xf8] sm:$0x11] %v862_v41  ;;  %vm2327_vm3 = vsmask.f32 7440  ;;  %s6503_s28 = sshll.u32 %s6593_s30, 4  ;;  %s6504_s28 = int_to_ptr.vmem [resolvable:$false] %s6503_s28 }
  0xfc   : > { %vm7213_vm4 = vmor %vm2326_vm2, %vm2327_vm3  ;;  %p6502_p13 = pneg %p6501_p4  ;;  %s6505_s17 = scalar_lea.vmem %s6504_s28, 2048 }
  0xfd   : > { %p6506_p1 = scmp.lt.s32.totalorder %s7653_s12, %s6504_s28  ;;  %p6507_p3 = scmp.lt.s32.totalorder %s6505_s17, %s6499_s14 }
  0xff   : > { %p6508_p2 = por %p6507_p3, %p6506_p1 }
 0x101   : > { %p6509_p8 = pnand %p6508_p2, %p6502_p13 }
 0x102   : > { %5037 = vmatmul.mubr.msk.bf16.vlgmr.msra.gmra.mrb[16].mxu0 %vm545_vm0, %v423_v24  ;;  %v5957_v24 = vld [vmem:[#allocation12 + $0x120] ss:$12 sps:$4 sm:$0xff]  }
 0x103   : > { %673 = vmatprep.mubr.bf16.mxu0 %v6592_v0  ;;  %1963 = vmatpush1.bf16.msra.mxu0 %v5913_v60  ;;  %v846_v60 = vld [vmem:[#allocation2 + $0xb0] sm:$0x11] }
 0x104   : > { %1964 = vmatprep.subr.bf16.mxu0 %v5918_v61 }
 0x107   : > { %1965 = vmatpush1.bf16.msra.mxu0 %v5916_v62  ;;  %v847_v62 = vsel %vm6972_vm12, 0, %v846_v60 }
 0x108   : > { %1966 = vmatprep.subr.bf16.mxu0 %v5921_v63  ;;  %848 = vst [vmem:[#allocation2 + $0xb0] sm:$0x11] %v847_v62  ;;  %v799_v63 = vld [vmem:[#allocation2 + $0xc0] sm:$0x11] }
 0x10a   : > { %5038 = vmatmul.mubr.msk.bf16.gmra.mrb[20].mxu0 %vm545_vm0, %v424_v37  ;;  %v5966_v37 = vld [vmem:[#allocation12 + $0x80] ss:$12 sps:$4 sm:$0xff]  }
 0x10b   : > { %683 = vmatprep.mubr.bf16.mxu0 %v6592_v0  ;;  %1967 = vmatpush1.bf16.msra.mxu0 %v5919_v1  ;;  %v852_v1 = vld [vmem:[#allocation2 + $0xd0] sm:$0x11] }
 0x10c   : > { %1968 = vmatprep.subr.bf16.mxu0 %v5924_v2  ;;  %5460 = vmatpush3.bf16.msra.mxu1 %v5966_v37  ;;  %v800_v2 = vsel %vm6960_vm9, 0, %v799_v63  ;;  %v808_v37 = vld [vmem:[#allocation2 + $0xe8] sm:$0x11] }
 0x10d   : > { %5461 = vmatprep.subr.bf16.mxu1 %v5970_v43  ;;  %801 = vst [vmem:[#allocation2 + $0xc0] sm:$0x11] %v800_v2 }
 0x10f   : > { %1969 = vmatpush1.bf16.msra.mxu0 %v5922_v3  ;;  %v853_v3 = vsel %vm6972_vm12, 0, %v852_v1 }
 0x110   : > { %1970 = vmatprep.subr.bf16.mxu0 %v5927_v4  ;;  %5462 = vmatpush3.bf16.msra.mxu1 %v5971_v44  ;;  %854 = vst [vmem:[#allocation2 + $0xd0] sm:$0x11] %v853_v3  ;;  %v5980_v4 = vld [vmem:[#allocation12 + $0x248] ss:$12 sps:$4 sm:$0xff]  }
 0x111   : > { %v867_v44 = vld [vmem:[#allocation2 + $0x118] sm:$0x11] }
 0x112   : > { %5039 = vmatmul.mubr.msk.bf16.gmra.mrb[24].mxu0 %vm545_vm0, %v425_v52  ;;  %v5975_v52 = vld [vmem:[#allocation12 + $0x170] ss:$12 sps:$4 sm:$0xff]   ;;  %v868_v45 = vsel %vm6972_vm12, 0, %v867_v44 }
 0x113   : > { %693 = vmatprep.mubr.bf16.mxu0 %v6592_v0  ;;  %1971 = vmatpush1.bf16.msra.mxu0 %v5925_v5  ;;  %v5949_v0 = vld [vmem:[#allocation12 + $0xf4] ss:$12 sps:$4 sm:$0xff]   ;;  %v805_v5 = vld [vmem:[#allocation2 + $0xe0] sm:$0x11]  ;;  %869 = vst [vmem:[#allocation2 + $0x118] sm:$0x11] %v868_v45 }
 0x114   : > { %1972 = vmatprep.subr.bf16.mxu0 %v5930_v6  ;;  %5463 = vmatprep.subr.bf16.mxu1 %v5975_v52  ;;  %v858_v6 = vld [vmem:[#allocation2 + $0xf0] sm:$0x11] }
 0x115   : > { %5464 = vmatpush3.bf16.msra.mxu1 %v5976_v57 }
 0x116   : > { %5495 = vmatprep.subr.bf16.mxu1 %v5980_v4 }
 0x117   : > { %1973 = vmatpush1.bf16.msra.mxu0 %v5928_v7  ;;  %v806_v7 = vsel %vm6960_vm9, 0, %v805_v5 }
 0x118   : > { %1974 = vmatprep.subr.bf16.mxu0 %v5933_v8  ;;  %v859_v8 = vsel %vm6972_vm12, 0, %v858_v6  ;;  %807 = vst [vmem:[#allocation2 + $0xe0] sm:$0x11] %v806_v7 }
 0x119   : > { %860 = vst [vmem:[#allocation2 + $0xf0] sm:$0x11] %v859_v8 }
 0x11a   : > { %5040 = vmatmul.mubr.msk.bf16.gmra.mrb[28].mxu0 %vm545_vm0, %v426_v59  ;;  %vm1097_vm0 = vmand %vm1096_vm14, %vm819_vm8  ;;  %v793_v59 = vld [vmem:[#allocation2 + $0xa0] sm:$0x11] }
 0x11b   : > { %1975 = vmatpush1.bf16.msra.mxu0 %v5931_v9  ;;  %vm6986_vm1 = vmor %vm1097_vm0, %vm1095_vm15  ;;  %v794_v61 = vsel %vm6960_vm9, 0, %v793_v59  ;;  %v811_v9 = vld [vmem:[#allocation2 + $0x100] sm:$0x11] }
 0x11c   : > { %1976 = vmatprep.subr.bf16.mxu0 %v5936_v10  ;;  %795 = vst [vmem:[#allocation2 + $0xa0] sm:$0x11] %v794_v61  ;;  %v864_v10 = vld [vmem:[#allocation2 + $0x110] sm:$0x11] }
 0x11f   : > { %1977 = vmatpush1.bf16.msra.mxu0 %v5934_v11  ;;  %v812_v11 = vsel %vm6960_vm9, 0, %v811_v9 }
 0x120   : > { %1978 = vmatprep.subr.bf16.mxu0 %v5939_v12  ;;  %v865_v12 = vsel %vm6972_vm12, 0, %v864_v10  ;;  %813 = vst [vmem:[#allocation2 + $0x100] sm:$0x11] %v812_v11 }
 0x121   : > { %866 = vst [vmem:[#allocation2 + $0x110] sm:$0x11] %v865_v12 }
 0x123   : > { %1979 = vmatpush1.bf16.msra.mxu0 %v5937_v13  ;;  %v772_v13 = vld [vmem:[#allocation2 + $0x28] sm:$0x11] }
 0x124   : > { %1980 = vmatprep.subr.bf16.mxu0 %v5944_v14  ;;  %v773_v14 = vsel %vm6960_vm9, 0, %v772_v13  ;;  %v1099_v13 = vld [vmem:[#allocation2 + $0x20] sm:$0xff] }
 0x125   : > { %774 = vst [vmem:[#allocation2 + $0x28] sm:$0x11] %v773_v14  ;;  %v1105_v14 = vld [vmem:[#allocation2 + $0x30] sm:$0x11] }
 0x127   : > { %1981 = vmatpush1.bf16.msra.mxu0 %v5942_v15  ;;  %v778_v15 = vld [vmem:[#allocation2 + $0x48] sm:$0x11] }
 0x128   : > { %1982 = vmatprep.subr.bf16.mxu0 %v5949_v0  ;;  %v825_v0 = vld [vmem:[#allocation2 + $0x38] sm:$0x11] }
 0x129   : > { %v826_v17 = vsel %vm6972_vm12, 0, %v825_v0 }
 0x12a   : > { %827 = vst [vmem:[#allocation2 + $0x38] sm:$0x11] %v826_v17 }
 0x12b   : > { %1983 = vmatpush1.bf16.msra.mxu0 %v5947_v16  ;;  %v779_v16 = vsel %vm6960_vm9, 0, %v778_v15 }
 0x12c   : > { %1984 = vmatprep.subr.bf16.mxu0 %v5954_v19  ;;  %780 = vst [vmem:[#allocation2 + $0x48] sm:$0x11] %v779_v16  ;;  %v832_v19 = vsel %vm6972_vm12, 0, %v831_v18 }
 0x12d   : > { %833 = vst [vmem:[#allocation2 + $0x58] sm:$0x11] %v832_v19 }
 0x12f   : > { %1985 = vmatpush1.bf16.msra.mxu0 %v5952_v20  ;;  %v784_v20 = vld [vmem:[#allocation2 + $0x68] sm:$0x11] }
 0x130   : > { %1986 = vmatprep.subr.bf16.mxu0 %v5959_v23  ;;  %v785_v22 = vsel %vm6960_vm9, 0, %v784_v20  ;;  %v838_v23 = vsel %vm6972_vm12, 0, %v837_v21 }
 0x131   : > { %786 = vst [vmem:[#allocation2 + $0x68] sm:$0x11] %v785_v22  ;;  %839 = vst [vmem:[#allocation2 + $0x78] sm:$0x11] %v838_v23  ;;  %v1111_v22 = vld [vmem:[#allocation2 + $0x40] sm:$0xff] }
 0x132   : > { %v1117_v23 = vld [vmem:[#allocation2 + $0x50] sm:$0x11] }
 0x133   : > { %1987 = vmatpush1.bf16.msra.mxu0 %v5957_v24  ;;  %v790_v24 = vld [vmem:[#allocation2 + $0x88] sm:$0x11] }
 0x134   : > { %1988 = vmatprep.subr.bf16.mxu0 %v5964_v31  ;;  %v791_v26 = vsel %vm6960_vm9, 0, %v790_v24  ;;  %v797_v31 = vsel %vm6960_vm9, 0, %v796_v28 }
 0x135   : > { %792 = vst [vmem:[#allocation2 + $0x88] sm:$0x11] %v791_v26  ;;  %798 = vst [vmem:[#allocation2 + $0xa8] sm:$0x11] %v797_v31 }
 0x137   : > { %1989 = vmatpush1.bf16.msra.mxu0 %v5962_v30  ;;  %v849_v30 = vld [vmem:[#allocation2 + $0xb8] sm:$0x11] }
 0x138   : > { %1990 = vmatprep.subr.bf16.mxu0 %v5969_v39  ;;  %v850_v32 = vsel %vm6972_vm12, 0, %v849_v30  ;;  %v809_v39 = vsel %vm6960_vm9, 0, %v808_v37  ;;  %v5981_v37 = vld [vmem:[#allocation12 + $0x188] ss:$12 sps:$4 sm:$0xff]  }
 0x139   : > { %851 = vst [vmem:[#allocation2 + $0xb8] sm:$0x11] %v850_v32  ;;  %810 = vst [vmem:[#allocation2 + $0xe8] sm:$0x11] %v809_v39 }
 0x13b   : > { %1991 = vmatpush1.bf16.msra.mxu0 %v5967_v42  ;;  %v814_v42 = vld [vmem:[#allocation2 + $0x108] sm:$0x11] }
 0x13c   : > { %1992 = vmatprep.subr.bf16.mxu0 %v5974_v50  ;;  %v815_v43 = vsel %vm6960_vm9, 0, %v814_v42  ;;  %v451_v50 = vsub.s32 1, %v7042_v47  ;;  %v5984_v42 = vld [vmem:[#allocation12 + $0x19c] ss:$12 sps:$4 sm:$0xff]  }
 0x13d   : > { %816 = vst [vmem:[#allocation2 + $0x108] sm:$0x11] %v815_v43  ;;  %v5985_v43 = vld [vmem:[#allocation12 + $0x260] ss:$12 sps:$4 sm:$0xff]  }
 0x13f   : > { %1993 = vmatpush1.bf16.msra.mxu0 %v5972_v49  ;;  %v7045_v49 = vld [vmem:[#allocation11] sm:$0xf] }
 0x140   : > { %2041 = vmatprep.subr.bf16.mxu0 %v5979_v58  ;;  %v7049_v52 = vrot.slane %v7045_v49, %v447_v48  ;;  %v7052_v53 = vrot.slane %v7045_v49, %v451_v50  ;;  %v1129_v50 = vld [vmem:[#allocation2 + $0x70] sm:$0x11] }
 0x1b5   : > { %v592_v54 = vpop.f32.mrb[0].mxu0 }
 0x1b6   : > { %v593_v38 = vadd.f32 %v592_v54, %v7049_v52  ;;  %v594_v55 = vpop.f32.mrb[1].mxu0 }
 0x1b7   : > { %v595_v56 = vadd.f32 %v594_v55, %v7052_v53  ;;  %v596_v57 = vpop.f32.mrb[2].mxu0  ;;  %v5982_v55 = vld [vmem:[#allocation12 + $0x198] ss:$12 sps:$4 sm:$0xff]  }
 0x1b8   : > { %v704_v58 = vmax.f32 %v593_v38, 0.0  ;;  %v597_v59 = vadd.f32 %v596_v57, %v7049_v52  ;;  %v598_v60 = vpop.f32.mrb[3].mxu0 }
 0x1b9   : > { %v705_v61 = vmax.f32 %v595_v56, 0.0  ;;  %v599_v62 = vadd.f32 %v598_v60, %v7052_v53  ;;  %v5986_v56 = vld [vmem:[#allocation12 + $0x1a0] ss:$12 sps:$4 sm:$0xff]  }
 0x1ba   : > { %v708_v63 = vmax.f32 %v597_v59, 0.0 }
 0x1bb   : > { %v5432_v1 = vpack.c.bf16 %v705_v61, %v704_v58  ;;  %v709_v2 = vmax.f32 %v599_v62, 0.0  ;;  %v1123_v62 = vld [vmem:[#allocation2 + $0x60] sm:$0xff] }
 0x1bd   : > { %v935_v3 = vshrl.u32 %v5432_v1, 16  ;;  %v5434_v4 = vpack.c.bf16 %v709_v2, %v708_v63  ;;  %v602_v5 = vpop.f32.mrb[4].mxu0  ;;  %v938_v9 = vshll.u32 %v5432_v1, 16 }
 0x1be   : > { %v603_v6 = vadd.f32 %v602_v5, %v7049_v52  ;;  %v604_v7 = vpop.f32.mrb[5].mxu0 }
 0x1bf   : > { %v937_v8 = vrot.slane %v935_v3, 7  ;;  %v951_v10 = vshrl.u32 %v5434_v4, 16  ;;  %v605_v11 = vadd.f32 %v604_v7, %v7052_v53  ;;  %v606_v12 = vpop.f32.mrb[6].mxu0  ;;  %v954_v15 = vshll.u32 %v5434_v4, 16  ;;  %v5989_v3 = vld [vmem:[#allocation12 + $0x1b4] ss:$12 sps:$4 sm:$0xff]  }
 0x1c0   : > { %v712_v0 = vmax.f32 %v603_v6, 0.0  ;;  %v607_v16 = vadd.f32 %v606_v12, %v7049_v52  ;;  %v608_v17 = vpop.f32.mrb[7].mxu0  ;;  %v5990_v4 = vld [vmem:[#allocation12 + $0x278] ss:$12 sps:$4 sm:$0xff]  }
 0x1c1   : > { %v940_v18 = vor.u32 %v938_v9, %v937_v8  ;;  %v948_v19 = vrot.slane %v937_v8, 4  ;;  %v953_v20 = vrot.slane %v951_v10, 7  ;;  %v713_v21 = vmax.f32 %v605_v11, 0.0  ;;  %v1135_v9 = vld [vmem:[#allocation2 + $0x80] sm:$0xff]  ;;  %v1141_v10 = vld [vmem:[#allocation2 + $0x90] sm:$0x11] }
 0x1c2   : > { %v716_v24 = vmax.f32 %v607_v16, 0.0  ;;  %v609_v25 = vadd.f32 %v608_v17, %v7052_v53 }
 0x1c3   : > { %v1100_v26 = vsel %vm6986_vm1, %v940_v18, %v1099_v13  ;;  %v1106_v27 = vsel %vm6960_vm9, %v948_v19, %v1105_v14  ;;  %v956_v28 = vor.u32 %v954_v15, %v953_v20  ;;  %v964_v30 = vrot.slane %v953_v20, 4  ;;  %v5987_v18 = vld [vmem:[#allocation12 + $0x1b0] ss:$12 sps:$4 sm:$0xff]  }
 0x1c4   : > { %1101 = vst [vmem:[#allocation2 + $0x20] sm:$0xff] %v1100_v26  ;;  %1107 = vst [vmem:[#allocation2 + $0x30] sm:$0x11] %v1106_v27  ;;  %v5436_v31 = vpack.c.bf16 %v713_v21, %v712_v0  ;;  %v717_v32 = vmax.f32 %v609_v25, 0.0  ;;  %v5058_v34 = vcombine.low %v7066_v33, %v1100_v26  ;;  %v5059_v35 = vcombine.high %v7066_v33, %v1100_v26 }
 0x1c5   : > { %v7072_v39 = vsel %vm6986_vm1, %v956_v28, %v1111_v22  ;;  %v1118_v40 = vsel %vm6960_vm9, %v964_v30, %v1117_v23  ;;  %v612_v41 = vpop.f32.mrb[8].mxu0  ;;  %v455_v14 = vsub.s32 2, %v7042_v47  ;;  %v459_v23 = vsub.s32 3, %v7042_v47  ;;  %v1153_v47 = vld [vmem:[#allocation2 + $0xb0] sm:$0x11] }
 0x1c6   : > { %1113 = vst [vmem:[#allocation2 + $0x40] sm:$0xff] %v7072_v39  ;;  %1119 = vst [vmem:[#allocation2 + $0x50] sm:$0x11] %v1118_v40  ;;  %v967_v44 = vshrl.u32 %v5436_v31, 16  ;;  %v5438_v45 = vpack.c.bf16 %v717_v32, %v716_v24  ;;  %v613_v46 = vadd.f32 %v612_v41, %v7049_v52  ;;  %v614_v48 = vpop.f32.mrb[9].mxu0  ;;  %1994 = vmatprep.mubr.bf16.mxu0 %v5059_v35  ;;  %2152 = vmatprep.mubr.bf16.mxu1 %v5059_v35  ;;  %v1147_v41 = vld [vmem:[#allocation2 + $0xa0] sm:$0xff] }
 0x1c7   : > { %v615_v54 = vadd.f32 %v614_v48, %v7052_v53  ;;  %v616_v38 = vpop.f32.mrb[10].mxu0  ;;  %1995 = vmatmul.mubr.bf16.vlgmr.msra.gmra.mrb[32].mxu0 %v5058_v34  ;;  %2153 = vmatmul.mubr.bf16.vlgmr.msra.gmra.mrb[0].mxu1 %v5058_v34  ;;  %v970_v58 = vshll.u32 %v5436_v31, 16  ;;  %v5991_v24 = vld [vmem:[#allocation12 + $0x1b8] ss:$12 sps:$4 sm:$0xff]   ;;  %v5995_v32 = vld [vmem:[#allocation12 + $0x290] ss:$12 sps:$4 sm:$0xff]  }
 0x1c8   : > { %v969_v57 = vrot.slane %v967_v44, 7  ;;  %v983_v59 = vshrl.u32 %v5438_v45, 16  ;;  %v720_v60 = vmax.f32 %v613_v46, 0.0  ;;  %v618_v61 = vpop.f32.mrb[11].mxu0  ;;  %2042 = vmatpush1.bf16.msra.mxu0 %v5977_v36  ;;  %5496 = vmatpush3.bf16.msra.mxu1 %v5981_v37  ;;  %v617_v1 = vadd.f32 %v616_v38, %v7049_v52  ;;  %v5994_v31 = vld [vmem:[#allocation12 + $0x1cc] ss:$12 sps:$4 sm:$0xff]  }
 0x1c9   : > { %v721_v63 = vmax.f32 %v615_v54, 0.0  ;;  %v619_v2 = vadd.f32 %v618_v61, %v7052_v53  ;;  %2043 = vmatprep.subr.bf16.mxu0 %v5984_v42  ;;  %5497 = vmatprep.subr.bf16.mxu1 %v5985_v43  ;;  %v986_v8 = vshll.u32 %v5438_v45, 16  ;;  %v5999_v38 = vld [vmem:[#allocation12 + $0x1d0] ss:$12 sps:$4 sm:$0xff]  }
 0x1ca   : > { %v972_v5 = vor.u32 %v970_v58, %v969_v57  ;;  %v980_v6 = vrot.slane %v969_v57, 4  ;;  %v985_v7 = vrot.slane %v983_v59, 7  ;;  %v724_v12 = vmax.f32 %v617_v1, 0.0 }
 0x1cb   : > { %v5440_v11 = vpack.c.bf16 %v721_v63, %v720_v60  ;;  %v725_v13 = vmax.f32 %v619_v2, 0.0  ;;  %v7098_v59 = vrot.slane %v7045_v49, %v455_v14  ;;  %v5998_v60 = vld [vmem:[#allocation12 + $0x1e4] ss:$12 sps:$4 sm:$0xff]   ;;  %v6003_v2 = vld [vmem:[#allocation12 + $0x2a8] ss:$12 sps:$4 sm:$0xff]  }
 0x1cc   : > { %v1124_v15 = vsel %vm6986_vm1, %v972_v5, %v1123_v62  ;;  %v1130_v0 = vsel %vm6960_vm9, %v980_v6, %v1129_v50  ;;  %v988_v16 = vor.u32 %v986_v8, %v985_v7  ;;  %v996_v17 = vrot.slane %v985_v7, 4  ;;  %2044 = vmatpush1.bf16.msra.mxu0 %v5982_v55  ;;  %5498 = vmatpush3.bf16.msra.mxu1 %v5986_v56  ;;  %v1159_v55 = vld [vmem:[#allocation2 + $0xc0] sm:$0xff]  ;;  %v1165_v56 = vld [vmem:[#allocation2 + $0xd0] sm:$0x11] }
 0x1cd   : > { %1125 = vst [vmem:[#allocation2 + $0x60] sm:$0xff] %v1124_v15  ;;  %1131 = vst [vmem:[#allocation2 + $0x70] sm:$0x11] %v1130_v0  ;;  %v999_v19 = vshrl.u32 %v5440_v11, 16  ;;  %v5442_v20 = vpack.c.bf16 %v725_v13, %v724_v12  ;;  %v622_v21 = vpop.f32.mrb[12].mxu0  ;;  %v5063_v22 = vcombine.high %v7072_v39, %v1124_v15  ;;  %2045 = vmatprep.subr.bf16.mxu0 %v5989_v3  ;;  %5499 = vmatprep.subr.bf16.mxu1 %v5990_v4 }
 0x1ce   : > { %v1136_v25 = vsel %vm6986_vm1, %v988_v16, %v1135_v9  ;;  %v1142_v26 = vsel %vm6960_vm9, %v996_v17, %v1141_v10  ;;  %v623_v27 = vadd.f32 %v622_v21, %v7049_v52  ;;  %v624_v28 = vpop.f32.mrb[13].mxu0  ;;  %v5062_v30 = vcombine.low %v7072_v39, %v1124_v15  ;;  %v5992_v39 = vld [vmem:[#allocation12 + $0x1c8] ss:$12 sps:$4 sm:$0xff]   ;;  %v5996_v8 = vld [vmem:[#allocation12 + $0x1e0] ss:$12 sps:$4 sm:$0xff]  }
 0x1cf   : > { %1137 = vst [vmem:[#allocation2 + $0x80] sm:$0xff] %v1136_v25  ;;  %1143 = vst [vmem:[#allocation2 + $0x90] sm:$0x11] %v1142_v26  ;;  %v1001_v34 = vrot.slane %v999_v19, 7  ;;  %v1002_v35 = vshll.u32 %v5440_v11, 16  ;;  %v1015_v36 = vshrl.u32 %v5442_v20, 16  ;;  %v625_v37 = vadd.f32 %v624_v28, %v7052_v53  ;;  %2003 = vmatprep.mubr.bf16.mxu0 %v5063_v22  ;;  %2158 = vmatprep.mubr.bf16.mxu1 %v5063_v22 }
 0x1d0   : > { %v626_v40 = vpop.f32.mrb[14].mxu0  ;;  %v1018_v42 = vshll.u32 %v5442_v20, 16  ;;  %v728_v43 = vmax.f32 %v623_v27, 0.0  ;;  %2004 = vmatmul.mubr.bf16.gmra.mrb[36].mxu0 %v5062_v30  ;;  %2159 = vmatmul.mubr.bf16.gmra.mrb[4].mxu1 %v5062_v30  ;;  %v6004_v9 = vld [vmem:[#allocation12 + $0x1e8] ss:$12 sps:$4 sm:$0xff]  }
 0x1d1   : > { %v627_v44 = vadd.f32 %v626_v40, %v7049_v52  ;;  %v628_v45 = vpop.f32.mrb[15].mxu0  ;;  %v1004_v46 = vor.u32 %v1002_v35, %v1001_v34  ;;  %v1012_v48 = vrot.slane %v1001_v34, 4  ;;  %v1017_v50 = vrot.slane %v1015_v36, 7  ;;  %2046 = vmatpush1.bf16.msra.mxu0 %v5987_v18  ;;  %5500 = vmatpush3.bf16.msra.mxu1 %v5991_v24  ;;  %v6002_v14 = vld [vmem:[#allocation12 + $0x1fc] ss:$12 sps:$4 sm:$0xff]  }
 0x1d2   : > { %v729_v54 = vmax.f32 %v625_v37, 0.0  ;;  %v629_v58 = vadd.f32 %v628_v45, %v7052_v53  ;;  %v7101_v52 = vrot.slane %v7045_v49, %v459_v23  ;;  %2047 = vmatprep.subr.bf16.mxu0 %v5994_v31  ;;  %5501 = vmatprep.subr.bf16.mxu1 %v5995_v32  ;;  %v6008_v15 = vld [vmem:[#allocation12 + $0x2c0] ss:$12 sps:$4 sm:$0xff]   ;;  %v1171_v23 = vld [vmem:[#allocation2 + $0xe0] sm:$0xff] }
 0x1d3   : > { %v732_v57 = vmax.f32 %v627_v44, 0.0  ;;  %v1148_v61 = vsel %vm6986_vm1, %v1004_v46, %v1147_v41  ;;  %v1154_v62 = vsel %vm6960_vm9, %v1012_v48, %v1153_v47  ;;  %v1020_v63 = vor.u32 %v1018_v42, %v1017_v50  ;;  %v1177_v0 = vld [vmem:[#allocation2 + $0xf0] sm:$0x11]  ;;  %v6000_v27 = vld [vmem:[#allocation12 + $0x1f8] ss:$12 sps:$4 sm:$0xff]  }
 0x1d4   : > { %v1028_v1 = vrot.slane %v1017_v50, 4  ;;  %1149 = vst [vmem:[#allocation2 + $0xa0] sm:$0xff] %v1148_v61  ;;  %1155 = vst [vmem:[#allocation2 + $0xb0] sm:$0x11] %v1154_v62  ;;  %v5444_v53 = vpack.c.bf16 %v729_v54, %v728_v43  ;;  %v733_v3 = vmax.f32 %v629_v58, 0.0  ;;  %v5067_v4 = vcombine.high %v1136_v25, %v1148_v61  ;;  %v1183_v47 = vld [vmem:[#allocation2 + $0x100] sm:$0xff] }
 0x1d5   : > { %v5066_v5 = vcombine.low %v1136_v25, %v1148_v61  ;;  %v7109_v49 = vsel %vm6986_vm1, %v1020_v63, %v1159_v55  ;;  %v665_v7 = vpop.f32.mrb[16].mxu0  ;;  %2048 = vmatpush1.bf16.msra.mxu0 %v5992_v39  ;;  %5502 = vmatpush3.bf16.msra.mxu1 %v5999_v38  ;;  %v6009_v28 = vld [vmem:[#allocation12 + $0x200] ss:$12 sps:$4 sm:$0xff]   ;;  %v6005_v39 = vld [vmem:[#allocation12 + $0x210] ss:$12 sps:$4 sm:$0xff]  }
 0x1d6   : > { %v1166_v6 = vsel %vm6960_vm9, %v1028_v1, %v1165_v56  ;;  %1161 = vst [vmem:[#allocation2 + $0xc0] sm:$0xff] %v7109_v49  ;;  %v1031_v10 = vshrl.u32 %v5444_v53, 16  ;;  %v5446_v11 = vpack.c.bf16 %v733_v3, %v732_v57  ;;  %v666_v12 = vadd.f32 %v665_v7, %v7098_v59  ;;  %v667_v13 = vpop.f32.mrb[17].mxu0  ;;  %2013 = vmatprep.mubr.bf16.mxu0 %v5067_v4  ;;  %v6007_v35 = vld [vmem:[#allocation12 + $0x214] ss:$12 sps:$4 sm:$0xff]  }
 0x1d7   : > { %1167 = vst [vmem:[#allocation2 + $0xd0] sm:$0x11] %v1166_v6  ;;  %2049 = vmatprep.subr.bf16.mxu0 %v5998_v60  ;;  %v668_v16 = vadd.f32 %v667_v13, %v7101_v52  ;;  %v669_v17 = vpop.f32.mrb[18].mxu0  ;;  %2166 = vmatprep.mubr.bf16.mxu1 %v5067_v4  ;;  %v1034_v19 = vshll.u32 %v5444_v53, 16  ;;  %v1189_v36 = vld [vmem:[#allocation2 + $0x110] sm:$0x11] }
 0x1d8   : > { %5503 = vmatprep.subr.bf16.mxu1 %v6003_v2  ;;  %v1033_v18 = vrot.slane %v1031_v10, 7  ;;  %v1047_v20 = vshrl.u32 %v5446_v11, 16  ;;  %v706_v21 = vmax.f32 %v666_v12, 0.0  ;;  %v671_v22 = vpop.f32.mrb[19].mxu0  ;;  %2014 = vmatmul.mubr.bf16.gmra.mrb[40].mxu0 %v5066_v5  ;;  %v670_v25 = vadd.f32 %v669_v17, %v7098_v59  ;;  %v6013_v55 = vld [vmem:[#allocation12 + $0x2d8] ss:$12 sps:$4 sm:$0xff]  }
 0x1d9   : > { %2167 = vmatmul.mubr.bf16.gmra.mrb[8].mxu1 %v5066_v5  ;;  %v707_v24 = vmax.f32 %v668_v16, 0.0  ;;  %v672_v26 = vadd.f32 %v671_v22, %v7101_v52  ;;  %2050 = vmatpush1.bf16.msra.mxu0 %v5996_v8  ;;  %v1050_v34 = vshll.u32 %v5446_v11, 16  ;;  %v1102_v58 = vld [vmem:[#allocation2 + $0x28] sm:$0xff]  ;;  %v6012_v63 = vld [vmem:[#allocation12 + $0x22c] ss:$12 sps:$4 sm:$0xff]  }
 0x1da   : > { %5504 = vmatpush3.bf16.msra.mxu1 %v6004_v9  ;;  %v1036_v30 = vor.u32 %v1034_v19, %v1033_v18  ;;  %v1044_v31 = vrot.slane %v1033_v18, 4  ;;  %v1049_v32 = vrot.slane %v1047_v20, 7  ;;  %2051 = vmatprep.subr.bf16.mxu0 %v6002_v14  ;;  %v710_v40 = vmax.f32 %v670_v25, 0.0  ;;  %v6014_v5 = vld [vmem:[#allocation12 + $0x218] ss:$12 sps:$4 sm:$0xff]  }
 0x1db   : > { %5505 = vmatprep.subr.bf16.mxu1 %v6008_v15  ;;  %v5433_v37 = vpack.c.bf16 %v707_v24, %v706_v21  ;;  %v711_v41 = vmax.f32 %v672_v26, 0.0  ;;  %v1108_v6 = vld [vmem:[#allocation2 + $0x38] sm:$0x11] }
 0x1dc   : > { %v1172_v42 = vsel %vm6986_vm1, %v1036_v30, %v1171_v23  ;;  %v1178_v43 = vsel %vm6960_vm9, %v1044_v31, %v1177_v0  ;;  %v1052_v44 = vor.u32 %v1050_v34, %v1049_v32  ;;  %v1060_v45 = vrot.slane %v1049_v32, 4  ;;  %v6018_v10 = vld [vmem:[#allocation12 + $0x2f0] ss:$12 sps:$4 sm:$0xff]   ;;  %v6010_v15 = vld [vmem:[#allocation12 + $0x228] ss:$12 sps:$4 sm:$0xff]   ;;  %v1114_v0 = vld [vmem:[#allocation2 + $0x48] sm:$0xff] }
 0x1dd   : > { %1173 = vst [vmem:[#allocation2 + $0xe0] sm:$0xff] %v1172_v42  ;;  %1179 = vst [vmem:[#allocation2 + $0xf0] sm:$0x11] %v1178_v43  ;;  %v942_v46 = vshrl.u32 %v5433_v37, 16  ;;  %v945_v48 = vshll.u32 %v5433_v37, 16  ;;  %v5435_v50 = vpack.c.bf16 %v711_v41, %v710_v40  ;;  %v675_v54 = vpop.f32.mrb[20].mxu0  ;;  %2052 = vmatpush1.bf16.msra.mxu0 %v6000_v27  ;;  %v5071_v38 = vcombine.high %v7109_v49, %v1172_v42 }
 0x1de   : > { %5506 = vmatpush3.bf16.msra.mxu1 %v6009_v28  ;;  %v1184_v56 = vsel %vm6986_vm1, %v1052_v44, %v1183_v47  ;;  %v1190_v57 = vsel %vm6960_vm9, %v1060_v45, %v1189_v36  ;;  %v676_v60 = vadd.f32 %v675_v54, %v7098_v59  ;;  %v677_v61 = vpop.f32.mrb[21].mxu0  ;;  %2053 = vmatprep.subr.bf16.mxu0 %v6007_v35  ;;  %v1120_v16 = vld [vmem:[#allocation2 + $0x58] sm:$0x11]  ;;  %v6015_v31 = vld [vmem:[#allocation12 + $0x240] ss:$12 sps:$4 sm:$0xff]  }
 0x1df   : > { %v5070_v62 = vcombine.low %v7109_v49, %v1172_v42  ;;  %1185 = vst [vmem:[#allocation2 + $0x100] sm:$0xff] %v1184_v56  ;;  %1191 = vst [vmem:[#allocation2 + $0x110] sm:$0x11] %v1190_v57  ;;  %v944_v1 = vrot.slane %v942_v46, 7  ;;  %v958_v2 = vshrl.u32 %v5435_v50, 16  ;;  %v961_v53 = vshll.u32 %v5435_v50, 16  ;;  %2023 = vmatprep.mubr.bf16.mxu0 %v5071_v38  ;;  %2174 = vmatprep.mubr.bf16.mxu1 %v5071_v38 }
 0x1e0   : > { %v678_v3 = vadd.f32 %v677_v61, %v7101_v52  ;;  %v679_v4 = vpop.f32.mrb[22].mxu0  ;;  %v714_v7 = vmax.f32 %v676_v60, 0.0  ;;  %v5075_v8 = vcombine.high %v1184_v56, %v7066_v33  ;;  %5507 = vmatprep.subr.bf16.mxu1 %v6013_v55  ;;  %v6017_v19 = vld [vmem:[#allocation12 + $0x244] ss:$12 sps:$4 sm:$0xff]   ;;  %v5074_v32 = vcombine.low %v1184_v56, %v7066_v33  ;;  %v6021_v41 = vld [vmem:[#allocation12 + $0x25c] ss:$12 sps:$4 sm:$0xff]  }
 0x1e1   : > { %2024 = vmatmul.mubr.bf16.gmra.mrb[44].mxu0 %v5070_v62  ;;  %2175 = vmatmul.mubr.bf16.gmra.mrb[12].mxu1 %v5070_v62  ;;  %v680_v49 = vadd.f32 %v679_v4, %v7098_v59  ;;  %v681_v9 = vpop.f32.mrb[23].mxu0  ;;  %v947_v11 = vor.u32 %v945_v48, %v944_v1  ;;  %v949_v12 = vrot.slane %v944_v1, 4  ;;  %v960_v13 = vrot.slane %v958_v2, 7  ;;  %v6022_v24 = vld [vmem:[#allocation12 + $0x230] ss:$12 sps:$4 sm:$0xff]   ;;  %v1126_v54 = vld [vmem:[#allocation2 + $0x68] sm:$0xff] }
 0x1e2   : > { %v715_v14 = vmax.f32 %v678_v3, 0.0  ;;  %2054 = vmatpush1.bf16.msra.mxu0 %v6005_v39  ;;  %2033 = vmatprep.mubr.bf16.mxu0 %v5075_v8  ;;  %v682_v18 = vadd.f32 %v681_v9, %v7101_v52  ;;  %v6028_v44 = vld [vmem:[#allocation12 + $0x304] ss:$12 sps:$4 sm:$0xff]  }
 0x1e3   : > { %2182 = vmatprep.mubr.bf16.mxu1 %v5075_v8  ;;  %v718_v17 = vmax.f32 %v680_v49, 0.0  ;;  %v1103_v20 = vsel %vm6986_vm1, %v947_v11, %v1102_v58  ;;  %v1109_v21 = vsel %vm6960_vm9, %v949_v12, %v1108_v6  ;;  %v963_v22 = vor.u32 %v961_v53, %v960_v13  ;;  %2055 = vmatprep.subr.bf16.mxu0 %v6012_v63  ;;  %v1132_v38 = vld [vmem:[#allocation2 + $0x78] sm:$0x11]  ;;  %v6019_v56 = vld [vmem:[#allocation12 + $0x258] ss:$12 sps:$4 sm:$0xff]  }
 0x1e4   : > { %v965_v23 = vrot.slane %v960_v13, 4  ;;  %5508 = vmatpush3.bf16.msra.mxu1 %v6014_v5  ;;  %1104 = vst [vmem:[#allocation2 + $0x28] sm:$0xff] %v1103_v20  ;;  %1110 = vst [vmem:[#allocation2 + $0x38] sm:$0x11] %v1109_v21  ;;  %v5437_v25 = vpack.c.bf16 %v715_v14, %v714_v7  ;;  %v719_v26 = vmax.f32 %v682_v18, 0.0  ;;  %v5061_v34 = vcombine.high %v7066_v33, %v1103_v20  ;;  %v1138_v1 = vld [vmem:[#allocation2 + $0x88] sm:$0xff] }
 0x1e5   : > { %5509 = vmatprep.subr.bf16.mxu1 %v6018_v10  ;;  %v7139_v27 = vsel %vm6986_vm1, %v963_v22, %v1114_v0  ;;  %v685_v30 = vpop.f32.mrb[24].mxu0  ;;  %v6025_v63 = vld [vmem:[#allocation12 + $0x274] ss:$12 sps:$4 sm:$0xff]   ;;  %v7151_v4 = vcombine.low %v7066_v33, %v1103_v20  ;;  %v6023_v9 = vld [vmem:[#allocation12 + $0x270] ss:$12 sps:$4 sm:$0xff]  }
 0x1e6   : > { %v1121_v28 = vsel %vm6960_vm9, %v965_v23, %v1120_v16  ;;  %2056 = vmatpush1.bf16.msra.mxu0 %v6010_v15  ;;  %1116 = vst [vmem:[#allocation2 + $0x48] sm:$0xff] %v7139_v27  ;;  %v974_v35 = vshrl.u32 %v5437_v25, 16  ;;  %v977_v47 = vshll.u32 %v5437_v25, 16  ;;  %v5439_v36 = vpack.c.bf16 %v719_v26, %v718_v17  ;;  %v687_v40 = vpop.f32.mrb[25].mxu0  ;;  %v1144_v2 = vld [vmem:[#allocation2 + $0x98] sm:$0x11] }
 0x1e7   : > { %1122 = vst [vmem:[#allocation2 + $0x58] sm:$0x11] %v1121_v28  ;;  %v686_v37 = vadd.f32 %v685_v30, %v7098_v59  ;;  %2057 = vmatprep.subr.bf16.mxu0 %v6017_v19  ;;  %v688_v42 = vadd.f32 %v687_v40, %v7101_v52  ;;  %v689_v43 = vpop.f32.mrb[26].mxu0  ;;  %v6026_v14 = vld [vmem:[#allocation12 + $0x300] ss:$12 sps:$4 sm:$0xff]  }
 0x1e8   : > { %5510 = vmatpush3.bf16.msra.mxu1 %v6022_v24  ;;  %v976_v45 = vrot.slane %v974_v35, 7  ;;  %v990_v39 = vshrl.u32 %v5439_v36, 16  ;;  %v993_v46 = vshll.u32 %v5439_v36, 16  ;;  %v691_v50 = vpop.f32.mrb[27].mxu0  ;;  %v690_v57 = vadd.f32 %v689_v43, %v7098_v59  ;;  %v6031_v19 = vld [vmem:[#allocation12 + $0x28c] ss:$12 sps:$4 sm:$0xff]  }
 0x1e9   : > { %v722_v48 = vmax.f32 %v686_v37, 0.0  ;;  %2034 = vmatmul.mubr.bf16.gmra.mrb[48].mxu0 %v5074_v32  ;;  %2183 = vmatmul.mubr.bf16.gmra.mrb[16].mxu1 %v5074_v32  ;;  %v723_v55 = vmax.f32 %v688_v42, 0.0  ;;  %v692_v58 = vadd.f32 %v691_v50, %v7101_v52  ;;  %v6034_v20 = vld [vmem:[#allocation12 + $0x31c] ss:$12 sps:$4 sm:$0xff]   ;;  %v6032_v28 = vld [vmem:[#allocation12 + $0x318] ss:$12 sps:$4 sm:$0xff]  }
 0x1ea   : > { %2058 = vmatpush1.bf16.msra.mxu0 %v6015_v31  ;;  %2073 = vmatprep.mubr.bf16.mxu0 %v5061_v34  ;;  %v979_v60 = vor.u32 %v977_v47, %v976_v45  ;;  %v981_v61 = vrot.slane %v976_v45, 4  ;;  %v992_v62 = vrot.slane %v990_v39, 7  ;;  %v726_v3 = vmax.f32 %v690_v57, 0.0  ;;  %v6029_v26 = vld [vmem:[#allocation12 + $0x288] ss:$12 sps:$4 sm:$0xff]   ;;  %v1150_v31 = vld [vmem:[#allocation2 + $0xa8] sm:$0xff] }
 0x1eb   : > { %2059 = vmatprep.subr.bf16.mxu0 %v6021_v41  ;;  %2223 = vmatprep.mubr.bf16.mxu1 %v5061_v34  ;;  %v5441_v53 = vpack.c.bf16 %v723_v55, %v722_v48  ;;  %v727_v5 = vmax.f32 %v692_v58, 0.0  ;;  %v1156_v32 = vld [vmem:[#allocation2 + $0xb8] sm:$0x11]  ;;  %v1162_v42 = vld [vmem:[#allocation2 + $0xc8] sm:$0xff] }
 0x1ec   : > { %3330 = vmatprep.subr.bf16.mxu1 %v6028_v44  ;;  %v1127_v6 = vsel %vm6986_vm1, %v979_v60, %v1126_v54  ;;  %v1133_v7 = vsel %vm6960_vm9, %v981_v61, %v1132_v38  ;;  %v995_v8 = vor.u32 %v993_v46, %v992_v62  ;;  %v997_v49 = vrot.slane %v992_v62, 4  ;;  %v6037_v41 = vld [vmem:[#allocation12 + $0x2a4] ss:$12 sps:$4 sm:$0xff]   ;;  %v6040_v39 = vld [vmem:[#allocation12 + $0x334] ss:$12 sps:$4 sm:$0xff]  }
 0x1ed   : > { %1128 = vst [vmem:[#allocation2 + $0x68] sm:$0xff] %v1127_v6  ;;  %1134 = vst [vmem:[#allocation2 + $0x78] sm:$0x11] %v1133_v7  ;;  %v1006_v10 = vshrl.u32 %v5441_v53, 16  ;;  %v1009_v11 = vshll.u32 %v5441_v53, 16  ;;  %v5443_v12 = vpack.c.bf16 %v727_v5, %v726_v3  ;;  %v695_v13 = vpop.f32.mrb[28].mxu0  ;;  %v7158_v15 = vcombine.high %v7139_v27, %v1127_v6 }
 0x1ee   : > { %2060 = vmatpush1.bf16.msra.mxu0 %v6019_v56  ;;  %v1139_v0 = vsel %vm6986_vm1, %v995_v8, %v1138_v1  ;;  %v1145_v16 = vsel %vm6960_vm9, %v997_v49, %v1144_v2  ;;  %v696_v17 = vadd.f32 %v695_v13, %v7098_v59  ;;  %v697_v18 = vpop.f32.mrb[29].mxu0  ;;  %v7166_v21 = vcombine.low %v7139_v27, %v1127_v6  ;;  %v1168_v43 = vld [vmem:[#allocation2 + $0xd8] sm:$0x11]  ;;  %v6035_v58 = vld [vmem:[#allocation12 + $0x2a0] ss:$12 sps:$4 sm:$0xff]  }
 0x1ef   : > { %2061 = vmatprep.subr.bf16.mxu0 %v6025_v63  ;;  %1140 = vst [vmem:[#allocation2 + $0x88] sm:$0xff] %v1139_v0  ;;  %1146 = vst [vmem:[#allocation2 + $0x98] sm:$0x11] %v1145_v16  ;;  %v1008_v22 = vrot.slane %v1006_v10, 7  ;;  %v1022_v23 = vshrl.u32 %v5443_v12, 16  ;;  %v1025_v24 = vshll.u32 %v5443_v12, 16  ;;  %v698_v25 = vadd.f32 %v697_v18, %v7101_v52 }
 0x1f0   : > { %v699_v30 = vpop.f32.mrb[30].mxu0  ;;  %v730_v34 = vmax.f32 %v696_v17, 0.0  ;;  %v6038_v60 = vld [vmem:[#allocation12 + $0x330] ss:$12 sps:$4 sm:$0xff]   ;;  %v6046_v2 = vld [vmem:[#allocation12 + $0x34c] ss:$12 sps:$4 sm:$0xff]  }
 0x1f1   : > { %2224 = vmatmul.mubr.bf16.vlgmr.msra.gmra.mrb[20].mxu1 %v7151_v4  ;;  %v700_v35 = vadd.f32 %v699_v30, %v7098_v59  ;;  %v701_v47 = vpop.f32.mrb[31].mxu0  ;;  %v1011_v27 = vor.u32 %v1009_v11, %v1008_v22  ;;  %v1013_v36 = vrot.slane %v1008_v22, 4  ;;  %v1024_v37 = vrot.slane %v1022_v23, 7  ;;  %v6043_v1 = vld [vmem:[#allocation12 + $0x2bc] ss:$12 sps:$4 sm:$0xff]   ;;  %v1174_v8 = vld [vmem:[#allocation2 + $0xe8] sm:$0xff] }
 0x1f2   : > { %v731_v40 = vmax.f32 %v698_v25, 0.0  ;;  %2062 = vmatpush1.bf16.msra.mxu0 %v6023_v9  ;;  %3331 = vmatpush1.bf16.msra.mxu1 %v6026_v14  ;;  %v702_v45 = vadd.f32 %v701_v47, %v7101_v52  ;;  %v6041_v53 = vld [vmem:[#allocation12 + $0x2b8] ss:$12 sps:$4 sm:$0xff]   ;;  %v6044_v7 = vld [vmem:[#allocation12 + $0x348] ss:$12 sps:$4 sm:$0xff]   ;;  %v2330_v17 = vshrl.u32 %v7066_v33, 16 }
 0x1f3   : > { %2229 = vmatprep.mubr.bf16.mxu1 %v7158_v15  ;;  %2063 = vmatprep.subr.bf16.mxu0 %v6031_v19  ;;  %v734_v44 = vmax.f32 %v700_v35, 0.0  ;;  %v1151_v59 = vsel %vm6986_vm1, %v1011_v27, %v1150_v31  ;;  %v1157_v46 = vsel %vm6960_vm9, %v1013_v36, %v1156_v32  ;;  %v1027_v48 = vor.u32 %v1025_v24, %v1024_v37  ;;  %v1180_v49 = vld [vmem:[#allocation2 + $0xf8] sm:$0x11]  ;;  %v2290_v14 = vld [vmem:[#allocation2 + $0x20] sm:$0xff]  ;;  %v6050_v25 = vld [vmem:[#allocation12 + $0x360] ss:$12 sps:$4 sm:$0xff]  }
 0x1f4   : > { %v1029_v50 = vrot.slane %v1024_v37, 4  ;;  %3332 = vmatprep.subr.bf16.mxu1 %v6034_v20  ;;  %1152 = vst [vmem:[#allocation2 + $0xa8] sm:$0xff] %v1151_v59  ;;  %1158 = vst [vmem:[#allocation2 + $0xb8] sm:$0x11] %v1157_v46  ;;  %v5445_v54 = vpack.c.bf16 %v731_v40, %v730_v34  ;;  %v735_v38 = vmax.f32 %v702_v45, 0.0  ;;  %v7177_v55 = vcombine.high %v1139_v0, %v1151_v59 }
 0x1f5   : > { %v7179_v56 = vcombine.low %v1139_v0, %v1151_v59  ;;  %v1163_v52 = vsel %vm6986_vm1, %v1027_v48, %v1162_v42  ;;  %v6049_v9 = vld [vmem:[#allocation12 + $0x2d4] ss:$12 sps:$4 sm:$0xff]   ;;  %v6052_v13 = vld [vmem:[#allocation12 + $0x364] ss:$12 sps:$4 sm:$0xff]   ;;  %v2333_v18 = vshll.u32 %v7066_v33, 16  ;;  %v2358_v30 = vshrl.u32 %v2290_v14, 16 }
 0x1f6   : > { %v1169_v57 = vsel %vm6960_vm9, %v1029_v50, %v1168_v43  ;;  %2064 = vmatpush1.bf16.msra.mxu0 %v6029_v26  ;;  %3333 = vmatpush1.bf16.msra.mxu1 %v6032_v28  ;;  %1164 = vst [vmem:[#allocation2 + $0xc8] sm:$0xff] %v1163_v52  ;;  %v1038_v61 = vshrl.u32 %v5445_v54, 16  ;;  %v1041_v62 = vshll.u32 %v5445_v54, 16  ;;  %v5447_v63 = vpack.c.bf16 %v735_v38, %v734_v44  ;;  %v1186_v0 = vld [vmem:[#allocation2 + $0x108] sm:$0xff]  ;;  %v1192_v16 = vld [vmem:[#allocation2 + $0x118] sm:$0x11] }
 0x1f7   : > { %1170 = vst [vmem:[#allocation2 + $0xd8] sm:$0x11] %v1169_v57  ;;  %2065 = vmatprep.subr.bf16.mxu0 %v6037_v41  ;;  %3334 = vmatprep.subr.bf16.mxu1 %v6040_v39  ;;  %v6047_v24 = vld [vmem:[#allocation12 + $0x2d0] ss:$12 sps:$4 sm:$0xff]   ;;  %v2361_v31 = vshll.u32 %v2290_v14, 16  ;;  %v2332_v27 = vrot.slane %v2330_v17, 4 }
 0x1f8   : > { %v1040_v3 = vrot.slane %v1038_v61, 7  ;;  %v1054_v5 = vshrl.u32 %v5447_v63, 16  ;;  %v1057_v6 = vshll.u32 %v5447_v63, 16  ;;  %v6055_v35 = vld [vmem:[#allocation12 + $0x2ec] ss:$12 sps:$4 sm:$0xff]   ;;  %v2335_v36 = vrot.slane %v2333_v18, 5 }
 0x1f9   : > { %2230 = vmatmul.mubr.bf16.gmra.mrb[24].mxu1 %v7166_v21  ;;  %v6058_v47 = vld [vmem:[#allocation12 + $0x37c] ss:$12 sps:$4 sm:$0xff]   ;;  %v6056_v40 = vld [vmem:[#allocation12 + $0x378] ss:$12 sps:$4 sm:$0xff]   ;;  %v2360_v41 = vrot.slane %v2358_v30, 4  ;;  %v2363_v51 = vrot.slane %v2361_v31, 5 }
 0x1fa   : > { %2066 = vmatpush1.bf16.msra.mxu0 %v6035_v58  ;;  %3335 = vmatpush1.bf16.msra.mxu1 %v6038_v60  ;;  %v1043_v10 = vor.u32 %v1041_v62, %v1040_v3  ;;  %v1045_v11 = vrot.slane %v1040_v3, 4  ;;  %v1056_v12 = vrot.slane %v1054_v5, 7  ;;  %v6053_v37 = vld [vmem:[#allocation12 + $0x2e8] ss:$12 sps:$4 sm:$0xff]   ;;  %v6059_v45 = vld [vmem:[#allocation12 + $0x390] ss:$12 sps:$4 sm:$0xff]   ;;  %v2336_v39 = vor.u32 %v2335_v36, %v2332_v27 }
 0x1fb   : > { %2067 = vmatprep.subr.bf16.mxu0 %v6043_v1  ;;  %3336 = vmatprep.subr.bf16.mxu1 %v6046_v2  ;;  %v6068_v42 = vld [vmem:[#allocation12 + $0x3c8] ss:$12 sps:$4 sm:$0xff]   ;;  %v2364_v46 = vor.u32 %v2363_v51, %v2360_v41  ;;  %v6064_v48 = vld [vmem:[#allocation12 + $0x3ac] ss:$12 sps:$4 sm:$0xff]   ;;  %v6067_v62 = vld [vmem:[#allocation12 + $0x3c4] ss:$12 sps:$4 sm:$0xff]  }
 0x1fc   : > { %2237 = vmatprep.mubr.bf16.mxu1 %v7177_v55  ;;  %v1175_v19 = vsel %vm6986_vm1, %v1043_v10, %v1174_v8  ;;  %v1181_v20 = vsel %vm6960_vm9, %v1045_v11, %v1180_v49  ;;  %v1059_v22 = vor.u32 %v1057_v6, %v1056_v12  ;;  %v1061_v23 = vrot.slane %v1056_v12, 4  ;;  %v2288_v43 = vld [vmem:[#allocation2 + $0x10] sm:$0x11]  ;;  %v2294_v6 = vld [vmem:[#allocation2 + $0x40] sm:$0xff]  ;;  %v6087_v36 = vld [vmem:[#allocation12 + $0x424] ss:$12 sps:$4 sm:$0xff]  }
 0x1fd   : > { %1176 = vst [vmem:[#allocation2 + $0xe8] sm:$0xff] %v1175_v19  ;;  %1182 = vst [vmem:[#allocation2 + $0xf8] sm:$0x11] %v1181_v20  ;;  %v7193_v26 = vcombine.high %v1163_v52, %v1175_v19  ;;  %v7195_v28 = vcombine.low %v1163_v52, %v1175_v19  ;;  %v2292_v44 = vld [vmem:[#allocation2 + $0x30] sm:$0x11]  ;;  %v2339_v59 = vshll.u32 %v2288_v43, 16 }
 0x1fe   : > { %2068 = vmatpush1.bf16.msra.mxu0 %v6041_v53  ;;  %3337 = vmatpush1.bf16.msra.mxu1 %v6044_v7  ;;  %v1187_v32 = vsel %vm6986_vm1, %v1059_v22, %v1186_v0  ;;  %v1193_v34 = vsel %vm6960_vm9, %v1061_v23, %v1192_v16  ;;  %v6069_v54 = vld [vmem:[#allocation12 + $0x308] ss:$12 sps:$4 sm:$0xff]   ;;  %v2367_v38 = vshll.u32 %v2292_v44, 16  ;;  %v6073_v52 = vld [vmem:[#allocation12 + $0x3e0] ss:$12 sps:$4 sm:$0xff]   ;;  %v7209_v58 = vrot.slane %v2336_v39, 4 }
 0x1ff   : > { %2069 = vmatprep.subr.bf16.mxu0 %v6049_v9  ;;  %3338 = vmatprep.subr.bf16.mxu1 %v6052_v13  ;;  %1188 = vst [vmem:[#allocation2 + $0x108] sm:$0xff] %v1187_v32  ;;  %1194 = vst [vmem:[#allocation2 + $0x118] sm:$0x11] %v1193_v34  ;;  %v7204_v50 = vcombine.high %v1187_v32, %v7066_v33  ;;  %v6062_v57 = vld [vmem:[#allocation12 + $0x3a8] ss:$12 sps:$4 sm:$0xff]   ;;  %v2341_v60 = vrot.slane %v2339_v59, 5 }
 0x200   : > { %v2365_v61 = vrot.slane %v2364_v46, 4  ;;  %v6074_v1 = vld [vmem:[#allocation12 + $0x320] ss:$12 sps:$4 sm:$0xff]   ;;  %v6072_v5 = vld [vmem:[#allocation12 + $0x3dc] ss:$12 sps:$4 sm:$0xff]   ;;  %v2386_v11 = vshrl.u32 %v2294_v6, 16 }
 0x201   : > { %2238 = vmatmul.mubr.bf16.gmra.mrb[28].mxu1 %v7179_v56  ;;  %v6065_v2 = vld [vmem:[#allocation12 + $0x3c0] ss:$12 sps:$4 sm:$0xff]   ;;  %v7223_v53 = vsel %vm7213_vm4, %v7209_v58, %v2341_v60  ;;  %v6078_v7 = vld [vmem:[#allocation12 + $0x3f8] ss:$12 sps:$4 sm:$0xff]   ;;  %v6083_v9 = vld [vmem:[#allocation12 + $0x410] ss:$12 sps:$4 sm:$0xff]  }
 0x202   : > { %2070 = vmatpush1.bf16.msra.mxu0 %v6047_v24  ;;  %3339 = vmatpush1.bf16.msra.mxu1 %v6050_v25  ;;  %v6070_v8 = vld [vmem:[#allocation12 + $0x3d8] ss:$12 sps:$4 sm:$0xff]   ;;  %v2389_v12 = vshll.u32 %v2294_v6, 16  ;;  %v6077_v13 = vld [vmem:[#allocation12 + $0x3f4] ss:$12 sps:$4 sm:$0xff]   ;;  %v2388_v18 = vrot.slane %v2386_v11, 4 }
 0x203   : > { %2071 = vmatprep.subr.bf16.mxu0 %v6055_v35  ;;  %3340 = vmatprep.subr.bf16.mxu1 %v6058_v47  ;;  %v6079_v49 = vld [vmem:[#allocation12 + $0x338] ss:$12 sps:$4 sm:$0xff]   ;;  %v7237_v0 = vld [vmem:[#allocation2 + $0x130] sm:$0x11]  ;;  %v6084_v22 = vld [vmem:[#allocation12 + $0x350] ss:$12 sps:$4 sm:$0xff]  }
 0x204   : > { %2245 = vmatprep.mubr.bf16.mxu1 %v7193_v26  ;;  %v2298_v10 = vld [vmem:[#allocation2 + $0x60] sm:$0xff]  ;;  %v2296_v17 = vld [vmem:[#allocation2 + $0x50] sm:$0x11]  ;;  %v2391_v19 = vrot.slane %v2389_v12, 5  ;;  %v3791_v31 = vrot.slane %v7237_v0, 5 }
 0x205   : > { %v2417_v14 = vshll.u32 %v2298_v10, 16  ;;  %v3672_v16 = vld [vmem:[#allocation2 + $0x120] sm:$0xee]  ;;  %v6080_v23 = vld [vmem:[#allocation12 + $0x408] ss:$12 sps:$4 sm:$0xff]  }
 0x206   : > { %2072 = vmatpush1.bf16.msra.mxu0 %v6053_v37  ;;  %3341 = vmatpush1.bf16.msra.mxu1 %v6056_v40  ;;  %v6082_v20 = vld [vmem:[#allocation12 + $0x40c] ss:$12 sps:$4 sm:$0xff]   ;;  %v6088_v24 = vld [vmem:[#allocation12 + $0x428] ss:$12 sps:$4 sm:$0xff]   ;;  %v5308_v30 = vrot.slane %v3672_v16, 9  ;;  %v2392_v40 = vor.u32 %v2391_v19, %v2388_v18 }
 0x207   : > { %3342 = vmatprep.subr.bf16.mxu1 %v6061_v29  ;;  %5541 = vmatprep.subr.bf16.mxu0 %v6068_v42  ;;  %v2300_v25 = vld [vmem:[#allocation2 + $0x70] sm:$0x11]  ;;  %v2419_v35 = vrot.slane %v2417_v14, 5  ;;  %v3658_v27 = vld [vmem:[#allocation2 + $0x40] sm:$0xee] }
 0x208   : > { %v6089_v37 = vld [vmem:[#allocation12 + $0x368] ss:$12 sps:$4 sm:$0xff]   ;;  %v3660_v41 = vld [vmem:[#allocation2 + $0x60] sm:$0xee]  ;;  %v2423_v51 = vshll.u32 %v2300_v25, 16  ;;  %v5294_v39 = vrot.slane %v3658_v27, 9  ;;  %v7256_v59 = vsel %vm7243_vm7, %v5308_v30, %v3791_v31 }
 0x209   : > { %2074 = vmatmul.mubr.bf16.vlgmr.msra.gmra.mrb[52].mxu0 %v7151_v4  ;;  %2246 = vmatmul.mubr.bf16.gmra.mrb[32].mxu1 %v7195_v28  ;;  %v2369_v4 = vrot.slane %v2367_v38, 5  ;;  %v7248_v29 = vld [vmem:[#allocation2 + $0x90] sm:$0x11]  ;;  %v2306_v42 = vld [vmem:[#allocation2 + $0xa0] sm:$0xff]  ;;  %v6269_v47 = vld [vmem:[#allocation12 + $0x814] ss:$12 sps:$4 sm:$0xff]  }
 0x20a   : > { %2082 = vmatprep.mubr.bf16.mxu0 %v7158_v15  ;;  %3343 = vmatpush1.bf16.msra.mxu1 %v6059_v45  ;;  %v7218_v15 = vcombine.low %v1187_v32, %v7066_v33  ;;  %v2395_v32 = vshll.u32 %v2296_v17, 16  ;;  %v6085_v43 = vld [vmem:[#allocation12 + $0x420] ss:$12 sps:$4 sm:$0xff]   ;;  %v7250_v44 = vld [vmem:[#allocation2 + $0x80] sm:$0xff] }
 0x20b   : > { %3344 = vmatprep.subr.bf16.mxu1 %v6064_v48  ;;  %2253 = vmatprep.mubr.bf16.mxu1 %v7204_v50  ;;  %v7227_v3 = vsel %vm7213_vm4, %v2365_v61, %v2369_v4  ;;  %v7252_v45 = vld [vmem:[#allocation2 + $0xb0] sm:$0x11]  ;;  %v3664_v60 = vld [vmem:[#allocation2 + $0xa0] sm:$0xee]  ;;  %v2470_v4 = vshrl.u32 %v2306_v42, 16 }
 0x20c   : > { %5542 = vmatpush3.bf16.msra.mxu0 %v6069_v54  ;;  %v7233_v33 = vcombine.high %v7223_v53, %v7227_v3  ;;  %v6092_v46 = vld [vmem:[#allocation12 + $0x43c] ss:$12 sps:$4 sm:$0xff]   ;;  %v6094_v48 = vld [vmem:[#allocation12 + $0x380] ss:$12 sps:$4 sm:$0xff]   ;;  %v7258_v54 = vrot.slane %v2395_v32, 5  ;;  %v5300_v14 = vrot.slane %v3664_v60, 9 }
 0x20d   : > { %5543 = vmatprep.subr.bf16.mxu0 %v6073_v52  ;;  %v3735_v52 = vrot.slane %v2296_v17, 5  ;;  %v6098_v61 = vld [vmem:[#allocation12 + $0x458] ss:$12 sps:$4 sm:$0xff]   ;;  %v7276_v18 = vld [vmem:[#allocation2 + $0x110] sm:$0x11] }
 0x20e   : > { %3345 = vmatpush1.bf16.msra.mxu1 %v6062_v57  ;;  %v5296_v57 = vrot.slane %v3660_v41, 9  ;;  %v3666_v6 = vld [vmem:[#allocation2 + $0xc0] sm:$0xee] }
 0x20f   : > { %3346 = vmatprep.subr.bf16.mxu1 %v6067_v62  ;;  %v7260_v62 = vrot.slane %v2392_v40, 4  ;;  %v6090_v11 = vld [vmem:[#allocation12 + $0x438] ss:$12 sps:$4 sm:$0xff]   ;;  %v5302_v31 = vrot.slane %v3666_v6, 9  ;;  %v6103_v32 = vld [vmem:[#allocation12 + $0x470] ss:$12 sps:$4 sm:$0xff]  }
 0x210   : > { %5544 = vmatpush3.bf16.msra.mxu0 %v6074_v1  ;;  %v2473_v1 = vshll.u32 %v2306_v42, 16  ;;  %v3668_v16 = vld [vmem:[#allocation2 + $0xe0] sm:$0xee]  ;;  %v3659_v42 = vld [vmem:[#allocation2 + $0x48] sm:$0xee] }
 0x211   : > { %2083 = vmatmul.mubr.bf16.gmra.mrb[36].mxu0 %v7166_v21  ;;  %2254 = vmatmul.mubr.bf16.gmra.mrb[36].mxu1 %v7218_v15  ;;  %v2414_v21 = vshrl.u32 %v2298_v10, 16  ;;  %v3736_v10 = vsel %vm7243_vm7, %v5294_v39, %v3735_v52  ;;  %v5304_v27 = vrot.slane %v3668_v16, 9  ;;  %v7301_v39 = vld [vmem:[#allocation2 + $0x78] sm:$0x11]  ;;  %v7311_v60 = vld [vmem:[#allocation2 + $0xe0] sm:$0xff] }
 0x212   : > { %2092 = vmatprep.mubr.bf16.mxu0 %v7177_v55  ;;  %3347 = vmatpush1.bf16.msra.mxu1 %v6065_v2  ;;  %v6075_v55 = vld [vmem:[#allocation12 + $0x3f0] ss:$12 sps:$4 sm:$0xff]   ;;  %v7262_v2 = vld [vmem:[#allocation2 + $0xd0] sm:$0x11]  ;;  %v7286_v30 = vrot.slane %v2473_v1, 5 }
 0x213   : > { %3362 = vmatprep.mubr.bf16.mxu1 %v7233_v33  ;;  %3348 = vmatprep.subr.bf16.mxu1 %v6072_v5  ;;  %v2416_v34 = vrot.slane %v2414_v21, 4  ;;  %v3743_v5 = vrot.slane %v2300_v25, 5  ;;  %v3751_v21 = vrot.slane %v7248_v29, 5  ;;  %v7284_v25 = vrot.slane %v2470_v4, 4  ;;  %v6114_v52 = vld [vmem:[#allocation12 + $0x548] ss:$12 sps:$4 sm:$0xff]  }
 0x214   : > { %5545 = vmatprep.subr.bf16.mxu0 %v6078_v7  ;;  %v7264_v7 = vrot.slane %v2423_v51, 5  ;;  %v3783_v51 = vrot.slane %v7276_v18, 5  ;;  %v3663_v6 = vld [vmem:[#allocation2 + $0x88] sm:$0xee] }
 0x215   : > { %5546 = vmatpush3.bf16.msra.mxu0 %v6079_v49  ;;  %v2420_v38 = vor.u32 %v2419_v35, %v2416_v34  ;;  %v2445_v49 = vshll.u32 %v7250_v44, 16  ;;  %v3744_v12 = vsel %vm7243_vm7, %v5296_v57, %v3743_v5  ;;  %v3767_v35 = vrot.slane %v7262_v2, 5 }
 0x216   : > { %3349 = vmatpush1.bf16.msra.mxu1 %v6070_v8  ;;  %5547 = vmatprep.subr.bf16.mxu0 %v6083_v9  ;;  %v2442_v8 = vshrl.u32 %v7250_v44, 16  ;;  %v7268_v9 = vld [vmem:[#allocation2 + $0xf0] sm:$0x11]  ;;  %v7278_v19 = vcombine.high %v3736_v10, %v3744_v12  ;;  %v6104_v44 = vld [vmem:[#allocation12 + $0x3b0] ss:$12 sps:$4 sm:$0xff]  }
 0x217   : > { %3350 = vmatprep.subr.bf16.mxu1 %v6077_v13  ;;  %v2421_v17 = vrot.slane %v2420_v38, 4  ;;  %v3661_v38 = vld [vmem:[#allocation2 + $0x68] sm:$0xee] }
 0x218   : > { %v7309_v57 = vrot.slane %v2442_v8, 4 }
 0x219   : > { %2093 = vmatmul.mubr.bf16.gmra.mrb[40].mxu0 %v7179_v56  ;;  %v6093_v56 = vld [vmem:[#allocation12 + $0x440] ss:$12 sps:$4 sm:$0xff]  }
 0x21a   : > { %2102 = vmatprep.mubr.bf16.mxu0 %v7193_v26  ;;  %3351 = vmatpush1.bf16.msra.mxu1 %v6075_v55  ;;  %v3662_v26 = vld [vmem:[#allocation2 + $0x80] sm:$0xee]  ;;  %v6097_v55 = vld [vmem:[#allocation12 + $0x454] ss:$12 sps:$4 sm:$0xff]  }
 0x21b   : > { %3352 = vmatprep.subr.bf16.mxu1 %v6082_v20  ;;  %5548 = vmatpush3.bf16.msra.mxu0 %v6084_v22  ;;  %v5298_v13 = vrot.slane %v3662_v26, 9  ;;  %v7280_v20 = vcombine.low %v3736_v10, %v3744_v12  ;;  %v3759_v22 = vrot.slane %v7252_v45, 5  ;;  %v7303_v26 = vld [vmem:[#allocation2 + $0x98] sm:$0x11]  ;;  %v7321_v10 = vrot.slane %v2445_v49, 5 }
 0x21c   : > { %5549 = vmatprep.subr.bf16.mxu0 %v6088_v24  ;;  %v6099_v24 = vld [vmem:[#allocation12 + $0x398] ss:$12 sps:$4 sm:$0xff]   ;;  %v2476_v49 = vor.u32 %v7286_v30, %v7284_v25  ;;  %v3755_v25 = vrot.slane %v7303_v26, 5 }
 0x21d   : > { %v3760_v34 = vsel %vm7243_vm7, %v5300_v14, %v3759_v22  ;;  %v7334_v14 = vsel %vm7213_vm4, %v2421_v17, %v7264_v7  ;;  %v3667_v22 = vld [vmem:[#allocation2 + $0xc8] sm:$0xee]  ;;  %v7344_v7 = vld [vmem:[#allocation2 + $0xf8] sm:$0x11] }
 0x21e   : > { %3353 = vmatpush1.bf16.msra.mxu1 %v6080_v23  ;;  %v3670_v23 = vld [vmem:[#allocation2 + $0x100] sm:$0xee] }
 0x21f   : > { %3354 = vmatprep.subr.bf16.mxu1 %v6087_v36  ;;  %5550 = vmatpush3.bf16.msra.mxu0 %v6089_v37  ;;  %v6095_v36 = vld [vmem:[#allocation12 + $0x450] ss:$12 sps:$4 sm:$0xff]  }
 0x220   : > { %5551 = vmatprep.subr.bf16.mxu0 %v6093_v56  ;;  %v7294_v37 = vld [vmem:[#allocation2 + $0x58] sm:$0x11]  ;;  %v5306_v56 = vrot.slane %v3670_v23, 9  ;;  %v3669_v23 = vld [vmem:[#allocation2 + $0xe8] sm:$0xee] }
 0x221   : > { %2103 = vmatmul.mubr.bf16.gmra.mrb[44].mxu0 %v7195_v28  ;;  %v3752_v28 = vsel %vm7243_vm7, %v5298_v13, %v3751_v21  ;;  %v5295_v13 = vrot.slane %v3659_v42, 9  ;;  %v3665_v21 = vld [vmem:[#allocation2 + $0xa8] sm:$0xee]  ;;  %v3739_v16 = vrot.slane %v7294_v37, 5 }
 0x222   : > { %2112 = vmatprep.mubr.bf16.mxu0 %v7204_v50  ;;  %3355 = vmatpush1.bf16.msra.mxu1 %v6085_v43  ;;  %v3775_v50 = vrot.slane %v7268_v9, 5  ;;  %v7296_v40 = vcombine.high %v3752_v28, %v3760_v34  ;;  %v7298_v41 = vcombine.low %v3752_v28, %v3760_v34  ;;  %v6102_v43 = vld [vmem:[#allocation12 + $0x46c] ss:$12 sps:$4 sm:$0xff]   ;;  %v3784_v5 = vsel %vm7243_vm7, %v5306_v56, %v3783_v51  ;;  %v6107_v34 = vld [vmem:[#allocation12 + $0x484] ss:$12 sps:$4 sm:$0xff]  }
 0x223   : > { %3356 = vmatprep.subr.bf16.mxu1 %v6092_v46  ;;  %5552 = vmatpush3.bf16.msra.mxu0 %v6094_v48  ;;  %v3768_v46 = vsel %vm7243_vm7, %v5302_v31, %v3767_v35  ;;  %v7326_v8 = vcombine.high %v3784_v5, %v7256_v59  ;;  %v7329_v12 = vcombine.low %v3784_v5, %v7256_v59  ;;  %v6100_v59 = vld [vmem:[#allocation12 + $0x468] ss:$12 sps:$4 sm:$0xff]   ;;  %v2529_v28 = vshll.u32 %v7311_v60, 16 }
 0x224   : > { %5553 = vmatprep.subr.bf16.mxu0 %v6098_v61  ;;  %v3776_v48 = vsel %vm7243_vm7, %v5304_v27, %v3775_v50  ;;  %v7313_v61 = vld [vmem:[#allocation2 + $0xb8] sm:$0x11]  ;;  %v3747_v31 = vrot.slane %v7301_v39, 5  ;;  %v3740_v17 = vsel %vm7243_vm7, %v5295_v13, %v3739_v16  ;;  %v5301_v30 = vrot.slane %v3665_v21, 9  ;;  %v6110_v13 = vld [vmem:[#allocation12 + $0x49c] ss:$12 sps:$4 sm:$0xff]  }
 0x225   : > { %v7315_v4 = vcombine.high %v3768_v46, %v3776_v48  ;;  %v7317_v1 = vcombine.low %v3768_v46, %v3776_v48  ;;  %v5303_v27 = vrot.slane %v3667_v22, 9  ;;  %v2398_v5 = vsel %vm7213_vm4, %v7260_v62, %v7258_v54 }
 0x226   : > { %3357 = vmatpush1.bf16.msra.mxu1 %v6090_v11  ;;  %v7323_v11 = vld [vmem:[#allocation2 + $0xd8] sm:$0x11]  ;;  %v2479_v21 = vshll.u32 %v7252_v45, 16  ;;  %v2477_v62 = vrot.slane %v2476_v49, 4  ;;  %v2531_v45 = vrot.slane %v2529_v28, 5 }
 0x227   : > { %3358 = vmatprep.subr.bf16.mxu1 %v6097_v55  ;;  %5554 = vmatpush3.bf16.msra.mxu0 %v6099_v24  ;;  %v5297_v55 = vrot.slane %v3661_v38, 9  ;;  %v2526_v24 = vshrl.u32 %v7311_v60, 16  ;;  %v3771_v50 = vrot.slane %v7323_v11, 5  ;;  %v3779_v38 = vrot.slane %v7344_v7, 5  ;;  %v6105_v60 = vld [vmem:[#allocation12 + $0x480] ss:$12 sps:$4 sm:$0xff]  }
 0x228   : > { %5555 = vmatprep.subr.bf16.mxu0 %v6103_v32  ;;  %v5299_v32 = vrot.slane %v3663_v6, 9  ;;  %v2448_v6 = vor.u32 %v7321_v10, %v7309_v57  ;;  %v6119_v57 = vld [vmem:[#allocation12 + $0x560] ss:$12 sps:$4 sm:$0xff]  }
 0x229   : > { %2113 = vmatmul.mubr.bf16.gmra.mrb[48].mxu0 %v7218_v15  ;;  %v3763_v15 = vrot.slane %v7313_v61, 5  ;;  %v3748_v35 = vsel %vm7243_vm7, %v5297_v55, %v3747_v31  ;;  %v3772_v48 = vsel %vm7243_vm7, %v5303_v27, %v3771_v50  ;;  %v2528_v10 = vrot.slane %v2526_v24, 4  ;;  %v6108_v31 = vld [vmem:[#allocation12 + $0x498] ss:$12 sps:$4 sm:$0xff]   ;;  %v6111_v50 = vld [vmem:[#allocation12 + $0x4b0] ss:$12 sps:$4 sm:$0xff]  }
 0x22a   : > { %3359 = vmatpush1.bf16.msra.mxu1 %v6095_v36  ;;  %3520 = vmatprep.mubr.bf16.mxu0 %v7233_v33  ;;  %v5305_v33 = vrot.slane %v3669_v23, 9  ;;  %v2310_v36 = vld [vmem:[#allocation2 + $0xc0] sm:$0xff]  ;;  %v7353_v56 = vcombine.high %v3740_v17, %v3748_v35  ;;  %v7355_v51 = vcombine.low %v3740_v17, %v3748_v35  ;;  %v3756_v42 = vsel %vm7243_vm7, %v5299_v32, %v3755_v25  ;;  %v6115_v23 = vld [vmem:[#allocation12 + $0x488] ss:$12 sps:$4 sm:$0xff]   ;;  %v6120_v35 = vld [vmem:[#allocation12 + $0x4a0] ss:$12 sps:$4 sm:$0xff]  }
 0x22b   : > { %3360 = vmatprep.subr.bf16.mxu1 %v6102_v43  ;;  %5556 = vmatpush3.bf16.msra.mxu0 %v6104_v44  ;;  %v3764_v43 = vsel %vm7243_vm7, %v5301_v30, %v3763_v15  ;;  %v2498_v16 = vshrl.u32 %v2310_v36, 16  ;;  %v2501_v55 = vshll.u32 %v2310_v36, 16  ;;  %v2318_v32 = vld [vmem:[#allocation2 + $0x100] sm:$0xff]  ;;  %v6113_v17 = vld [vmem:[#allocation12 + $0x4b4] ss:$12 sps:$4 sm:$0xff]   ;;  %v2449_v25 = vrot.slane %v2448_v6, 4 }
 0x22c   : > { %5587 = vmatprep.subr.bf16.mxu0 %v6114_v52  ;;  %v7361_v44 = vcombine.high %v3756_v42, %v3764_v43  ;;  %v7363_v46 = vcombine.low %v3756_v42, %v3764_v43  ;;  %v5174_v52 = vcombine.low %v7223_v53, %v7227_v3  ;;  %v3780_v22 = vsel %vm7243_vm7, %v5305_v33, %v3779_v38  ;;  %v6118_v42 = vld [vmem:[#allocation12 + $0x4cc] ss:$12 sps:$4 sm:$0xff]  }
 0x22d   : > { %v5179_v53 = vcombine.high %v2398_v5, %v7334_v14  ;;  %v2451_v3 = vshll.u32 %v7248_v29, 16  ;;  %v7383_v54 = vcombine.low %v3772_v48, %v3780_v22  ;;  %v2481_v29 = vrot.slane %v2479_v21, 5 }
 0x22e   : > { %3361 = vmatpush1.bf16.msra.mxu1 %v6100_v59  ;;  %v7381_v59 = vcombine.high %v3772_v48, %v3780_v22  ;;  %v2500_v30 = vrot.slane %v2498_v16, 4  ;;  %v2503_v15 = vrot.slane %v2501_v55, 5  ;;  %v2532_v24 = vor.u32 %v2531_v45, %v2528_v10  ;;  %v2291_v55 = vld [vmem:[#allocation2 + $0x28] sm:$0xff] }
 0x22f   : > { %3409 = vmatprep.subr.bf16.mxu1 %v6107_v34  ;;  %v2453_v34 = vrot.slane %v2451_v3, 5  ;;  %v2482_v49 = vsel %vm7213_vm4, %v2477_v62, %v2481_v29  ;;  %v2554_v28 = vshrl.u32 %v2318_v32, 16  ;;  %v2557_v27 = vshll.u32 %v2318_v32, 16  ;;  %v6123_v22 = vld [vmem:[#allocation12 + $0x4e4] ss:$12 sps:$4 sm:$0xff]  }
 0x230   : > { %v5178_v33 = vcombine.low %v2398_v5, %v7334_v14  ;;  %v2504_v43 = vor.u32 %v2503_v15, %v2500_v30  ;;  %v2535_v48 = vshll.u32 %v7268_v9, 16  ;;  %v2533_v6 = vrot.slane %v2532_v24, 4  ;;  %v6116_v14 = vld [vmem:[#allocation12 + $0x4c8] ss:$12 sps:$4 sm:$0xff]   ;;  %v6129_v5 = vld [vmem:[#allocation12 + $0x590] ss:$12 sps:$4 sm:$0xff]  }
 0x231   : > { %3363 = vmatmul.mubr.bf16.vlgmr.msra.gmra.mrb[40].mxu1 %v5174_v52  ;;  %3521 = vmatmul.mubr.bf16.vlgmr.msra.gmra.mrb[56].mxu0 %v5174_v52  ;;  %v2454_v36 = vsel %vm7213_vm4, %v2449_v25, %v2453_v34  ;;  %v6124_v52 = vld [vmem:[#allocation12 + $0x578] ss:$12 sps:$4 sm:$0xff]   ;;  %v2556_v21 = vrot.slane %v2554_v28, 4  ;;  %v2559_v16 = vrot.slane %v2557_v27, 5  ;;  %v2375_v10 = vshll.u32 %v2291_v55, 16 }
 0x232   : > { %3371 = vmatprep.mubr.bf16.mxu1 %v5179_v53  ;;  %3410 = vmatpush1.bf16.msra.mxu1 %v6105_v60  ;;  %v5183_v38 = vcombine.high %v2454_v36, %v2482_v49  ;;  %v2507_v60 = vshll.u32 %v7262_v2, 16  ;;  %v2505_v9 = vrot.slane %v2504_v43, 4  ;;  %v2591_v2 = vshll.u32 %v7237_v0, 16  ;;  %v6121_v45 = vld [vmem:[#allocation12 + $0x4e0] ss:$12 sps:$4 sm:$0xff]  }
 0x233   : > { %3526 = vmatprep.mubr.bf16.mxu0 %v5179_v53  ;;  %3411 = vmatprep.subr.bf16.mxu1 %v6110_v13  ;;  %v6125_v13 = vld [vmem:[#allocation12 + $0x4b8] ss:$12 sps:$4 sm:$0xff]   ;;  %v2537_v53 = vrot.slane %v2535_v48, 5  ;;  %v2560_v62 = vor.u32 %v2559_v16, %v2556_v21  ;;  %v2563_v25 = vshll.u32 %v7276_v18, 16  ;;  %v6130_v0 = vld [vmem:[#allocation12 + $0x4d0] ss:$12 sps:$4 sm:$0xff]  }
 0x234   : > { %5588 = vmatpush3.bf16.msra.mxu0 %v6115_v23  ;;  %v2509_v3 = vrot.slane %v2507_v60, 5  ;;  %v2593_v30 = vrot.slane %v2591_v2, 5  ;;  %v6134_v15 = vld [vmem:[#allocation12 + $0x5a8] ss:$12 sps:$4 sm:$0xff]   ;;  %v2377_v24 = vrot.slane %v2375_v10, 5  ;;  %v2299_v27 = vld [vmem:[#allocation2 + $0x68] sm:$0xff] }
 0x235   : > { %5589 = vmatprep.subr.bf16.mxu0 %v6119_v57  ;;  %v2538_v23 = vsel %vm7213_vm4, %v2533_v6, %v2537_v53  ;;  %v2372_v57 = vshrl.u32 %v2291_v55, 16  ;;  %v2561_v34 = vrot.slane %v2560_v62, 4  ;;  %v6126_v28 = vld [vmem:[#allocation12 + $0x4f8] ss:$12 sps:$4 sm:$0xff]   ;;  %v7400_v18 = vld [vmem:[#allocation2 + $0x38] sm:$0x11] }
 0x236   : > { %3412 = vmatpush1.bf16.msra.mxu1 %v6108_v31  ;;  %v5182_v31 = vcombine.low %v2454_v36, %v2482_v49  ;;  %v2510_v32 = vsel %vm7213_vm4, %v2505_v9, %v2509_v3  ;;  %v7398_v49 = vld [vmem:[#allocation2 + $0x18] sm:$0x11]  ;;  %v2594_v36 = vsel %vm7213_vm4, %v7209_v58, %v2593_v30  ;;  %v2381_v48 = vshll.u32 %v7400_v18, 16  ;;  %v2295_v60 = vld [vmem:[#allocation2 + $0x48] sm:$0xff] }
 0x237   : > { %3413 = vmatprep.subr.bf16.mxu1 %v6113_v17  ;;  %v6128_v17 = vld [vmem:[#allocation12 + $0x4fc] ss:$12 sps:$4 sm:$0xff]   ;;  %v5187_v29 = vcombine.high %v2510_v32, %v2538_v23  ;;  %v2353_v43 = vshll.u32 %v7398_v49, 16  ;;  %v2428_v6 = vshrl.u32 %v2299_v27, 16  ;;  %v5186_v16 = vcombine.low %v2510_v32, %v2538_v23  ;;  %v6139_v55 = vld [vmem:[#allocation12 + $0x5c0] ss:$12 sps:$4 sm:$0xff]  }
 0x238   : > { %5590 = vmatpush3.bf16.msra.mxu0 %v6120_v35  ;;  %v2374_v35 = vrot.slane %v2372_v57, 4  ;;  %v6131_v21 = vld [vmem:[#allocation12 + $0x510] ss:$12 sps:$4 sm:$0xff]   ;;  %v2400_v9 = vshrl.u32 %v2295_v60, 16  ;;  %v2403_v53 = vshll.u32 %v2295_v60, 16  ;;  %v2383_v62 = vrot.slane %v2381_v48, 5 }
 0x239   : > { %3372 = vmatmul.mubr.bf16.gmra.mrb[44].mxu1 %v5178_v33  ;;  %3527 = vmatmul.mubr.bf16.gmra.mrb[60].mxu0 %v5178_v33  ;;  %v2565_v33 = vrot.slane %v2563_v25, 5  ;;  %v6140_v3 = vld [vmem:[#allocation12 + $0x500] ss:$12 sps:$4 sm:$0xff]   ;;  %v2430_v57 = vrot.slane %v2428_v6, 4  ;;  %v6143_v32 = vld [vmem:[#allocation12 + $0x544] ss:$12 sps:$4 sm:$0xff]  }
 0x23a   : > { %3381 = vmatprep.mubr.bf16.mxu1 %v5183_v38  ;;  %3414 = vmatpush1.bf16.msra.mxu1 %v6111_v50  ;;  %v6133_v50 = vld [vmem:[#allocation12 + $0x514] ss:$12 sps:$4 sm:$0xff]   ;;  %v2437_v30 = vshll.u32 %v7301_v39, 16  ;;  %v6149_v48 = vld [vmem:[#allocation12 + $0x5f0] ss:$12 sps:$4 sm:$0xff]   ;;  %v2409_v39 = vshll.u32 %v7294_v37, 16 }
 0x23b   : > { %3534 = vmatprep.mubr.bf16.mxu0 %v5183_v38  ;;  %3415 = vmatprep.subr.bf16.mxu1 %v6118_v42  ;;  %v6135_v42 = vld [vmem:[#allocation12 + $0x4e8] ss:$12 sps:$4 sm:$0xff]   ;;  %v2566_v38 = vsel %vm7213_vm4, %v2561_v34, %v2565_v33  ;;  %v2303_v23 = vld [vmem:[#allocation2 + $0x88] sm:$0xff] }
 0x23c   : > { %5591 = vmatprep.subr.bf16.mxu0 %v6124_v52  ;;  %v2378_v52 = vor.u32 %v2377_v24, %v2374_v35  ;;  %v2456_v35 = vshrl.u32 %v2303_v23, 16  ;;  %v2459_v24 = vshll.u32 %v2303_v23, 16  ;;  %v5190_v33 = vcombine.low %v2566_v38, %v2594_v36 }
 0x23d   : > { %5592 = vmatpush3.bf16.msra.mxu0 %v6125_v13  ;;  %v2431_v13 = vshll.u32 %v2299_v27, 16  ;;  %v2439_v6 = vrot.slane %v2437_v30, 5  ;;  %v6154_v30 = vld [vmem:[#allocation12 + $0x588] ss:$12 sps:$4 sm:$0xff]  }
 0x23e   : > { %3416 = vmatpush1.bf16.msra.mxu1 %v6116_v14  ;;  %5593 = vmatprep.subr.bf16.mxu0 %v6129_v5  ;;  %v6138_v14 = vld [vmem:[#allocation12 + $0x52c] ss:$12 sps:$4 sm:$0xff]   ;;  %v5191_v5 = vcombine.high %v2566_v38, %v2594_v36  ;;  %v2379_v2 = vrot.slane %v2378_v52, 4  ;;  %v2311_v36 = vld [vmem:[#allocation2 + $0xc8] sm:$0xff]  ;;  %v6150_v38 = vld [vmem:[#allocation12 + $0x530] ss:$12 sps:$4 sm:$0xff]  }
 0x23f   : > { %3417 = vmatprep.subr.bf16.mxu1 %v6123_v22  ;;  %v2355_v22 = vrot.slane %v2353_v43, 5  ;;  %v2433_v10 = vrot.slane %v2431_v13, 5  ;;  %v6148_v43 = vld [vmem:[#allocation12 + $0x55c] ss:$12 sps:$4 sm:$0xff]   ;;  %v2458_v13 = vrot.slane %v2456_v35, 4  ;;  %v2515_v23 = vshll.u32 %v2311_v36, 16 }
 0x240   : > { %v6161_v35 = vld [vmem:[#allocation12 + $0x608] ss:$12 sps:$4 sm:$0xff]  }
 0x241   : > { %3382 = vmatmul.mubr.bf16.gmra.mrb[48].mxu1 %v5182_v31  ;;  %3535 = vmatmul.mubr.bf16.gmra.mrb[64].mxu0 %v5182_v31  ;;  %v6144_v31 = vld [vmem:[#allocation12 + $0x5d8] ss:$12 sps:$4 sm:$0xff]   ;;  %v2356_v25 = vsel %vm7213_vm4, %v7209_v58, %v2355_v22  ;;  %v2434_v34 = vor.u32 %v2433_v10, %v2430_v57  ;;  %v2493_v57 = vshll.u32 %v7313_v61, 16  ;;  %v2512_v10 = vshrl.u32 %v2311_v36, 16 }
 0x242   : > { %3391 = vmatprep.mubr.bf16.mxu1 %v5187_v29  ;;  %3418 = vmatpush1.bf16.msra.mxu1 %v6121_v45  ;;  %v6136_v45 = vld [vmem:[#allocation12 + $0x528] ss:$12 sps:$4 sm:$0xff]   ;;  %v2315_v22 = vld [vmem:[#allocation2 + $0xe8] sm:$0xff] }
 0x243   : > { %3542 = vmatprep.mubr.bf16.mxu0 %v5187_v29  ;;  %3419 = vmatprep.subr.bf16.mxu1 %v6128_v17  ;;  %v2307_v17 = vld [vmem:[#allocation2 + $0xa8] sm:$0xff]  ;;  %v2402_v29 = vrot.slane %v2400_v9, 4  ;;  %v2435_v60 = vrot.slane %v2434_v34, 4  ;;  %v2411_v9 = vrot.slane %v2409_v39, 5 }
 0x244   : > { %5594 = vmatpush3.bf16.msra.mxu0 %v6130_v0  ;;  %v2405_v0 = vrot.slane %v2403_v53, 5  ;;  %v2484_v27 = vshrl.u32 %v2307_v17, 16  ;;  %v6160_v53 = vld [vmem:[#allocation12 + $0x6c8] ss:$12 sps:$4 sm:$0xff]  }
 0x245   : > { %5595 = vmatprep.subr.bf16.mxu0 %v6134_v15  ;;  %v2384_v15 = vsel %vm7213_vm4, %v2379_v2, %v2383_v62  ;;  %v2440_v2 = vsel %vm7213_vm4, %v2435_v60, %v2439_v6 }
 0x246   : > { %3420 = vmatpush1.bf16.msra.mxu1 %v6126_v28  ;;  %v6141_v28 = vld [vmem:[#allocation12 + $0x540] ss:$12 sps:$4 sm:$0xff]   ;;  %v5177_v58 = vcombine.high %v2356_v25, %v2384_v15  ;;  %v2406_v52 = vor.u32 %v2405_v0, %v2402_v29  ;;  %v7420_v0 = vcombine.low %v2356_v25, %v2384_v15 }
 0x247   : > { %3421 = vmatprep.subr.bf16.mxu1 %v6133_v50  ;;  %v2487_v50 = vshll.u32 %v2307_v17, 16  ;;  %v2543_v17 = vshll.u32 %v2315_v22, 16  ;;  %v6156_v29 = vld [vmem:[#allocation12 + $0x58c] ss:$12 sps:$4 sm:$0xff]  }
 0x248   : > { %5596 = vmatpush3.bf16.msra.mxu0 %v6135_v42  ;;  %v6145_v42 = vld [vmem:[#allocation12 + $0x518] ss:$12 sps:$4 sm:$0xff]   ;;  %v2407_v37 = vrot.slane %v2406_v52, 4 }
 0x249   : > { %3392 = vmatmul.mubr.bf16.gmra.mrb[52].mxu1 %v5186_v16  ;;  %3543 = vmatmul.mubr.bf16.gmra.mrb[68].mxu0 %v5186_v16  ;;  %v6146_v16 = vld [vmem:[#allocation12 + $0x558] ss:$12 sps:$4 sm:$0xff]   ;;  %v2545_v15 = vrot.slane %v2543_v17, 5 }
 0x24a   : > { %3401 = vmatprep.mubr.bf16.mxu1 %v5191_v5  ;;  %3422 = vmatpush1.bf16.msra.mxu1 %v6131_v21  ;;  %v2461_v21 = vrot.slane %v2459_v24, 5  ;;  %v6298_v52 = vld [vmem:[#allocation2] sm:$0xff] }
 0x24b   : > { %3550 = vmatprep.mubr.bf16.mxu0 %v5191_v5  ;;  %3423 = vmatprep.subr.bf16.mxu1 %v6138_v14  ;;  %v2486_v14 = vrot.slane %v2484_v27, 4  ;;  %v2489_v5 = vrot.slane %v2487_v50, 5  ;;  %v6165_v27 = vld [vmem:[#allocation12 + $0x6e0] ss:$12 sps:$4 sm:$0xff]   ;;  %v2514_v50 = vrot.slane %v2512_v10, 4  ;;  %v2596_v39 = vshrl.u32 %v6298_v52, 16 }
 0x24c   : > { %5597 = vmatprep.subr.bf16.mxu0 %v6139_v55  ;;  %v6153_v55 = vld [vmem:[#allocation12 + $0x574] ss:$12 sps:$4 sm:$0xff]   ;;  %v2462_v62 = vor.u32 %v2461_v21, %v2458_v13  ;;  %v2599_v60 = vshll.u32 %v6298_v52, 16  ;;  %v6170_v13 = vld [vmem:[#allocation12 + $0x6f8] ss:$12 sps:$4 sm:$0xff]   ;;  %v2521_v21 = vshll.u32 %v7323_v11, 16 }
 0x24d   : > { %5598 = vmatpush3.bf16.msra.mxu0 %v6140_v3  ;;  %v2465_v3 = vshll.u32 %v7303_v26, 16  ;;  %v2412_v26 = vsel %vm7213_vm4, %v2407_v37, %v2411_v9  ;;  %v6164_v37 = vld [vmem:[#allocation12 + $0x5bc] ss:$12 sps:$4 sm:$0xff]  }
 0x24e   : > { %3424 = vmatpush1.bf16.msra.mxu1 %v6136_v45  ;;  %5599 = vmatprep.subr.bf16.mxu0 %v6144_v31  ;;  %v6151_v45 = vld [vmem:[#allocation12 + $0x570] ss:$12 sps:$4 sm:$0xff]   ;;  %v2490_v31 = vor.u32 %v2489_v5, %v2486_v14  ;;  %v7424_v61 = vcombine.high %v2412_v26, %v2440_v2  ;;  %v2463_v24 = vrot.slane %v2462_v62, 4  ;;  %v6157_v5 = vld [vmem:[#allocation12 + $0x5a0] ss:$12 sps:$4 sm:$0xff]   ;;  %v7434_v9 = vcombine.low %v2412_v26, %v2440_v2 }
 0x24f   : > { %3425 = vmatprep.subr.bf16.mxu1 %v6143_v32  ;;  %v2540_v32 = vshrl.u32 %v2315_v22, 16  ;;  %v2467_v34 = vrot.slane %v2465_v3, 5  ;;  %v2598_v3 = vrot.slane %v2596_v39, 4  ;;  %v2523_v11 = vrot.slane %v2521_v21, 5  ;;  %v6169_v2 = vld [vmem:[#allocation12 + $0x5d4] ss:$12 sps:$4 sm:$0xff]  }
 0x250   : > { %v2601_v10 = vrot.slane %v2599_v60, 5  ;;  %v7440_v26 = vld [vmem:[#allocation2 + $0x138] sm:$0x11] }
 0x251   : > { %3402 = vmatmul.mubr.bf16.gmra.mrb[56].mxu1 %v5190_v33  ;;  %3551 = vmatmul.mubr.bf16.gmra.mrb[72].mxu0 %v5190_v33  ;;  %v2491_v33 = vrot.slane %v2490_v31, 4  ;;  %v2542_v25 = vrot.slane %v2540_v32, 4  ;;  %v2468_v6 = vsel %vm7213_vm4, %v2463_v24, %v2467_v34  ;;  %v7442_v34 = vld [vmem:[#allocation2 + $0x118] sm:$0x11]  ;;  %v2605_v24 = vshll.u32 %v7440_v26, 16 }
 0x252   : > { %3426 = vmatpush1.bf16.msra.mxu1 %v6141_v28  ;;  %3441 = vmatprep.mubr.bf16.mxu1 %v5177_v58  ;;  %v2495_v28 = vrot.slane %v2493_v57, 5  ;;  %v6175_v57 = vld [vmem:[#allocation12 + $0x710] ss:$12 sps:$4 sm:$0xff]   ;;  %v6172_v52 = vld [vmem:[#allocation12 + $0x5e8] ss:$12 sps:$4 sm:$0xff]  }
 0x253   : > { %5600 = vmatpush3.bf16.msra.mxu0 %v6145_v42  ;;  %3591 = vmatprep.mubr.bf16.mxu0 %v5177_v58  ;;  %v2517_v42 = vrot.slane %v2515_v23, 5  ;;  %v2319_v58 = vld [vmem:[#allocation2 + $0x108] sm:$0xff]  ;;  %v2607_v21 = vrot.slane %v2605_v24, 5  ;;  %v6194_v24 = vld [vmem:[#allocation12 + $0x64c] ss:$12 sps:$4 sm:$0xff]  }
 0x254   : > { %3427 = vmatprep.subr.bf16.mxu1 %v6148_v43  ;;  %5601 = vmatprep.subr.bf16.mxu0 %v6149_v48  ;;  %v6159_v43 = vld [vmem:[#allocation12 + $0x5a4] ss:$12 sps:$4 sm:$0xff]   ;;  %v6166_v48 = vld [vmem:[#allocation12 + $0x620] ss:$12 sps:$4 sm:$0xff]   ;;  %v2568_v14 = vshrl.u32 %v2319_v58, 16  ;;  %v2496_v36 = vsel %vm7213_vm4, %v2491_v33, %v2495_v28  ;;  %v2571_v22 = vshll.u32 %v2319_v58, 16 }
 0x255   : > { %v7436_v62 = vcombine.high %v2468_v6, %v2496_v36  ;;  %v6167_v28 = vld [vmem:[#allocation12 + $0x5d0] ss:$12 sps:$4 sm:$0xff]   ;;  %v6181_v58 = vld [vmem:[#allocation12 + $0x668] ss:$12 sps:$4 sm:$0xff]  }
 0x256   : > { %3428 = vmatpush1.bf16.msra.mxu1 %v6146_v16  ;;  %v2549_v16 = vshll.u32 %v7344_v7, 16  ;;  %v2570_v32 = vrot.slane %v2568_v14, 4  ;;  %v2573_v17 = vrot.slane %v2571_v22, 5  ;;  %v6190_v14 = vld [vmem:[#allocation12 + $0x758] ss:$12 sps:$4 sm:$0xff]  }
 0x257   : > { %5602 = vmatpush3.bf16.msra.mxu0 %v6150_v38  ;;  %3429 = vmatprep.subr.bf16.mxu1 %v6153_v55  ;;  %v2518_v38 = vor.u32 %v2517_v42, %v2514_v50  ;;  %v2546_v55 = vor.u32 %v2545_v15, %v2542_v25  ;;  %v2577_v42 = vshll.u32 %v7442_v34, 16  ;;  %v6174_v25 = vld [vmem:[#allocation12 + $0x5ec] ss:$12 sps:$4 sm:$0xff]   ;;  %v7450_v15 = vcombine.low %v2468_v6, %v2496_v36 }
 0x258   : > { %5633 = vmatprep.subr.bf16.mxu0 %v6160_v53  ;;  %v6171_v53 = vld [vmem:[#allocation12 + $0x638] ss:$12 sps:$4 sm:$0xff]   ;;  %v2551_v7 = vrot.slane %v2549_v16, 5  ;;  %v2574_v33 = vor.u32 %v2573_v17, %v2570_v32  ;;  %v6186_v6 = vld [vmem:[#allocation12 + $0x680] ss:$12 sps:$4 sm:$0xff]  }
 0x259   : > { %v2519_v31 = vrot.slane %v2518_v38, 4  ;;  %v2547_v23 = vrot.slane %v2546_v55, 4  ;;  %v2579_v60 = vrot.slane %v2577_v42, 5  ;;  %v6179_v16 = vld [vmem:[#allocation12 + $0x604] ss:$12 sps:$4 sm:$0xff]  }
 0x25a   : > { %3592 = vmatmul.mubr.bf16.vlgmr.msra.gmra.mrb[76].mxu0 %v7420_v0  ;;  %3430 = vmatpush1.bf16.msra.mxu1 %v6151_v45  ;;  %v6162_v45 = vld [vmem:[#allocation12 + $0x5b8] ss:$12 sps:$4 sm:$0xff]   ;;  %v2575_v39 = vrot.slane %v2574_v33, 4  ;;  %v6177_v38 = vld [vmem:[#allocation12 + $0x600] ss:$12 sps:$4 sm:$0xff]  }
 0x25b   : > { %3597 = vmatprep.mubr.bf16.mxu0 %v7424_v61  ;;  %3431 = vmatprep.subr.bf16.mxu1 %v6156_v29  ;;  %v6176_v29 = vld [vmem:[#allocation12 + $0x650] ss:$12 sps:$4 sm:$0xff]   ;;  %v2552_v50 = vsel %vm7213_vm4, %v2547_v23, %v2551_v7  ;;  %v6182_v32 = vld [vmem:[#allocation12 + $0x618] ss:$12 sps:$4 sm:$0xff]   ;;  %v6197_v33 = vld [vmem:[#allocation12 + $0x660] ss:$12 sps:$4 sm:$0xff]  }
 0x25c   : > { %5634 = vmatpush3.bf16.msra.mxu0 %v6161_v35  ;;  %v2602_v35 = vor.u32 %v2601_v10, %v2598_v3  ;;  %v3654_v55 = vld [vmem:[#allocation2] sm:$0xee] }
 0x25d   : > { %5635 = vmatprep.subr.bf16.mxu0 %v6165_v27  ;;  %v2524_v27 = vsel %vm7213_vm4, %v2519_v31, %v2523_v11  ;;  %v3656_v22 = vld [vmem:[#allocation2 + $0x20] sm:$0xee]  ;;  %v5290_v63 = vrot.slane %v3654_v55, 9  ;;  %v6300_v31 = vld [vmem:[#allocation2 + $0x30] sm:$0x11] }
 0x25e   : > { %3432 = vmatpush1.bf16.msra.mxu1 %v6154_v30  ;;  %v6180_v30 = vld [vmem:[#allocation12 + $0x728] ss:$12 sps:$4 sm:$0xff]   ;;  %v6191_v3 = vld [vmem:[#allocation12 + $0x698] ss:$12 sps:$4 sm:$0xff]   ;;  %v6195_v7 = vld [vmem:[#allocation12 + $0x770] ss:$12 sps:$4 sm:$0xff]  }
 0x25f   : > { %3433 = vmatprep.subr.bf16.mxu1 %v6159_v43  ;;  %v7452_v43 = vcombine.high %v2524_v27, %v2552_v50  ;;  %v3727_v23 = vrot.slane %v6300_v31, 5  ;;  %v6196_v17 = vld [vmem:[#allocation12 + $0x6b0] ss:$12 sps:$4 sm:$0xff]   ;;  %v6231_v55 = vld [vmem:[#allocation12 + $0x8c0] ss:$12 sps:$4 sm:$0xff]  }
 0x260   : > { %5636 = vmatpush3.bf16.msra.mxu0 %v6166_v48  ;;  %v6185_v48 = vld [vmem:[#allocation12 + $0x740] ss:$12 sps:$4 sm:$0xff]  }
 0x261   : > { %5637 = vmatprep.subr.bf16.mxu0 %v6170_v13  ;;  %v2603_v13 = vrot.slane %v2602_v35, 4 }
 0x262   : > { %3598 = vmatmul.mubr.bf16.gmra.mrb[80].mxu0 %v7434_v9  ;;  %3434 = vmatpush1.bf16.msra.mxu1 %v6157_v5  ;;  %v2580_v5 = vsel %vm7213_vm4, %v2575_v39, %v2579_v60  ;;  %v6216_v39 = vld [vmem:[#allocation12 + $0x878] ss:$12 sps:$4 sm:$0xff]   ;;  %v6203_v60 = vld [vmem:[#allocation12 + $0x690] ss:$12 sps:$4 sm:$0xff]  }
 0x263   : > { %3605 = vmatprep.mubr.bf16.mxu0 %v7436_v62  ;;  %3435 = vmatprep.subr.bf16.mxu1 %v6164_v37  ;;  %v2608_v36 = vsel %vm7213_vm4, %v2603_v13, %v2607_v21  ;;  %v7460_v37 = vcombine.low %v2524_v27, %v2552_v50  ;;  %v6192_v27 = vld [vmem:[#allocation12 + $0x648] ss:$12 sps:$4 sm:$0xff]   ;;  %v6199_v50 = vld [vmem:[#allocation12 + $0x664] ss:$12 sps:$4 sm:$0xff]   ;;  %v6210_v13 = vld [vmem:[#allocation12 + $0x6ac] ss:$12 sps:$4 sm:$0xff]  }
 0x264   : > { %5638 = vmatpush3.bf16.msra.mxu0 %v6171_v53  ;;  %v6184_v53 = vld [vmem:[#allocation12 + $0x61c] ss:$12 sps:$4 sm:$0xff]   ;;  %v7463_v11 = vcombine.high %v2580_v5, %v2608_v36  ;;  %v5192_v35 = vcombine.low %v2580_v5, %v2608_v36  ;;  %v6213_v5 = vld [vmem:[#allocation12 + $0x6c0] ss:$12 sps:$4 sm:$0xff]  }
 0x265   : > { %5639 = vmatprep.subr.bf16.mxu0 %v6175_v57  ;;  %v6299_v57 = vld [vmem:[#allocation2 + $0x10] sm:$0x11] }
 0x266   : > { %3436 = vmatpush1.bf16.msra.mxu1 %v6162_v45  ;;  %v3719_v10 = vrot.slane %v6299_v57, 5  ;;  %v5292_v45 = vrot.slane %v3656_v22, 9  ;;  %v6208_v21 = vld [vmem:[#allocation12 + $0x6a8] ss:$12 sps:$4 sm:$0xff]   ;;  %v6218_v22 = vld [vmem:[#allocation12 + $0x6d8] ss:$12 sps:$4 sm:$0xff]  }
 0x267   : > { %3437 = vmatprep.subr.bf16.mxu1 %v6169_v2  ;;  %v6206_v2 = vld [vmem:[#allocation12 + $0x848] ss:$12 sps:$4 sm:$0xff]   ;;  %v6230_v57 = vld [vmem:[#allocation12 + $0x70c] ss:$12 sps:$4 sm:$0xff]  }
 0x268   : > { %5640 = vmatpush3.bf16.msra.mxu0 %v6176_v29  ;;  %v3720_v29 = vsel %vm7243_vm7, %v5290_v63, %v3719_v10  ;;  %v6220_v36 = vld [vmem:[#allocation12 + $0x6dc] ss:$12 sps:$4 sm:$0xff]   ;;  %v3657_v63 = vld [vmem:[#allocation2 + $0x28] sm:$0xee] }
 0x269   : > { %5641 = vmatprep.subr.bf16.mxu0 %v6180_v30  ;;  %v6187_v30 = vld [vmem:[#allocation12 + $0x630] ss:$12 sps:$4 sm:$0xff]   ;;  %v6237_v10 = vld [vmem:[#allocation12 + $0x818] ss:$12 sps:$4 sm:$0xff]  }
 0x26a   : > { %3606 = vmatmul.mubr.bf16.gmra.mrb[84].mxu0 %v7450_v15  ;;  %3438 = vmatpush1.bf16.msra.mxu1 %v6167_v28 }
 0x26b   : > { %3613 = vmatprep.mubr.bf16.mxu0 %v7452_v43  ;;  %3439 = vmatprep.subr.bf16.mxu1 %v6174_v25  ;;  %v6202_v25 = vld [vmem:[#allocation12 + $0x67c] ss:$12 sps:$4 sm:$0xff]  }
 0x26c   : > { %5642 = vmatpush3.bf16.msra.mxu0 %v6181_v58  ;;  %v6207_v58 = vld [vmem:[#allocation12 + $0x788] ss:$12 sps:$4 sm:$0xff]  }
 0x26d   : > { %5643 = vmatprep.subr.bf16.mxu0 %v6185_v48  ;;  %v6205_v48 = vld [vmem:[#allocation12 + $0x694] ss:$12 sps:$4 sm:$0xff]  }
 0x26e   : > { %3440 = vmatpush1.bf16.msra.mxu1 %v6172_v52  ;;  %v6212_v52 = vld [vmem:[#allocation12 + $0x7a0] ss:$12 sps:$4 sm:$0xff]  }
 0x26f   : > { %4518 = vmatprep.subr.bf16.mxu1 %v6179_v16  ;;  %v6215_v16 = vld [vmem:[#allocation12 + $0x6c4] ss:$12 sps:$4 sm:$0xff]  }
 0x270   : > { %5644 = vmatpush3.bf16.msra.mxu0 %v6186_v6  ;;  %v6222_v6 = vld [vmem:[#allocation12 + $0x7d0] ss:$12 sps:$4 sm:$0xff]  }
 0x271   : > { %3442 = vmatmul.mubr.bf16.vlgmr.msra.gmra.mrb[60].mxu1 %v7420_v0  ;;  %5645 = vmatprep.subr.bf16.mxu0 %v6190_v14  ;;  %v6189_v0 = vld [vmem:[#allocation12 + $0x634] ss:$12 sps:$4 sm:$0xff]  }
 0x272   : > { %3614 = vmatmul.mubr.bf16.gmra.mrb[88].mxu0 %v7460_v37  ;;  %3450 = vmatprep.mubr.bf16.mxu1 %v7424_v61  ;;  %v3728_v61 = vsel %vm7243_vm7, %v5292_v45, %v3727_v23  ;;  %v6226_v14 = vld [vmem:[#allocation12 + $0x8a8] ss:$12 sps:$4 sm:$0xff]   ;;  %v6241_v45 = vld [vmem:[#allocation12 + $0x8f0] ss:$12 sps:$4 sm:$0xff]   ;;  %v3723_v23 = vrot.slane %v7398_v49, 5 }
 0x273   : > { %3621 = vmatprep.mubr.bf16.mxu0 %v7463_v11  ;;  %4519 = vmatpush1.bf16.msra.mxu1 %v6177_v38  ;;  %v5311_v28 = vcombine.high %v3720_v29, %v3728_v61  ;;  %v7474_v42 = vcombine.low %v3720_v29, %v3728_v61  ;;  %v6227_v38 = vld [vmem:[#allocation12 + $0x7e8] ss:$12 sps:$4 sm:$0xff]  }
 0x274   : > { %4520 = vmatprep.subr.bf16.mxu1 %v6184_v53  ;;  %5646 = vmatpush3.bf16.msra.mxu0 %v6191_v3  ;;  %v6232_v53 = vld [vmem:[#allocation12 + $0x800] ss:$12 sps:$4 sm:$0xff]   ;;  %v6236_v3 = vld [vmem:[#allocation12 + $0x8d8] ss:$12 sps:$4 sm:$0xff]   ;;  %v6228_v29 = vld [vmem:[#allocation12 + $0x708] ss:$12 sps:$4 sm:$0xff]  }
 0x275   : > { %5647 = vmatprep.subr.bf16.mxu0 %v6195_v7  ;;  %v3655_v7 = vld [vmem:[#allocation2 + $0x8] sm:$0xee] }
 0x276   : > { %v5291_v31 = vrot.slane %v3655_v7, 9  ;;  %v6252_v7 = vld [vmem:[#allocation12 + $0x798] ss:$12 sps:$4 sm:$0xff]  }
 0x277   : > { %4521 = vmatpush1.bf16.msra.mxu1 %v6182_v32  ;;  %v5293_v32 = vrot.slane %v3657_v63, 9 }
 0x278   : > { %4522 = vmatprep.subr.bf16.mxu1 %v6189_v0  ;;  %5648 = vmatpush3.bf16.msra.mxu0 %v6196_v17  ;;  %v3731_v0 = vrot.slane %v7400_v18, 5 }
 0x279   : > { %3451 = vmatmul.mubr.bf16.gmra.mrb[44].mxu1 %v7434_v9  ;;  %5679 = vmatprep.subr.bf16.mxu0 %v6206_v2  ;;  %v6211_v9 = vld [vmem:[#allocation12 + $0x860] ss:$12 sps:$4 sm:$0xff]  }
 0x27a   : > { %3622 = vmatmul.mubr.bf16.gmra.mrb[92].mxu0 %v5192_v35  ;;  %3460 = vmatprep.mubr.bf16.mxu1 %v7436_v62  ;;  %v6200_v62 = vld [vmem:[#allocation12 + $0x678] ss:$12 sps:$4 sm:$0xff]  }
 0x27b   : > { %4523 = vmatpush1.bf16.msra.mxu1 %v6187_v30  ;;  %4708 = vmatprep.mubr.bf16.mxu0 %v5311_v28 }
 0x27c   : > { %4524 = vmatprep.subr.bf16.mxu1 %v6194_v24  ;;  %v6242_v24 = vld [vmem:[#allocation12 + $0x830] ss:$12 sps:$4 sm:$0xff]  }
 0x27f   : > { %4525 = vmatpush1.bf16.msra.mxu1 %v6192_v27 }
 0x280   : > { %4526 = vmatprep.subr.bf16.mxu1 %v6199_v50  ;;  %v3724_v50 = vsel %vm7243_vm7, %v5291_v31, %v3723_v23 }
 0x281   : > { %3461 = vmatmul.mubr.bf16.gmra.mrb[48].mxu1 %v7450_v15  ;;  %v6217_v15 = vld [vmem:[#allocation12 + $0x7b8] ss:$12 sps:$4 sm:$0xff]  }
 0x282   : > { %4709 = vmatmul.mubr.bf16.vlgmr.msra.gmra.mrb[96].mxu0 %v7474_v42  ;;  %3470 = vmatprep.mubr.bf16.mxu1 %v7452_v43  ;;  %v6221_v43 = vld [vmem:[#allocation12 + $0x890] ss:$12 sps:$4 sm:$0xff]  }
 0x283   : > { %4527 = vmatpush1.bf16.msra.mxu1 %v6197_v33  ;;  %4714 = vmatprep.mubr.bf16.mxu0 %v7278_v19  ;;  %v3732_v33 = vsel %vm7243_vm7, %v5293_v32, %v3731_v0  ;;  %v6255_v32 = vld [vmem:[#allocation12 + $0x7b0] ss:$12 sps:$4 sm:$0xff]  }
 0x284   : > { %4528 = vmatprep.subr.bf16.mxu1 %v6202_v25  ;;  %5680 = vmatpush3.bf16.msra.mxu0 %v6207_v58  ;;  %v6233_v25 = vld [vmem:[#allocation12 + $0x720] ss:$12 sps:$4 sm:$0xff]   ;;  %v6240_v58 = vld [vmem:[#allocation12 + $0x73c] ss:$12 sps:$4 sm:$0xff]  }
 0x285   : > { %5681 = vmatprep.subr.bf16.mxu0 %v6211_v9  ;;  %v7500_v9 = vcombine.high %v3724_v50, %v3732_v33 }
 0x287   : > { %4529 = vmatpush1.bf16.msra.mxu1 %v6200_v62  ;;  %v6238_v62 = vld [vmem:[#allocation12 + $0x738] ss:$12 sps:$4 sm:$0xff]  }
 0x288   : > { %4530 = vmatprep.subr.bf16.mxu1 %v6205_v48  ;;  %5682 = vmatpush3.bf16.msra.mxu0 %v6212_v52  ;;  %v6245_v52 = vld [vmem:[#allocation12 + $0x754] ss:$12 sps:$4 sm:$0xff]  }
 0x289   : > { %3471 = vmatmul.mubr.bf16.gmra.mrb[52].mxu1 %v7460_v37  ;;  %5683 = vmatprep.subr.bf16.mxu0 %v6216_v39  ;;  %v6225_v37 = vld [vmem:[#allocation12 + $0x6f4] ss:$12 sps:$4 sm:$0xff]  }
 0x28a   : > { %4715 = vmatmul.mubr.bf16.gmra.mrb[100].mxu0 %v7280_v20  ;;  %3480 = vmatprep.mubr.bf16.mxu1 %v7463_v11  ;;  %v6223_v11 = vld [vmem:[#allocation12 + $0x6f0] ss:$12 sps:$4 sm:$0xff]  }
 0x28b   : > { %4531 = vmatpush1.bf16.msra.mxu1 %v6203_v60  ;;  %4722 = vmatprep.mubr.bf16.mxu0 %v7296_v40 }
 0x28c   : > { %4532 = vmatprep.subr.bf16.mxu1 %v6210_v13  ;;  %5684 = vmatpush3.bf16.msra.mxu0 %v6217_v15 }
 0x28d   : > { %5685 = vmatprep.subr.bf16.mxu0 %v6221_v43  ;;  %v6243_v43 = vld [vmem:[#allocation12 + $0x750] ss:$12 sps:$4 sm:$0xff]  }
 0x28f   : > { %4533 = vmatpush1.bf16.msra.mxu1 %v6208_v21  ;;  %v7506_v21 = vcombine.low %v3724_v50, %v3732_v33 }
 0x290   : > { %4534 = vmatprep.subr.bf16.mxu1 %v6215_v16  ;;  %5686 = vmatpush3.bf16.msra.mxu0 %v6222_v6  ;;  %v6248_v6 = vld [vmem:[#allocation12 + $0x76c] ss:$12 sps:$4 sm:$0xff]  }
 0x291   : > { %3481 = vmatmul.mubr.bf16.gmra.mrb[56].mxu1 %v5192_v35  ;;  %5687 = vmatprep.subr.bf16.mxu0 %v6226_v14  ;;  %v6235_v35 = vld [vmem:[#allocation12 + $0x724] ss:$12 sps:$4 sm:$0xff]   ;;  %v6246_v14 = vld [vmem:[#allocation12 + $0x768] ss:$12 sps:$4 sm:$0xff]  }
 0x292   : > { %4723 = vmatmul.mubr.bf16.gmra.mrb[104].mxu0 %v7298_v41  ;;  %4550 = vmatprep.mubr.bf16.mxu1 %v5311_v28 }
 0x293   : > { %4535 = vmatpush1.bf16.msra.mxu1 %v6213_v5  ;;  %4730 = vmatprep.mubr.bf16.mxu0 %v7315_v4 }
 0x294   : > { %4536 = vmatprep.subr.bf16.mxu1 %v6220_v36  ;;  %5688 = vmatpush3.bf16.msra.mxu0 %v6227_v38  ;;  %v6251_v36 = vld [vmem:[#allocation12 + $0x784] ss:$12 sps:$4 sm:$0xff]  }
 0x295   : > { %5689 = vmatprep.subr.bf16.mxu0 %v6231_v55 }
 0x297   : > { %4537 = vmatpush1.bf16.msra.mxu1 %v6218_v22 }
 0x298   : > { %4538 = vmatprep.subr.bf16.mxu1 %v6225_v37  ;;  %5690 = vmatpush3.bf16.msra.mxu0 %v6232_v53  ;;  %v6249_v53 = vld [vmem:[#allocation12 + $0x780] ss:$12 sps:$4 sm:$0xff]  }
 0x299   : > { %5691 = vmatprep.subr.bf16.mxu0 %v6236_v3 }
 0x29a   : > { %4731 = vmatmul.mubr.bf16.gmra.mrb[108].mxu0 %v7317_v1  ;;  %v7490_v17 = vpop.f32.mrb[32].mxu0  ;;  %v5465_v2 = vpop.f32.mrb[0].mxu1 }
 0x29b   : > { %4539 = vmatpush1.bf16.msra.mxu1 %v6223_v11  ;;  %4738 = vmatprep.mubr.bf16.mxu0 %v7326_v8  ;;  %v1998_v61 = vpop.f32.mrb[33].mxu0  ;;  %v5466_v30 = vpop.f32.mrb[1].mxu1  ;;  %v6254_v11 = vld [vmem:[#allocation12 + $0x79c] ss:$12 sps:$4 sm:$0xff]   ;;  %v3671_v2 = vld [vmem:[#allocation2 + $0x108] sm:$0xee] }
 0x29c   : > { %4540 = vmatprep.subr.bf16.mxu1 %v6230_v57  ;;  %5692 = vmatpush3.bf16.msra.mxu0 %v6237_v10  ;;  %v7492_v28 = vpop.f32.mrb[34].mxu0  ;;  %v5468_v27 = vpop.f32.mrb[2].mxu1  ;;  %v6257_v57 = vld [vmem:[#allocation12 + $0x7b4] ss:$12 sps:$4 sm:$0xff]   ;;  %v5307_v61 = vrot.slane %v3671_v2, 9  ;;  %v3787_v30 = vrot.slane %v7442_v34, 5 }
 0x29d   : > { %5693 = vmatprep.subr.bf16.mxu0 %v6241_v45  ;;  %v7494_v49 = vpop.f32.mrb[35].mxu0  ;;  %v5469_v18 = vpop.f32.mrb[3].mxu1  ;;  %v6279_v2 = vld [vmem:[#allocation12 + $0x870] ss:$12 sps:$4 sm:$0xff]  }
 0x29e   : > { %v6263_v18 = vld [vmem:[#allocation12 + $0x7e4] ss:$12 sps:$4 sm:$0xff]  }
 0x29f   : > { %4541 = vmatpush1.bf16.msra.mxu1 %v6228_v29  ;;  %v6258_v29 = vld [vmem:[#allocation12 + $0x7c8] ss:$12 sps:$4 sm:$0xff]  }
 0x2a0   : > { %4542 = vmatprep.subr.bf16.mxu1 %v6235_v35  ;;  %5694 = vmatpush3.bf16.msra.mxu0 %v6242_v24  ;;  %v3795_v24 = vrot.slane %v7440_v26, 5  ;;  %v6266_v26 = vld [vmem:[#allocation12 + $0x7fc] ss:$12 sps:$4 sm:$0xff]  }
 0x2a2   : > { %4739 = vmatmul.mubr.bf16.gmra.mrb[112].mxu0 %v7329_v12 }
 0x2a3   : > { %4543 = vmatpush1.bf16.msra.mxu1 %v6233_v25  ;;  %4779 = vmatprep.mubr.bf16.mxu0 %v7500_v9  ;;  %v5471_v48 = vpop.f32.mrb[4].mxu1 }
 0x2a4   : > { %4544 = vmatprep.subr.bf16.mxu1 %v6240_v58  ;;  %v5472_v39 = vpop.f32.mrb[5].mxu1  ;;  %v3788_v58 = vsel %vm7243_vm7, %v5307_v61, %v3787_v30  ;;  %v7559_v61 = vld [vmem:[#allocation14] ss:$0 sm:$0xff] }
 0x2a5   : > { %v7504_v60 = vadd.f32 %v5472_v39, %v5471_v48  ;;  %v5474_v13 = vpop.f32.mrb[6].mxu1 }
 0x2a6   : > { %v5475_v15 = vpop.f32.mrb[7].mxu1 }
 0x2a7   : > { %4545 = vmatpush1.bf16.msra.mxu1 %v6238_v62  ;;  %v7508_v16 = vadd.f32 %v5475_v15, %v5474_v13 }
 0x2a8   : > { %4546 = vmatprep.subr.bf16.mxu1 %v6245_v52  ;;  %v6264_v52 = vld [vmem:[#allocation12 + $0x7f8] ss:$12 sps:$4 sm:$0xff]  }
 0x2aa   : > { %4780 = vmatmul.mubr.bf16.vlgmr.msra.gmra.mrb[116].mxu0 %v7506_v21 }
 0x2ab   : > { %4547 = vmatpush1.bf16.msra.mxu1 %v6243_v43  ;;  %4785 = vmatprep.mubr.bf16.mxu0 %v7353_v56 }
 0x2ac   : > { %v5477_v5 = vpop.f32.mrb[8].mxu1  ;;  %4548 = vmatprep.subr.bf16.mxu1 %v6248_v6  ;;  %v6267_v6 = vld [vmem:[#allocation12 + $0x810] ss:$12 sps:$4 sm:$0xff]  }
 0x2ad   : > { %v5478_v38 = vpop.f32.mrb[9].mxu1 }
 0x2ae   : > { %v7512_v55 = vadd.f32 %v5478_v38, %v5477_v5  ;;  %v5480_v22 = vpop.f32.mrb[10].mxu1 }
 0x2af   : > { %4549 = vmatpush1.bf16.msra.mxu1 %v6246_v14  ;;  %v5481_v37 = vpop.f32.mrb[11].mxu1  ;;  %v6272_v14 = vld [vmem:[#allocation12 + $0x82c] ss:$12 sps:$4 sm:$0xff]  }
 0x2b0   : > { %v7514_v3 = vadd.f32 %v5481_v37, %v5480_v22  ;;  %4597 = vmatprep.subr.bf16.mxu1 %v6251_v36  ;;  %v6275_v36 = vld [vmem:[#allocation12 + $0x844] ss:$12 sps:$4 sm:$0xff]  }
 0x2b2   : > { %4551 = vmatmul.mubr.bf16.vlgmr.msra.gmra.mrb[64].mxu1 %v7474_v42  ;;  %4786 = vmatmul.mubr.bf16.gmra.mrb[120].mxu0 %v7355_v51  ;;  %v6260_v42 = vld [vmem:[#allocation12 + $0x7cc] ss:$12 sps:$4 sm:$0xff]  }
 0x2b3   : > { %4559 = vmatprep.mubr.bf16.mxu1 %v7278_v19  ;;  %4598 = vmatpush1.bf16.msra.mxu1 %v6249_v53  ;;  %v3673_v19 = vld [vmem:[#allocation2 + $0x128] sm:$0xee] }
 0x2b4   : > { %4793 = vmatprep.mubr.bf16.mxu0 %v7361_v44  ;;  %v5483_v63 = vpop.f32.mrb[12].mxu1  ;;  %4599 = vmatprep.subr.bf16.mxu1 %v6254_v11  ;;  %v5309_v35 = vrot.slane %v3673_v19, 9  ;;  %v6273_v11 = vld [vmem:[#allocation12 + $0x840] ss:$12 sps:$4 sm:$0xff]  }
 0x2b5   : > { %v5484_v10 = vpop.f32.mrb[13].mxu1 }
 0x2b6   : > { %v7520_v45 = vadd.f32 %v5484_v10, %v5483_v63  ;;  %v5486_v31 = vpop.f32.mrb[14].mxu1  ;;  %v3796_v34 = vsel %vm7243_vm7, %v5309_v35, %v3795_v24  ;;  %v6287_v24 = vld [vmem:[#allocation12 + $0x8a4] ss:$12 sps:$4 sm:$0xff]  }
 0x2b7   : > { %4600 = vmatpush1.bf16.msra.mxu1 %v6252_v7  ;;  %v5487_v23 = vpop.f32.mrb[15].mxu1  ;;  %v7540_v48 = vcombine.high %v3788_v58, %v3796_v34 }
 0x2b8   : > { %v7522_v0 = vadd.f32 %v5487_v23, %v5486_v31  ;;  %4601 = vmatprep.subr.bf16.mxu1 %v6257_v57  ;;  %v6281_v31 = vld [vmem:[#allocation12 + $0x874] ss:$12 sps:$4 sm:$0xff]  }
 0x2ba   : > { %4560 = vmatmul.mubr.bf16.gmra.mrb[68].mxu1 %v7280_v20  ;;  %4794 = vmatmul.mubr.bf16.gmra.mrb[124].mxu0 %v7363_v46 }
 0x2bb   : > { %4569 = vmatprep.mubr.bf16.mxu1 %v7296_v40  ;;  %4602 = vmatpush1.bf16.msra.mxu1 %v6255_v32  ;;  %v6261_v40 = vld [vmem:[#allocation12 + $0x7e0] ss:$12 sps:$4 sm:$0xff]  }
 0x2bc   : > { %4801 = vmatprep.mubr.bf16.mxu0 %v7381_v59  ;;  %v5489_v27 = vpop.f32.mrb[16].mxu1  ;;  %4603 = vmatprep.subr.bf16.mxu1 %v6260_v42 }
 0x2bd   : > { %v5490_v50 = vpop.f32.mrb[17].mxu1 }
 0x2be   : > { %v7530_v33 = vadd.f32 %v5490_v50, %v5489_v27  ;;  %v5492_v20 = vpop.f32.mrb[18].mxu1 }
 0x2bf   : > { %4604 = vmatpush1.bf16.msra.mxu1 %v6258_v29  ;;  %v5493_v25 = vpop.f32.mrb[19].mxu1 }
 0x2c0   : > { %v7536_v62 = vadd.f32 %v5493_v25, %v5492_v20  ;;  %4605 = vmatprep.subr.bf16.mxu1 %v6263_v18 }
 0x2c2   : > { %4570 = vmatmul.mubr.bf16.gmra.mrb[72].mxu1 %v7298_v41  ;;  %4802 = vmatmul.mubr.bf16.gmra.mrb[128].mxu0 %v7383_v54  ;;  %v7544_v41 = vcombine.low %v3788_v58, %v3796_v34 }
 0x2c3   : > { %4579 = vmatprep.mubr.bf16.mxu1 %v7315_v4  ;;  %4606 = vmatpush1.bf16.msra.mxu1 %v6261_v40  ;;  %v6270_v4 = vld [vmem:[#allocation12 + $0x828] ss:$12 sps:$4 sm:$0xff]  }
 0x2c4   : > { %4809 = vmatprep.mubr.bf16.mxu0 %v7540_v48  ;;  %v5511_v39 = vpop.f32.mrb[20].mxu1  ;;  %4607 = vmatprep.subr.bf16.mxu1 %v6266_v26  ;;  %v6285_v26 = vld [vmem:[#allocation12 + $0x8a0] ss:$12 sps:$4 sm:$0xff]  }
 0x2c5   : > { %v5512_v13 = vpop.f32.mrb[21].mxu1 }
 0x2c6   : > { %v5514_v15 = vpop.f32.mrb[22].mxu1 }
 0x2c7   : > { %4608 = vmatpush1.bf16.msra.mxu1 %v6264_v52  ;;  %v5515_v43 = vpop.f32.mrb[23].mxu1 }
 0x2c8   : > { %4609 = vmatprep.subr.bf16.mxu1 %v6269_v47  ;;  %v6288_v43 = vld [vmem:[#allocation12 + $0x8b8] ss:$12 sps:$4 sm:$0xff]  }
 0x2ca   : > { %4580 = vmatmul.mubr.bf16.gmra.mrb[76].mxu1 %v7317_v1  ;;  %4810 = vmatmul.mubr.bf16.gmra.mrb[132].mxu0 %v7544_v41  ;;  %v6278_v1 = vld [vmem:[#allocation12 + $0x85c] ss:$12 sps:$4 sm:$0xff]  }
 0x2cb   : > { %4589 = vmatprep.mubr.bf16.mxu1 %v7326_v8  ;;  %4610 = vmatpush1.bf16.msra.mxu1 %v6267_v6  ;;  %v6276_v8 = vld [vmem:[#allocation12 + $0x858] ss:$12 sps:$4 sm:$0xff]  }
 0x2cc   : > { %v5517_v5 = vpop.f32.mrb[24].mxu1  ;;  %4611 = vmatprep.subr.bf16.mxu1 %v6272_v14 }
 0x2cd   : > { %v5518_v38 = vpop.f32.mrb[25].mxu1 }
 0x2ce   : > { %v5519_v22 = vadd.f32 %v5518_v38, %v5517_v5  ;;  %v5520_v37 = vpop.f32.mrb[26].mxu1 }
 0x2cf   : > { %4612 = vmatpush1.bf16.msra.mxu1 %v6270_v4  ;;  %v5521_v53 = vpop.f32.mrb[27].mxu1  ;;  %v6293_v4 = vld [vmem:[#allocation12 + $0x8d4] ss:$12 sps:$4 sm:$0xff]  }
 0x2d0   : > { %v2232_v7 = vadd.f32 %v5519_v22, %v7504_v60  ;;  %v5522_v63 = vadd.f32 %v5521_v53, %v5520_v37  ;;  %4613 = vmatprep.subr.bf16.mxu1 %v6275_v36 }
 0x2d2   : > { %v7551_v57 = vadd.f32 %v5522_v63, %v7508_v16  ;;  %4590 = vmatmul.mubr.bf16.gmra.mrb[80].mxu1 %v7329_v12  ;;  %v6284_v16 = vld [vmem:[#allocation12 + $0x88c] ss:$12 sps:$4 sm:$0xff]   ;;  %v6291_v63 = vld [vmem:[#allocation12 + $0x8d0] ss:$12 sps:$4 sm:$0xff]  }
 0x2d3   : > { %4614 = vmatpush1.bf16.msra.mxu1 %v6273_v11  ;;  %4629 = vmatprep.mubr.bf16.mxu1 %v7500_v9  ;;  %v6282_v9 = vld [vmem:[#allocation12 + $0x888] ss:$12 sps:$4 sm:$0xff]  }
 0x2d4   : > { %v5523_v10 = vpop.f32.mrb[28].mxu1  ;;  %4615 = vmatprep.subr.bf16.mxu1 %v6278_v1 }
 0x2d5   : > { %v5524_v23 = vpop.f32.mrb[29].mxu1 }
 0x2d6   : > { %v5525_v32 = vadd.f32 %v5524_v23, %v5523_v10  ;;  %v5526_v42 = vpop.f32.mrb[30].mxu1 }
 0x2d7   : > { %4616 = vmatpush1.bf16.msra.mxu1 %v6276_v8  ;;  %v5527_v60 = vpop.f32.mrb[31].mxu1 }
 0x2d8   : > { %v2240_v19 = vadd.f32 %v5525_v32, %v7512_v55  ;;  %v5528_v29 = vadd.f32 %v5527_v60, %v5526_v42  ;;  %4617 = vmatprep.subr.bf16.mxu1 %v6281_v31  ;;  %v6296_v31 = vld [vmem:[#allocation12 + $0x8ec] ss:$12 sps:$4 sm:$0xff]   ;;  %v6294_v42 = vld [vmem:[#allocation12 + $0x8e8] ss:$12 sps:$4 sm:$0xff]  }
 0x2da   : > { %v7557_v12 = vadd.f32 %v5528_v29, %v7514_v3 }
 0x2db   : > { %4618 = vmatpush1.bf16.msra.mxu1 %v6279_v2 }
 0x2dc   : > { %v2075_v30 = vpop.f32.mrb[52].mxu0  ;;  %v5529_v35 = vpop.f32.mrb[32].mxu1  ;;  %4619 = vmatprep.subr.bf16.mxu1 %v6284_v16 }
 0x2dd   : > { %v2076_v27 = vadd.f32 %v2075_v30, %v7490_v17  ;;  %v2077_v18 = vpop.f32.mrb[53].mxu0  ;;  %v5530_v50 = vpop.f32.mrb[33].mxu1  ;;  %v6290_v17 = vld [vmem:[#allocation12 + $0x8bc] ss:$12 sps:$4 sm:$0xff]  }
 0x2de   : > { %v2078_v20 = vpop.f32.mrb[54].mxu0  ;;  %v5531_v55 = vadd.f32 %v5530_v50, %v5529_v35  ;;  %v5532_v25 = vpop.f32.mrb[34].mxu1 }
 0x2df   : > { %v2262_v40 = vadd.f32 %v7559_v61, %v2076_v27  ;;  %v2079_v3 = vadd.f32 %v2078_v20, %v7492_v28  ;;  %4620 = vmatpush1.bf16.msra.mxu1 %v6282_v9  ;;  %v2080_v58 = vpop.f32.mrb[55].mxu0  ;;  %v5533_v34 = vpop.f32.mrb[35].mxu1 }
 0x2e0   : > { %v2248_v52 = vadd.f32 %v5531_v55, %v7520_v45  ;;  %v2081_v39 = vadd.f32 %v2080_v58, %v7494_v49  ;;  %v5534_v47 = vadd.f32 %v5533_v34, %v5532_v25  ;;  %4621 = vmatprep.subr.bf16.mxu1 %v6287_v24 }
 0x2e1   : > { %v2263_v14 = vadd.f32 %v7559_v61, %v2079_v3 }
 0x2e2   : > { %v2270_v13 = vadd.f32 %v2262_v40, %v2081_v39  ;;  %v2251_v15 = vadd.f32 %v5534_v47, %v7522_v0 }
 0x2e3   : > { %4622 = vmatpush1.bf16.msra.mxu1 %v6285_v26 }
 0x2e4   : > { %v2084_v6 = vpop.f32.mrb[36].mxu0  ;;  %v5535_v28 = vpop.f32.mrb[36].mxu1  ;;  %4623 = vmatprep.subr.bf16.mxu1 %v6290_v17  ;;  %v7568_v5 = vadd.f32 %v2270_v13, %v2232_v7 }
 0x2e5   : > { %v2264_v45 = vadd.f32 %v7559_v61, %v2084_v6  ;;  %v2086_v36 = vpop.f32.mrb[37].mxu0  ;;  %v5536_v49 = vpop.f32.mrb[37].mxu1 }
 0x2e6   : > { %v2271_v38 = vadd.f32 %v2263_v14, %v2086_v36  ;;  %v2088_v22 = vpop.f32.mrb[38].mxu0  ;;  %v5537_v37 = vadd.f32 %v5536_v49, %v5535_v28  ;;  %v5538_v53 = vpop.f32.mrb[38].mxu1 }
 0x2e7   : > { %4624 = vmatpush1.bf16.msra.mxu1 %v6288_v43  ;;  %v2090_v0 = vpop.f32.mrb[39].mxu0  ;;  %v5539_v11 = vpop.f32.mrb[39].mxu1  ;;  %v2265_v60 = vadd.f32 %v7559_v61, %v2088_v22 }
 0x2e8   : > { %v7572_v1 = vadd.f32 %v2271_v38, %v7551_v57  ;;  %v2256_v8 = vadd.f32 %v5537_v37, %v7530_v33  ;;  %v2272_v10 = vadd.f32 %v2264_v45, %v2090_v0  ;;  %v5540_v7 = vadd.f32 %v5539_v11, %v5538_v53  ;;  %4625 = vmatprep.subr.bf16.mxu1 %v6293_v4 }
 0x2ea   : > { %v2259_v23 = vadd.f32 %v5540_v7, %v7536_v62  ;;  %v7576_v32 = vadd.f32 %v2272_v10, %v2240_v19 }
 0x2eb   : > { %4626 = vmatpush1.bf16.msra.mxu1 %v6291_v63 }
 0x2ec   : > { %v2094_v2 = vpop.f32.mrb[40].mxu0  ;;  %4627 = vmatprep.subr.bf16.mxu1 %v6296_v31 }
 0x2ed   : > { %v2266_v29 = vadd.f32 %v7559_v61, %v2094_v2  ;;  %v2096_v57 = vpop.f32.mrb[41].mxu0 }
 0x2ee   : > { %v2273_v16 = vadd.f32 %v2265_v60, %v2096_v57  ;;  %v2098_v9 = vpop.f32.mrb[42].mxu0 }
 0x2ef   : > { %4628 = vmatpush1.bf16.msra.mxu1 %v6294_v42  ;;  %v2100_v33 = vpop.f32.mrb[43].mxu0  ;;  %v2267_v19 = vadd.f32 %v7559_v61, %v2098_v9 }
 0x2f0   : > { %v2274_v30 = vadd.f32 %v2266_v29, %v2100_v33  ;;  %v7581_v35 = vadd.f32 %v2273_v16, %v7557_v12 }
 0x2f2   : > { %4630 = vmatmul.mubr.bf16.vlgmr.msra.gmra.mrb[84].mxu1 %v7506_v21  ;;  %v7584_v62 = vadd.f32 %v2274_v30, %v2248_v52 }
 0x2f3   : > { %4638 = vmatprep.mubr.bf16.mxu1 %v7353_v56 }
 0x2f4   : > { %v2104_v24 = vpop.f32.mrb[44].mxu0 }
 0x2f5   : > { %v2268_v27 = vadd.f32 %v7559_v61, %v2104_v24  ;;  %v2106_v18 = vpop.f32.mrb[45].mxu0 }
 0x2f6   : > { %v2275_v50 = vadd.f32 %v2267_v19, %v2106_v18  ;;  %v2108_v20 = vpop.f32.mrb[46].mxu0 }
 0x2f7   : > { %v2110_v55 = vpop.f32.mrb[47].mxu0  ;;  %v2269_v56 = vadd.f32 %v7559_v61, %v2108_v20 }
 0x2f8   : > { %v2276_v25 = vadd.f32 %v2268_v27, %v2110_v55  ;;  %v7589_v40 = vadd.f32 %v2275_v50, %v2251_v15 }
 0x2fa   : > { %4639 = vmatmul.mubr.bf16.gmra.mrb[68].mxu1 %v7355_v51  ;;  %v7592_v12 = vadd.f32 %v2276_v25, %v2256_v8 }
 0x2fb   : > { %4648 = vmatprep.mubr.bf16.mxu1 %v7361_v44 }
 0x2fc   : > { %v2114_v21 = vpop.f32.mrb[48].mxu0 }
 0x2fd   : > { %v2115_v3 = vpop.f32.mrb[49].mxu0 }
 0x2fe   : > { %v2277_v58 = vadd.f32 %v2269_v56, %v2115_v3  ;;  %v2117_v34 = vpop.f32.mrb[50].mxu0 }
 0x2ff   : > { %v2118_v26 = vpop.f32.mrb[51].mxu0 }
 0x300   : > { %v7596_v52 = vadd.f32 %v2277_v58, %v2259_v23 }
 0x302   : > { %4649 = vmatmul.mubr.bf16.gmra.mrb[72].mxu1 %v7363_v46 }
 0x303   : > { %4658 = vmatprep.mubr.bf16.mxu1 %v7381_v59 }
 0x304   : > { %v3364_v39 = vpop.f32.mrb[40].mxu1  ;;  %v5557_v47 = vpop.f32.mrb[56].mxu0 }
 0x305   : > { %v3366_v51 = vpop.f32.mrb[41].mxu1  ;;  %v5558_v17 = vpop.f32.mrb[57].mxu0 }
 0x306   : > { %v3367_v13 = vpop.f32.mrb[42].mxu1  ;;  %v5560_v15 = vpop.f32.mrb[58].mxu0 }
 0x307   : > { %v3369_v44 = vpop.f32.mrb[43].mxu1  ;;  %v5561_v43 = vpop.f32.mrb[59].mxu0 }
 0x30a   : > { %4659 = vmatmul.mubr.bf16.gmra.mrb[76].mxu1 %v7383_v54 }
 0x30b   : > { %4668 = vmatprep.mubr.bf16.mxu1 %v7540_v48 }
 0x30c   : > { %v5563_v61 = vpop.f32.mrb[60].mxu0 }
 0x30d   : > { %v5564_v6 = vpop.f32.mrb[61].mxu0 }
 0x30e   : > { %v5565_v14 = vadd.f32 %v5564_v6, %v5563_v61  ;;  %v5566_v28 = vpop.f32.mrb[62].mxu0 }
 0x30f   : > { %v5567_v4 = vpop.f32.mrb[63].mxu0 }
 0x310   : > { %v5568_v46 = vadd.f32 %v5567_v4, %v5566_v28 }
 0x312   : > { %4669 = vmatmul.mubr.bf16.gmra.mrb[80].mxu1 %v7544_v41 }
 0x314   : > { %v5569_v59 = vpop.f32.mrb[64].mxu0 }
 0x315   : > { %v5570_v45 = vpop.f32.mrb[65].mxu0 }
 0x316   : > { %v5571_v36 = vadd.f32 %v5570_v45, %v5569_v59  ;;  %v5572_v49 = vpop.f32.mrb[66].mxu0 }
 0x317   : > { %v5573_v38 = vpop.f32.mrb[67].mxu0 }
 0x318   : > { %v5574_v22 = vadd.f32 %v5573_v38, %v5572_v49 }
 0x31c   : > { %v5575_v37 = vpop.f32.mrb[68].mxu0 }
 0x31d   : > { %v5576_v53 = vpop.f32.mrb[69].mxu0 }
 0x31e   : > { %v5577_v0 = vadd.f32 %v5576_v53, %v5575_v37  ;;  %v5578_v54 = vpop.f32.mrb[70].mxu0 }
 0x31f   : > { %v5579_v11 = vpop.f32.mrb[71].mxu0 }
 0x320   : > { %v5580_v48 = vadd.f32 %v5579_v11, %v5578_v54 }
 0x324   : > { %v5581_v63 = vpop.f32.mrb[72].mxu0 }
 0x325   : > { %v5582_v8 = vpop.f32.mrb[73].mxu0 }
 0x326   : > { %v5583_v10 = vadd.f32 %v5582_v8, %v5581_v63  ;;  %v5584_v7 = vpop.f32.mrb[74].mxu0 }
 0x327   : > { %v5585_v31 = vpop.f32.mrb[75].mxu0 }
 0x328   : > { %v5586_v23 = vadd.f32 %v5585_v31, %v5584_v7 }
 0x32d   : > { %v5603_v42 = vpop.f32.mrb[76].mxu0 }
 0x32e   : > { %v5604_v41 = vpop.f32.mrb[77].mxu0 }
 0x32f   : > { %v5606_v60 = vpop.f32.mrb[78].mxu0 }
 0x330   : > { %v5607_v2 = vpop.f32.mrb[79].mxu0 }
 0x335   : > { %v5609_v29 = vpop.f32.mrb[80].mxu0 }
 0x336   : > { %v5610_v57 = vpop.f32.mrb[81].mxu0 }
 0x337   : > { %v5611_v16 = vadd.f32 %v5610_v57, %v5609_v29  ;;  %v5612_v9 = vpop.f32.mrb[82].mxu0 }
 0x338   : > { %v5613_v33 = vpop.f32.mrb[83].mxu0 }
 0x339   : > { %v3600_v30 = vadd.f32 %v5611_v16, %v5565_v14  ;;  %v5614_v19 = vadd.f32 %v5613_v33, %v5612_v9 }
 0x33b   : > { %v3603_v24 = vadd.f32 %v5614_v19, %v5568_v46 }
 0x33d   : > { %v5615_v27 = vpop.f32.mrb[84].mxu0 }
 0x33e   : > { %v5616_v18 = vpop.f32.mrb[85].mxu0 }
 0x33f   : > { %v5617_v50 = vadd.f32 %v5616_v18, %v5615_v27  ;;  %v5618_v20 = vpop.f32.mrb[86].mxu0 }
 0x340   : > { %v5619_v55 = vpop.f32.mrb[87].mxu0 }
 0x341   : > { %v3608_v25 = vadd.f32 %v5617_v50, %v5571_v36  ;;  %v5620_v56 = vadd.f32 %v5619_v55, %v5618_v20 }
 0x343   : > { %v3611_v21 = vadd.f32 %v5620_v56, %v5574_v22 }
 0x344   : > { %v3443_v3 = vpop.f32.mrb[60].mxu1 }
 0x345   : > { %v3444_v58 = vadd.f32 %v3443_v3, %v3364_v39  ;;  %v5621_v34 = vpop.f32.mrb[88].mxu0  ;;  %v3445_v26 = vpop.f32.mrb[61].mxu1 }
 0x346   : > { %v5622_v47 = vpop.f32.mrb[89].mxu0  ;;  %v3446_v51 = vpop.f32.mrb[62].mxu1 }
 0x347   : > { %v3630_v17 = vadd.f32 %v3444_v58, %v7568_v5  ;;  %v5623_v15 = vadd.f32 %v5622_v47, %v5621_v34  ;;  %v3447_v43 = vadd.f32 %v3446_v51, %v3367_v13  ;;  %v5624_v61 = vpop.f32.mrb[90].mxu0  ;;  %v3448_v6 = vpop.f32.mrb[63].mxu1 }
 0x348   : > { %v3449_v14 = vadd.f32 %v3448_v6, %v3369_v44  ;;  %v5625_v28 = vpop.f32.mrb[91].mxu0 }
 0x349   : > { %v3616_v4 = vadd.f32 %v5623_v15, %v5577_v0  ;;  %v5626_v46 = vadd.f32 %v5625_v28, %v5624_v61  ;;  %v3631_v59 = vadd.f32 %v3447_v43, %v7572_v1 }
 0x34a   : > { %v3638_v45 = vadd.f32 %v3630_v17, %v3449_v14 }
 0x34b   : > { %v3619_v36 = vadd.f32 %v5626_v46, %v5580_v48 }
 0x34c   : > { %v3452_v49 = vpop.f32.mrb[44].mxu1  ;;  %v7605_v39 = vadd.f32 %v3638_v45, %v3600_v30 }
 0x34d   : > { %v3632_v38 = vadd.f32 %v3452_v49, %v7576_v32  ;;  %v5627_v22 = vpop.f32.mrb[92].mxu0  ;;  %v3454_v37 = vpop.f32.mrb[45].mxu1 }
 0x34e   : > { %v3639_v5 = vadd.f32 %v3631_v59, %v3454_v37  ;;  %v5628_v53 = vpop.f32.mrb[93].mxu0  ;;  %v3456_v13 = vpop.f32.mrb[46].mxu1 }
 0x34f   : > { %v5629_v54 = vadd.f32 %v5628_v53, %v5627_v22  ;;  %v3633_v44 = vadd.f32 %v3456_v13, %v7581_v35  ;;  %v5630_v11 = vpop.f32.mrb[94].mxu0  ;;  %v3458_v0 = vpop.f32.mrb[47].mxu1 }
 0x350   : > { %v7609_v63 = vadd.f32 %v3639_v5, %v3603_v24  ;;  %v3640_v1 = vadd.f32 %v3632_v38, %v3458_v0  ;;  %v5631_v8 = vpop.f32.mrb[95].mxu0 }
 0x351   : > { %v3624_v48 = vadd.f32 %v5629_v54, %v5583_v10  ;;  %v5632_v7 = vadd.f32 %v5631_v8, %v5630_v11 }
 0x352   : > { %v7611_v31 = vadd.f32 %v3640_v1, %v3608_v25 }
 0x353   : > { %v3627_v42 = vadd.f32 %v5632_v7, %v5586_v23 }
 0x354   : > { %v3462_v32 = vpop.f32.mrb[48].mxu1 }
 0x355   : > { %v3634_v41 = vadd.f32 %v3462_v32, %v7584_v62  ;;  %v5649_v60 = vpop.f32.mrb[96].mxu0  ;;  %v3464_v2 = vpop.f32.mrb[49].mxu1 }
 0x356   : > { %v3641_v29 = vadd.f32 %v3633_v44, %v3464_v2  ;;  %v5650_v57 = vpop.f32.mrb[97].mxu0  ;;  %v3466_v16 = vpop.f32.mrb[50].mxu1 }
 0x357   : > { %v3635_v35 = vadd.f32 %v3466_v16, %v7589_v40  ;;  %v5652_v9 = vpop.f32.mrb[98].mxu0  ;;  %v3468_v33 = vpop.f32.mrb[51].mxu1 }
 0x358   : > { %v3642_v30 = vadd.f32 %v3634_v41, %v3468_v33  ;;  %v5653_v19 = vpop.f32.mrb[99].mxu0  ;;  %v7615_v24 = vadd.f32 %v3641_v29, %v3611_v21 }
 0x35a   : > { %v7617_v10 = vadd.f32 %v3642_v30, %v3616_v4 }
 0x35c   : > { %v3472_v27 = vpop.f32.mrb[52].mxu1 }
 0x35d   : > { %v3636_v23 = vadd.f32 %v3472_v27, %v7592_v12  ;;  %v5655_v18 = vpop.f32.mrb[100].mxu0  ;;  %v3474_v62 = vpop.f32.mrb[53].mxu1 }
 0x35e   : > { %v3643_v50 = vadd.f32 %v3635_v35, %v3474_v62  ;;  %v5656_v20 = vpop.f32.mrb[101].mxu0  ;;  %v3476_v55 = vpop.f32.mrb[54].mxu1 }
 0x35f   : > { %v5657_v25 = vadd.f32 %v5656_v20, %v5655_v18  ;;  %v3637_v56 = vadd.f32 %v3476_v55, %v7596_v52  ;;  %v5658_v40 = vpop.f32.mrb[102].mxu0  ;;  %v3478_v3 = vpop.f32.mrb[55].mxu1 }
 0x360   : > { %v3644_v58 = vadd.f32 %v3636_v23, %v3478_v3  ;;  %v5659_v34 = vpop.f32.mrb[103].mxu0  ;;  %v7621_v26 = vadd.f32 %v3643_v50, %v3619_v36 }
 0x361   : > { %v5660_v21 = vadd.f32 %v5659_v34, %v5658_v40 }
 0x362   : > { %v7623_v47 = vadd.f32 %v3644_v58, %v3624_v48 }
 0x364   : > { %v3482_v51 = vpop.f32.mrb[56].mxu1 }
 0x365   : > { %v5661_v17 = vpop.f32.mrb[104].mxu0  ;;  %v3483_v12 = vpop.f32.mrb[57].mxu1 }
 0x366   : > { %v3645_v15 = vadd.f32 %v3637_v56, %v3483_v12  ;;  %v5662_v43 = vpop.f32.mrb[105].mxu0  ;;  %v3485_v61 = vpop.f32.mrb[58].mxu1 }
 0x367   : > { %v5663_v6 = vadd.f32 %v5662_v43, %v5661_v17  ;;  %v5664_v14 = vpop.f32.mrb[106].mxu0  ;;  %v3486_v28 = vpop.f32.mrb[59].mxu1 }
 0x368   : > { %v5665_v4 = vpop.f32.mrb[107].mxu0  ;;  %v7625_v52 = vadd.f32 %v3645_v15, %v3627_v42 }
 0x369   : > { %v5666_v46 = vadd.f32 %v5665_v4, %v5664_v14 }
 0x36d   : > { %v5667_v59 = vpop.f32.mrb[108].mxu0 }
 0x36e   : > { %v5668_v45 = vpop.f32.mrb[109].mxu0 }
 0x36f   : > { %v5669_v36 = vadd.f32 %v5668_v45, %v5667_v59  ;;  %v5670_v49 = vpop.f32.mrb[110].mxu0 }
 0x370   : > { %v5671_v38 = vpop.f32.mrb[111].mxu0 }
 0x371   : > { %v5672_v22 = vadd.f32 %v5671_v38, %v5670_v49 }
 0x375   : > { %v5673_v37 = vpop.f32.mrb[112].mxu0 }
 0x376   : > { %v5674_v5 = vpop.f32.mrb[113].mxu0 }
 0x377   : > { %v5675_v53 = vadd.f32 %v5674_v5, %v5673_v37  ;;  %v5676_v13 = vpop.f32.mrb[114].mxu0 }
 0x378   : > { %v5677_v54 = vpop.f32.mrb[115].mxu0 }
 0x379   : > { %v5678_v44 = vadd.f32 %v5677_v54, %v5676_v13 }
 0x37d   : > { %v5695_v11 = vpop.f32.mrb[116].mxu0 }
 0x37e   : > { %v5696_v0 = vpop.f32.mrb[117].mxu0 }
 0x37f   : > { %v5698_v1 = vpop.f32.mrb[118].mxu0 }
 0x380   : > { %v5699_v8 = vpop.f32.mrb[119].mxu0 }
 0x385   : > { %v4552_v48 = vpop.f32.mrb[64].mxu1  ;;  %v5701_v7 = vpop.f32.mrb[120].mxu0 }
 0x386   : > { %v4554_v42 = vpop.f32.mrb[65].mxu1  ;;  %v5702_v32 = vpop.f32.mrb[121].mxu0 }
 0x387   : > { %v5703_v41 = vadd.f32 %v5702_v32, %v5701_v7  ;;  %v4555_v60 = vpop.f32.mrb[66].mxu1  ;;  %v5704_v2 = vpop.f32.mrb[122].mxu0 }
 0x388   : > { %v4557_v29 = vpop.f32.mrb[67].mxu1  ;;  %v5705_v57 = vpop.f32.mrb[123].mxu0 }
 0x389   : > { %v4788_v16 = vadd.f32 %v5703_v41, %v5657_v25  ;;  %v5706_v35 = vadd.f32 %v5705_v57, %v5704_v2 }
 0x38b   : > { %v4791_v9 = vadd.f32 %v5706_v35, %v5660_v21 }
 0x38d   : > { %v5707_v33 = vpop.f32.mrb[124].mxu0 }
 0x38e   : > { %v5708_v30 = vpop.f32.mrb[125].mxu0 }
 0x38f   : > { %v5709_v19 = vadd.f32 %v5708_v30, %v5707_v33  ;;  %v5710_v27 = vpop.f32.mrb[126].mxu0 }
 0x390   : > { %v5711_v23 = vpop.f32.mrb[127].mxu0 }
 0x391   : > { %v4796_v18 = vadd.f32 %v5709_v19, %v5663_v6  ;;  %v5712_v62 = vadd.f32 %v5711_v23, %v5710_v27 }
 0x393   : > { %v4799_v50 = vadd.f32 %v5712_v62, %v5666_v46 }
 0x395   : > { %v5713_v20 = vpop.f32.mrb[128].mxu0 }
 0x396   : > { %v5714_v55 = vpop.f32.mrb[129].mxu0 }
 0x397   : > { %v5715_v56 = vadd.f32 %v5714_v55, %v5713_v20  ;;  %v5716_v40 = vpop.f32.mrb[130].mxu0 }
 0x398   : > { %v5717_v3 = vpop.f32.mrb[131].mxu0 }
 0x399   : > { %v4804_v58 = vadd.f32 %v5715_v56, %v5669_v36  ;;  %v5718_v34 = vadd.f32 %v5717_v3, %v5716_v40 }
 0x39b   : > { %v4807_v51 = vadd.f32 %v5718_v34, %v5672_v22 }
 0x39d   : > { %v5719_v17 = vpop.f32.mrb[132].mxu0 }
 0x39e   : > { %v5720_v25 = vpop.f32.mrb[133].mxu0 }
 0x39f   : > { %v5721_v12 = vadd.f32 %v5720_v25, %v5719_v17  ;;  %v5722_v21 = vpop.f32.mrb[134].mxu0 }
 0x3a0   : > { %v5723_v15 = vpop.f32.mrb[135].mxu0 }
 0x3a1   : > { %v4812_v43 = vadd.f32 %v5721_v12, %v5675_v53  ;;  %v5724_v61 = vadd.f32 %v5723_v15, %v5722_v21 }
 0x3a3   : > { %v4815_v14 = vadd.f32 %v5724_v61, %v5678_v44 }
 0x3c5   : > { %v4631_v6 = vpop.f32.mrb[84].mxu1 }
 0x3c6   : > { %v4632_v28 = vadd.f32 %v4631_v6, %v4552_v48  ;;  %v4633_v4 = vpop.f32.mrb[85].mxu1 }
 0x3c7   : > { %v4634_v46 = vpop.f32.mrb[86].mxu1 }
 0x3c8   : > { %v4818_v59 = vadd.f32 %v4632_v28, %v7605_v39  ;;  %v4635_v45 = vadd.f32 %v4634_v46, %v4555_v60  ;;  %v4636_v49 = vpop.f32.mrb[87].mxu1 }
 0x3c9   : > { %v4637_v36 = vadd.f32 %v4636_v49, %v4557_v29 }
 0x3ca   : > { %v4819_v38 = vadd.f32 %v4635_v45, %v7609_v63 }
 0x3cb   : > { %v4826_v22 = vadd.f32 %v4818_v59, %v4637_v36 }
 0x3cd   : > { %v4834_v37 = vadd.f32 %v4826_v22, %v4788_v16  ;;  %v4640_v5 = vpop.f32.mrb[68].mxu1 }
 0x3ce   : > { %v4820_v13 = vadd.f32 %v4640_v5, %v7611_v31  ;;  %v4642_v53 = vpop.f32.mrb[69].mxu1 }
 0x3cf   : > { %4842 = vst [vmem:[%s7632_s8] sm:$0xff] %v4834_v37  ;;  %v4827_v54 = vadd.f32 %v4819_v38, %v4642_v53  ;;  %v4644_v39 = vpop.f32.mrb[70].mxu1 }
 0x3d0   : > { %v4821_v44 = vadd.f32 %v4644_v39, %v7615_v24  ;;  %v4646_v11 = vpop.f32.mrb[71].mxu1 }
 0x3d1   : > { %v4835_v63 = vadd.f32 %v4827_v54, %v4791_v9  ;;  %v4828_v0 = vadd.f32 %v4820_v13, %v4646_v11 }
 0x3d3   : > { %4843 = vst [vmem:[%s7632_s8 + $0x8] sm:$0xff] %v4835_v63  ;;  %v4836_v1 = vadd.f32 %v4828_v0, %v4796_v18 }
 0x3d5   : > { %4844 = vst [vmem:[%s7632_s8 + $0x10] sm:$0xff] %v4836_v1  ;;  %v4650_v31 = vpop.f32.mrb[72].mxu1 }
 0x3d6   : > { %v4822_v8 = vadd.f32 %v4650_v31, %v7617_v10  ;;  %v4652_v48 = vpop.f32.mrb[73].mxu1 }
 0x3d7   : > { %v4829_v7 = vadd.f32 %v4821_v44, %v4652_v48  ;;  %v4654_v42 = vpop.f32.mrb[74].mxu1 }
 0x3d8   : > { %v4823_v32 = vadd.f32 %v4654_v42, %v7621_v26  ;;  %v4656_v41 = vpop.f32.mrb[75].mxu1 }
 0x3d9   : > { %v4837_v60 = vadd.f32 %v4829_v7, %v4799_v50  ;;  %v4830_v24 = vadd.f32 %v4822_v8, %v4656_v41 }
 0x3db   : > { %4845 = vst [vmem:[%s7632_s8 + $0x18] sm:$0xff] %v4837_v60  ;;  %v4838_v2 = vadd.f32 %v4830_v24, %v4804_v58 }
 0x3dd   : > { %4846 = vst [vmem:[%s7632_s8 + $0x20] sm:$0xff] %v4838_v2  ;;  %v4660_v29 = vpop.f32.mrb[76].mxu1 }
 0x3de   : > { %v4824_v57 = vadd.f32 %v4660_v29, %v7623_v47  ;;  %v4662_v16 = vpop.f32.mrb[77].mxu1 }
 0x3df   : > { %v4831_v10 = vadd.f32 %v4823_v32, %v4662_v16  ;;  %v4664_v35 = vpop.f32.mrb[78].mxu1 }
 0x3e0   : > { %v4825_v9 = vadd.f32 %v4664_v35, %v7625_v52  ;;  %v4666_v33 = vpop.f32.mrb[79].mxu1 }
 0x3e1   : > { %v4839_v26 = vadd.f32 %v4831_v10, %v4807_v51  ;;  %v4832_v30 = vadd.f32 %v4824_v57, %v4666_v33 }
 0x3e3   : > { %4847 = vst [vmem:[%s7632_s8 + $0x28] sm:$0xff] %v4839_v26  ;;  %v4840_v19 = vadd.f32 %v4832_v30, %v4812_v43 }
 0x3e5   : > { %4848 = vst [vmem:[%s7632_s8 + $0x30] sm:$0xff] %v4840_v19  ;;  %v4670_v27 = vpop.f32.mrb[80].mxu1 }
 0x3e6   : > { %v4671_v23 = vpop.f32.mrb[81].mxu1 }
 0x3e7   : > { %v4833_v18 = vadd.f32 %v4825_v9, %v4671_v23  ;;  %v4673_v47 = vpop.f32.mrb[82].mxu1 }
 0x3e8   : > { %v4674_v62 = vpop.f32.mrb[83].mxu1 }
 0x3e9   : > { %v4841_v52 = vadd.f32 %v4833_v18, %v4815_v14 }
 0x3eb   : > { %4849 = vst [vmem:[%s7632_s8 + $0x38] sm:$0xff] %v4841_v52 }
 0x3ec   : > { %6512 = shalt.err (!%p6509_p8)
}
 0x3ed   : > { %s6513_s1 = scalar_lea.hbm %s7651_s19, 1024  ;;  %s6517_s20 = scalar_lea.hbm %s7705_s7, 2048 }
 0x3ee   : > { %p6514_p10 = scmp.ne.s32.totalorder %s7651_s19, %s6513_s1  ;;  %p6518_p0 = scmp.lt.u32.totalorder %s7651_s19, %s7705_s7 }
 0x3ef   : > { %p6519_p5 = scmp.lt.u32.totalorder %s6517_s20, %s6513_s1  ;;  %p6521_p6 = scmp.lt.u32.totalorder %s6513_s1, %s7651_s19 }
 0x3f0   : > { %p6515_p11 = pnand %p6514_p10, %p7737_p9 }
 0x3f1   : > { %p6520_p7 = por %p6519_p5, %p6518_p0 }
 0x3f2   : > { %p6516_p12 = pneg %p6515_p11 }
 0x3f3   : > { %p6522_p4 = por %p6521_p6, %p6520_p7 }
 0x3f5   : > { %p6523_p13 = pnand %p6522_p4, %p6516_p12 }
 0x3f7   : > { %6526 = shalt.err (!%p6523_p13)
}
 0x3f8   : > { %s6594_s15 = smov 128   ;;  %s6595_s16 = smov 8  }
 0x3f9   : > { %5799 = dma.vmem_to_hbm [thread:$0]  (%p7737_p9), %s7653_s12, 1024, %s7651_s19, %s4851_s9, %s6594_s15, %s6594_s15, %s6595_s16  }
 0x3fa PF: > { %s4879_s14 = sand.u32 1, %s6565_s24   ;;  %p7738_p1 = scmp.ne.s32.totalorder %s7718_s21, 0 }
 0x3fb   : > { %p7739_p3 = scmp.ge.s32.totalorder %s6577_s27, 2  ;;  %s4880_s30 = scalar_lea.sflag [#allocation5], %s4879_s14 }
 0x3fd   : > { %p5825_p2 = pnand %p7739_p3, %p7738_p1 }
 0x3ff   : > { %6560 = dma.done.wait (!%p5825_p2), %s4880_s30, 1024  }
 0x400   : > { %6562 = vsyncadd (!%p5825_p2), %s4880_s30, 4294966272  ;;  %p23_p8 = scmp.ge.s32.totalorder %s6813_s11, 4   ;;  %s7740_s24 = smov %s6569_s25 }
 0x401   : > { %s7741_s25 = smov %s6573_s26  ;;  %s7742_s26 = smov %s6824_s18 }
 0x402   : > { %s7743_s27 = smov %s6813_s11  ;;  %25 = sbr.rel (!%p23_p8) target bundleno = 10 (0xa), region = 121 }
 0x409   :  { %4885 = vsyncpa [#allocation4], 1 }
 0x40a   :  { %4887 = vsyncpa [#allocation4 + $0x1], 1 }
 0x40b   :  { %4888 = vsyncpa [#allocation7], 1 }
 0x40c   :  { %4889 = vsyncpa [#allocation10], 1 }
 0x40d   :  { %4890 = vsyncpa [#allocation13], 1 }
 0x40e   :  { %4891 = vsyncpa [#allocation5], 1 }
 0x40f   :  { %4893 = vsyncpa [#allocation5 + $0x1], 1 }

</bundles_post_ra>
